<compile_context>
chip_gen: v5e
topology: v5e:2x2
jax: 0.10.0
libtpu: 0.0.40
codegen_flags: <defaults>
</compile_context>

<pallas_src>
import numpy as np
import jax
import jax.numpy as jnp
from jax.experimental import pallas as pl
from jax.experimental.pallas import tpu as pltpu


def _round_up(x, m):
    return (x + m - 1) // m * m


# ---------------------------------------------------------------------------
# Pallas kernel
# ---------------------------------------------------------------------------
def _make_nerf_kernel(D, skips, use_viewdirs, C_pts_pad, C_views_pad=0):
    """Kernel over one [tm, C] tile of points (+ view dirs).

    Input refs xp/xv are raw f32 (tm, C); cast to bf16 and zero-padded to the
    lane-aligned width inside the kernel.  Weight refs are bf16 with rows
    zero-padded to the same widths; bias refs are f32.  All matmuls are
    bf16 x bf16 with f32 accumulation; elementwise math is f32, inter-layer
    activations are stored bf16.
    """
    skips = set(skips)

    def _cast_pad(x, pad_to):
        extra = pad_to - x.shape[-1]
        if extra:
            x = jnp.concatenate(
                [x, jnp.zeros((x.shape[0], extra), x.dtype)], axis=-1)
        return x.astype(jnp.bfloat16)

    def _pts_mlp(xp, w_in_ref, w_hid_ref, b_hid_ref):
        pre = jnp.dot(xp, w_in_ref[0], preferred_element_type=jnp.float32)
        h = jnp.maximum(pre + b_hid_ref[0:1, :], 0.0).astype(jnp.bfloat16)
        skip_slot = 1
        for i in range(1, D):
            pre = jnp.dot(h, w_hid_ref[i - 1],
                          preferred_element_type=jnp.float32)
            if (i - 1) in skips:
                # Layer after a skip: input was cat([x_pts, h]) in PyTorch.
                pre = pre + jnp.dot(xp, w_in_ref[skip_slot],
                                    preferred_element_type=jnp.float32)
                skip_slot += 1
            h = jnp.maximum(pre + b_hid_ref[i:i + 1, :], 0.0
                            ).astype(jnp.bfloat16)
        return h

    if use_viewdirs:
        def kernel(xp_ref, xv_ref, w_in_ref, w_hid_ref, b_hid_ref,
                   w_r0f_ref, w_r0v_ref, b_r0_ref,
                   w_sig4_ref, w_rgb14_ref, b_out4_ref, out_ref):
            xp = _cast_pad(xp_ref[...], C_pts_pad)      # bf16 (tm, Cp_pad)
            xv = _cast_pad(xv_ref[...], C_views_pad)    # bf16 (tm, Cv_pad)
            h = _pts_mlp(xp, w_in_ref, w_hid_ref, b_hid_ref)  # bf16 (tm, W)

            # feature head (no activation)
            feat = (jnp.dot(h, w_hid_ref[D - 1],
                            preferred_element_type=jnp.float32)
                    + b_hid_ref[D:D + 1, :]).astype(jnp.bfloat16)
            # sigma head, padded into a 4-wide result (only column 3 nonzero)
            sigma4 = jnp.dot(h, w_sig4_ref[...],
                             preferred_element_type=jnp.float32)

            # rgb layer 0 consumed cat([features, views]) in PyTorch.
            z = jnp.maximum(
                jnp.dot(feat, w_r0f_ref[...],
                        preferred_element_type=jnp.float32)
                + jnp.dot(xv, w_r0v_ref[...],
                          preferred_element_type=jnp.float32)
                + b_r0_ref[...], 0.0).astype(jnp.bfloat16)

            # rgb layer 1 padded to 4 columns (column 3 zero) so the final
            # cat([rgb, sigma]) is just an add + single 4-wide store.
            out4 = (jnp.dot(z, w_rgb14_ref[...],
                            preferred_element_type=jnp.float32)
                    + sigma4 + b_out4_ref[...])
            out_ref[...] = out4.astype(out_ref.dtype)
        return kernel

    def kernel(xp_ref, w_in_ref, w_hid_ref, b_hid_ref,
               w_out_ref, b_out_ref, out_ref):
        xp = _cast_pad(xp_ref[...], C_pts_pad)
        h = _pts_mlp(xp, w_in_ref, w_hid_ref, b_hid_ref)
        out = (jnp.dot(h, w_out_ref[...], preferred_element_type=jnp.float32)
               + b_out_ref[...])
        # cat([out[..., :3], out[..., 3:4]]) == out, so write directly.
        out_ref[...] = out.astype(out_ref.dtype)
    return kernel


# ---------------------------------------------------------------------------
# Parameter construction (deterministic, PyTorch-shaped but pre-transposed)
# ---------------------------------------------------------------------------
def init_nerf_params(key, D, W, C_pts, C_views, skips, use_viewdirs,
                     dtype=jnp.float32):
    skips = set(skips)

    def dense(k, fan_in, fan_out):
        k1, k2 = jax.random.split(k)
        w = jax.random.normal(k1, (fan_in, fan_out), dtype) * 0.05  # [in, out]
        b = jax.random.normal(k2, (fan_out,), dtype) * 0.01
        return w, b

    keys = jax.random.split(key, D + 5)
    params = {"pts": []}
    for i in range(D):
        if i == 0:
            fan_in = C_pts
        elif (i - 1) in skips:
            fan_in = W + C_pts
        else:
            fan_in = W
        params["pts"].append(dense(keys[i], fan_in, W))
    if use_viewdirs:
        params["sigma"] = dense(keys[D + 0], W, 1)
        params["feature"] = dense(keys[D + 1], W, W)
        params["rgb0"] = dense(keys[D + 2], W + C_views, W // 2)
        params["rgb1"] = dense(keys[D + 3], W // 2, 3)
    else:
        params["out"] = dense(keys[D + 0], W, 4)
    return params


def pack_params_for_kernel(params, D, W, C_pts, C_views, skips, use_viewdirs,
                           C_pts_pad, C_views_pad, wdtype=jnp.bfloat16):
    """Consolidate weights into a few stacked slabs; bf16 weights, f32 biases.

    Weight rows belonging to x_pts / x_views are zero-padded to the lane
    aligned widths the kernel pads its activations to (numerically exact).
    """
    skips = set(skips)

    def pad_rows(w, rows):
        return jnp.pad(w, ((0, rows - w.shape[0]), (0, 0)))

    w_in_list, w_hid_list, b_list = [], [], []
    for i in range(D):
        w, b = params["pts"][i]
        b_list.append(b)
        if i == 0:
            w_in_list.append(pad_rows(w, C_pts_pad))
        elif (i - 1) in skips:
            w_in_list.append(pad_rows(w[:C_pts], C_pts_pad))  # x_pts part
            w_hid_list.append(w[C_pts:])                      # h part
        else:
            w_hid_list.append(w)

    packed = {}
    if use_viewdirs:
        fw, fb = params["feature"]
        w_hid_list.append(fw)
        b_list.append(fb)
        sw, sb = params["sigma"]
        rw, rb = params["rgb0"]
        r1w, r1b = params["rgb1"]
        Wh = W // 2
        # sigma -> column 3 of a (W, 4) weight; rgb1 -> columns 0..2 of (Wh, 4)
        w_sig4 = jnp.concatenate([jnp.zeros((W, 3), sw.dtype), sw], axis=1)
        w_rgb14 = jnp.concatenate([r1w, jnp.zeros((Wh, 1), r1w.dtype)], axis=1)
        b_out4 = jnp.concatenate([r1b, sb]).reshape(1, 4)
        packed.update(
            w_r0f=rw[:W].astype(wdtype),
            w_r0v=pad_rows(rw[W:], C_views_pad).astype(wdtype),
            b_r0=rb.reshape(1, Wh).astype(jnp.float32),
            w_sig4=w_sig4.astype(wdtype),
            w_rgb14=w_rgb14.astype(wdtype),
            b_out4=b_out4.astype(jnp.float32),
        )
    else:
        ow, ob = params["out"]
        packed.update(w_out=ow.astype(wdtype),
                      b_out=ob.reshape(1, 4).astype(jnp.float32))

    packed["w_in"] = jnp.stack(w_in_list).astype(wdtype)     # (1+n_skip, Cp, W)
    packed["w_hid"] = jnp.stack(w_hid_list).astype(wdtype)   # (D-1[+1], W, W)
    packed["b_hid"] = jnp.stack(b_list).astype(jnp.float32)  # (D[+1], W)
    return packed


# ---------------------------------------------------------------------------
# Pure-JAX reference (mirrors the PyTorch forward exactly, with concats, f32)
# ---------------------------------------------------------------------------
def nerf_reference(params, x_pts, x_views, D, skips, use_viewdirs):
    h = x_pts
    for i in range(D):
        w, b = params["pts"][i]
        h = jax.nn.relu(h @ w + b)
        if i in skips:
            h = jnp.concatenate([x_pts, h], axis=-1)
    if use_viewdirs:
        sigma = h @ params["sigma"][0] + params["sigma"][1]
        feat = h @ params["feature"][0] + params["feature"][1]
        comb = jnp.concatenate([feat, x_views], axis=-1)
        z = jax.nn.relu(comb @ params["rgb0"][0] + params["rgb0"][1])
        rgb = z @ params["rgb1"][0] + params["rgb1"][1]
        return jnp.concatenate([rgb, sigma], axis=-1)
    out = h @ params["out"][0] + params["out"][1]
    return jnp.concatenate([out[..., :3], out[..., 3:4]], axis=-1)


# ---------------------------------------------------------------------------
# pallas_call wrapper
# ---------------------------------------------------------------------------
def nerf_pallas(x_pts, x_views, params, *, D, W, C_pts, C_views, skips,
                use_viewdirs, block_rows=1024):
    lead_shape = x_pts.shape[:-1]
    N = int(np.prod(lead_shape)) if lead_shape else 1
    out_dtype = x_pts.dtype

    # Lane/sublane friendly channel padding is applied to the WEIGHT rows
    # host-side (tiny constants) and to the activations inside the kernel.
    C_pts_pad = _round_up(C_pts, 16)
    C_views_pad = _round_up(C_views, 16) if use_viewdirs else 0

    # No host-side cast / pad pass over the N x C inputs (reshape is free).
    xp = x_pts.reshape(N, C_pts)
    if use_viewdirs:
        xv = x_views.reshape(N, C_views)

    # Row tile: large to amortize per-step overhead, but clamped so the grid
    # has >= 2 "parallel" steps whenever possible (keeps both v7x TCs busy).
    tm = min(block_rows, max(16, _round_up(pl.cdiv(N, 2), 16)))
    tm = _round_up(tm, 16)
    grid = (pl.cdiv(N, tm),)          # ragged tail block handled by masking

    packed = pack_params_for_kernel(params, D, W, C_pts, C_views, skips,
                                    use_viewdirs, C_pts_pad, C_views_pad)

    def row_spec(c):
        return pl.BlockSpec((tm, c), lambda i: (i, 0))

    def full_spec(arr):
        nd = arr.ndim

        def imap(i):
            return (0,) * nd
        return pl.BlockSpec(arr.shape, imap)

    if use_viewdirs:
        ordered = [packed[k] for k in
                   ("w_in", "w_hid", "b_hid", "w_r0f", "w_r0v", "b_r0",
                    "w_sig4", "w_rgb14", "b_out4")]
        inputs = [xp, xv] + ordered
        in_specs = ([row_spec(C_pts), row_spec(C_views)]
                    + [full_spec(a) for a in ordered])
    else:
        ordered = [packed[k] for k in ("w_in", "w_hid", "b_hid",
                                       "w_out", "b_out")]
        inputs = [xp] + ordered
        in_specs = [row_spec(C_pts)] + [full_spec(a) for a in ordered]

    out_specs = pl.BlockSpec((tm, 4), lambda i: (i, 0))

    # Advisory cost estimate so XLA schedules surrounding ops sensibly.
    skipset = set(skips)
    macs = C_pts_pad * W
    for i in range(1, D):
        macs += W * W
        if (i - 1) in skipset:
            macs += C_pts_pad * W
    if use_viewdirs:
        macs += W * W                                   # feature
        macs += W * 4                                   # sigma (padded)
        macs += W * (W // 2) + C_views_pad * (W // 2)   # rgb layer 0
        macs += (W // 2) * 4                            # rgb layer 1 (padded)
    else:
        macs += W * 4
    weight_bytes = int(sum(int(a.size) * a.dtype.itemsize for a in ordered))
    in_bytes = N * C_pts * 4 + (N * C_views * 4 if use_viewdirs else 0)
    cost = pl.CostEstimate(flops=int(2 * N * macs), transcendentals=0,
                           bytes_accessed=int(weight_bytes + in_bytes
                                              + N * 4 * 4))

    kernel = _make_nerf_kernel(D, skips, use_viewdirs, C_pts_pad, C_views_pad)
    out = pl.pallas_call(
        kernel,
        out_shape=jax.ShapeDtypeStruct((N, 4), out_dtype),
        grid_spec=pltpu.PrefetchScalarGridSpec(
            num_scalar_prefetch=0,
            grid=grid,
            in_specs=in_specs,
            out_specs=out_specs,
        ),
        compiler_params=pltpu.CompilerParams(
            dimension_semantics=("parallel",),
            # Explicit budget: fits v7x's 64 MiB physical with headroom and
            # lifts v5e's 16 MiB scoped default for large row tiles.
            vmem_limit_bytes=48 * 1024 * 1024),
        cost_estimate=cost,
    )(*inputs)

    return out.reshape(*lead_shape, 4)


# ---------------------------------------------------------------------------
if __name__ == "__main__":
    # Module-default config (D=8, W=256, skips=[4], viewdirs) at a small point
    # count; S=65 makes N=130 so the grid has 2 steps incl. a ragged tail.
    D, W = 8, 256
    C_PTS, C_VIEWS = 63, 27
    SKIPS = (4,)
    USE_VIEWDIRS = True
    B, S = 2, 65  # 130 points

    key = jax.random.PRNGKey(0)
    kp, kx, kv = jax.random.split(key, 3)
    params = init_nerf_params(kp, D, W, C_PTS, C_VIEWS, SKIPS, USE_VIEWDIRS)
    x_pts = jax.random.normal(kx, (B, S, C_PTS), jnp.float32)
    x_views = jax.random.normal(kv, (B, S, C_VIEWS), jnp.float32)

    out = nerf_pallas(x_pts, x_views, params,
                      D=D, W=W, C_pts=C_PTS, C_views=C_VIEWS,
                      skips=SKIPS, use_viewdirs=USE_VIEWDIRS, block_rows=1024)
    out = jax.block_until_ready(out)

    with jax.default_matmul_precision("highest"):
        ref = nerf_reference(params, x_pts, x_views, D, SKIPS, USE_VIEWDIRS)
    ref = jax.block_until_ready(ref)

    assert out.shape == (B, S, 4), out.shape
    # bf16 matmul operands with f32 accumulation over 10 stacked matmuls.
    np.testing.assert_allclose(np.asarray(out), np.asarray(ref),
                               rtol=3e-2, atol=1e-2)
    print("KERNEL_OK")
</pallas_src>

<mosaic_0001>
module attributes {stable_mosaic.version = 11 : i64} {
  func.func @kernel(%arg0: i32, %arg1: memref<80x63xf32, #tpu.memory_space<vmem>>, %arg2: memref<80x27xf32, #tpu.memory_space<vmem>>, %arg3: memref<2x64x256xbf16, #tpu.memory_space<vmem>>, %arg4: memref<8x256x256xbf16, #tpu.memory_space<vmem>>, %arg5: memref<9x256xf32, #tpu.memory_space<vmem>>, %arg6: memref<256x128xbf16, #tpu.memory_space<vmem>>, %arg7: memref<32x128xbf16, #tpu.memory_space<vmem>>, %arg8: memref<1x128xf32, #tpu.memory_space<vmem>>, %arg9: memref<256x4xbf16, #tpu.memory_space<vmem>>, %arg10: memref<128x4xbf16, #tpu.memory_space<vmem>>, %arg11: memref<1x4xf32, #tpu.memory_space<vmem>>, %arg12: memref<80x4xf32, #tpu.memory_space<vmem>>) attributes {dimension_semantics = [#tpu.dimension_semantics<parallel>], iteration_bounds = array<i64: 2>, scalar_prefetch = 0 : i64, scratch_operands = 0 : i64, tpu.core_type = #tpu.core_type<tc>, window_params = [{transform_indices = @transform_0, window_bounds = array<i64: 80, 63>}, {transform_indices = @transform_1, window_bounds = array<i64: 80, 27>}, {pipeline_mode = #tpu.pipeline_mode<synchronous>, transform_indices = @transform_2, window_bounds = array<i64: 2, 64, 256>}, {pipeline_mode = #tpu.pipeline_mode<synchronous>, transform_indices = @transform_3, window_bounds = array<i64: 8, 256, 256>}, {pipeline_mode = #tpu.pipeline_mode<synchronous>, transform_indices = @transform_4, window_bounds = array<i64: 9, 256>}, {pipeline_mode = #tpu.pipeline_mode<synchronous>, transform_indices = @transform_5, window_bounds = array<i64: 256, 128>}, {pipeline_mode = #tpu.pipeline_mode<synchronous>, transform_indices = @transform_6, window_bounds = array<i64: 32, 128>}, {pipeline_mode = #tpu.pipeline_mode<synchronous>, transform_indices = @transform_7, window_bounds = array<i64: 1, 128>}, {pipeline_mode = #tpu.pipeline_mode<synchronous>, transform_indices = @transform_8, window_bounds = array<i64: 256, 4>}, {pipeline_mode = #tpu.pipeline_mode<synchronous>, transform_indices = @transform_9, window_bounds = array<i64: 128, 4>}, {pipeline_mode = #tpu.pipeline_mode<synchronous>, transform_indices = @transform_10, window_bounds = array<i64: 1, 4>}, {transform_indices = @transform_11, window_bounds = array<i64: 80, 4>}]} {
    %c0 = arith.constant 0 : index
    %c0_0 = arith.constant 0 : index
    %0 = vector.load %arg1[%c0, %c0_0] : memref<80x63xf32, #tpu.memory_space<vmem>>, vector<80x63xf32>
    %cst = arith.constant 0.000000e+00 : f32
    %1 = vector.broadcast %cst : f32 to vector<80x1xf32>
    %2 = tpu.concatenate %0, %1 in 1 : vector<80x63xf32>, vector<80x1xf32> -> vector<80x64xf32>
    %3 = arith.truncf %2 : vector<80x64xf32> to vector<80x64xbf16>
    %c0_1 = arith.constant 0 : index
    %c0_2 = arith.constant 0 : index
    %4 = vector.load %arg2[%c0_1, %c0_2] : memref<80x27xf32, #tpu.memory_space<vmem>>, vector<80x27xf32>
    %cst_3 = arith.constant 0.000000e+00 : f32
    %5 = vector.broadcast %cst_3 : f32 to vector<80x5xf32>
    %6 = tpu.concatenate %4, %5 in 1 : vector<80x27xf32>, vector<80x5xf32> -> vector<80x32xf32>
    %7 = arith.truncf %6 : vector<80x32xf32> to vector<80x32xbf16>
    %c0_4 = arith.constant 0 : index
    %c0_5 = arith.constant 0 : index
    %c0_6 = arith.constant 0 : index
    %8 = vector.load %arg3[%c0_4, %c0_5, %c0_6] : memref<2x64x256xbf16, #tpu.memory_space<vmem>>, vector<1x64x256xbf16>
    %9 = vector.shape_cast %8 : vector<1x64x256xbf16> to vector<64x256xbf16>
    %cst_7 = arith.constant dense<0.000000e+00> : vector<80x256xf32>
    %10 = tpu.matmul %3, %9, %cst_7 {dimension_numbers = #tpu.dot_dimension_numbers<[1], [0], [0], [1], [0, 0, 1, 1], [], []>} : vector<80x64xbf16>, vector<64x256xbf16>, vector<80x256xf32> -> vector<80x256xf32>
    %c0_8 = arith.constant 0 : index
    %c0_9 = arith.constant 0 : index
    %11 = vector.load %arg5[%c0_8, %c0_9] : memref<9x256xf32, #tpu.memory_space<vmem>>, vector<1x256xf32>
    %12 = vector.broadcast %11 : vector<1x256xf32> to vector<80x256xf32>
    %13 = arith.addf %10, %12 : vector<80x256xf32>
    %cst_10 = arith.constant 0.000000e+00 : f32
    %14 = vector.broadcast %cst_10 : f32 to vector<80x256xf32>
    %15 = arith.maximumf %13, %14 : vector<80x256xf32>
    %16 = arith.truncf %15 : vector<80x256xf32> to vector<80x256xbf16>
    %c0_11 = arith.constant 0 : index
    %c0_12 = arith.constant 0 : index
    %c0_13 = arith.constant 0 : index
    %17 = vector.load %arg4[%c0_11, %c0_12, %c0_13] : memref<8x256x256xbf16, #tpu.memory_space<vmem>>, vector<1x256x256xbf16>
    %18 = vector.shape_cast %17 : vector<1x256x256xbf16> to vector<256x256xbf16>
    %cst_14 = arith.constant dense<0.000000e+00> : vector<80x256xf32>
    %19 = tpu.matmul %16, %18, %cst_14 {dimension_numbers = #tpu.dot_dimension_numbers<[1], [0], [0], [1], [0, 0, 1, 1], [], []>} : vector<80x256xbf16>, vector<256x256xbf16>, vector<80x256xf32> -> vector<80x256xf32>
    %c1 = arith.constant 1 : index
    %c0_15 = arith.constant 0 : index
    %20 = vector.load %arg5[%c1, %c0_15] : memref<9x256xf32, #tpu.memory_space<vmem>>, vector<1x256xf32>
    %21 = vector.broadcast %20 : vector<1x256xf32> to vector<80x256xf32>
    %22 = arith.addf %19, %21 : vector<80x256xf32>
    %cst_16 = arith.constant 0.000000e+00 : f32
    %23 = vector.broadcast %cst_16 : f32 to vector<80x256xf32>
    %24 = arith.maximumf %22, %23 : vector<80x256xf32>
    %25 = arith.truncf %24 : vector<80x256xf32> to vector<80x256xbf16>
    %c1_17 = arith.constant 1 : index
    %c0_18 = arith.constant 0 : index
    %c0_19 = arith.constant 0 : index
    %26 = vector.load %arg4[%c1_17, %c0_18, %c0_19] : memref<8x256x256xbf16, #tpu.memory_space<vmem>>, vector<1x256x256xbf16>
    %27 = vector.shape_cast %26 : vector<1x256x256xbf16> to vector<256x256xbf16>
    %cst_20 = arith.constant dense<0.000000e+00> : vector<80x256xf32>
    %28 = tpu.matmul %25, %27, %cst_20 {dimension_numbers = #tpu.dot_dimension_numbers<[1], [0], [0], [1], [0, 0, 1, 1], [], []>} : vector<80x256xbf16>, vector<256x256xbf16>, vector<80x256xf32> -> vector<80x256xf32>
    %c2 = arith.constant 2 : index
    %c0_21 = arith.constant 0 : index
    %29 = vector.load %arg5[%c2, %c0_21] : memref<9x256xf32, #tpu.memory_space<vmem>>, vector<1x256xf32>
    %30 = vector.broadcast %29 : vector<1x256xf32> to vector<80x256xf32>
    %31 = arith.addf %28, %30 : vector<80x256xf32>
    %cst_22 = arith.constant 0.000000e+00 : f32
    %32 = vector.broadcast %cst_22 : f32 to vector<80x256xf32>
    %33 = arith.maximumf %31, %32 : vector<80x256xf32>
    %34 = arith.truncf %33 : vector<80x256xf32> to vector<80x256xbf16>
    %c2_23 = arith.constant 2 : index
    %c0_24 = arith.constant 0 : index
    %c0_25 = arith.constant 0 : index
    %35 = vector.load %arg4[%c2_23, %c0_24, %c0_25] : memref<8x256x256xbf16, #tpu.memory_space<vmem>>, vector<1x256x256xbf16>
    %36 = vector.shape_cast %35 : vector<1x256x256xbf16> to vector<256x256xbf16>
    %cst_26 = arith.constant dense<0.000000e+00> : vector<80x256xf32>
    %37 = tpu.matmul %34, %36, %cst_26 {dimension_numbers = #tpu.dot_dimension_numbers<[1], [0], [0], [1], [0, 0, 1, 1], [], []>} : vector<80x256xbf16>, vector<256x256xbf16>, vector<80x256xf32> -> vector<80x256xf32>
    %c3 = arith.constant 3 : index
    %c0_27 = arith.constant 0 : index
    %38 = vector.load %arg5[%c3, %c0_27] : memref<9x256xf32, #tpu.memory_space<vmem>>, vector<1x256xf32>
    %39 = vector.broadcast %38 : vector<1x256xf32> to vector<80x256xf32>
    %40 = arith.addf %37, %39 : vector<80x256xf32>
    %cst_28 = arith.constant 0.000000e+00 : f32
    %41 = vector.broadcast %cst_28 : f32 to vector<80x256xf32>
    %42 = arith.maximumf %40, %41 : vector<80x256xf32>
    %43 = arith.truncf %42 : vector<80x256xf32> to vector<80x256xbf16>
    %c3_29 = arith.constant 3 : index
    %c0_30 = arith.constant 0 : index
    %c0_31 = arith.constant 0 : index
    %44 = vector.load %arg4[%c3_29, %c0_30, %c0_31] : memref<8x256x256xbf16, #tpu.memory_space<vmem>>, vector<1x256x256xbf16>
    %45 = vector.shape_cast %44 : vector<1x256x256xbf16> to vector<256x256xbf16>
    %cst_32 = arith.constant dense<0.000000e+00> : vector<80x256xf32>
    %46 = tpu.matmul %43, %45, %cst_32 {dimension_numbers = #tpu.dot_dimension_numbers<[1], [0], [0], [1], [0, 0, 1, 1], [], []>} : vector<80x256xbf16>, vector<256x256xbf16>, vector<80x256xf32> -> vector<80x256xf32>
    %c4 = arith.constant 4 : index
    %c0_33 = arith.constant 0 : index
    %47 = vector.load %arg5[%c4, %c0_33] : memref<9x256xf32, #tpu.memory_space<vmem>>, vector<1x256xf32>
    %48 = vector.broadcast %47 : vector<1x256xf32> to vector<80x256xf32>
    %49 = arith.addf %46, %48 : vector<80x256xf32>
    %cst_34 = arith.constant 0.000000e+00 : f32
    %50 = vector.broadcast %cst_34 : f32 to vector<80x256xf32>
    %51 = arith.maximumf %49, %50 : vector<80x256xf32>
    %52 = arith.truncf %51 : vector<80x256xf32> to vector<80x256xbf16>
    %c4_35 = arith.constant 4 : index
    %c0_36 = arith.constant 0 : index
    %c0_37 = arith.constant 0 : index
    %53 = vector.load %arg4[%c4_35, %c0_36, %c0_37] : memref<8x256x256xbf16, #tpu.memory_space<vmem>>, vector<1x256x256xbf16>
    %54 = vector.shape_cast %53 : vector<1x256x256xbf16> to vector<256x256xbf16>
    %cst_38 = arith.constant dense<0.000000e+00> : vector<80x256xf32>
    %55 = tpu.matmul %52, %54, %cst_38 {dimension_numbers = #tpu.dot_dimension_numbers<[1], [0], [0], [1], [0, 0, 1, 1], [], []>} : vector<80x256xbf16>, vector<256x256xbf16>, vector<80x256xf32> -> vector<80x256xf32>
    %c1_39 = arith.constant 1 : index
    %c0_40 = arith.constant 0 : index
    %c0_41 = arith.constant 0 : index
    %56 = vector.load %arg3[%c1_39, %c0_40, %c0_41] : memref<2x64x256xbf16, #tpu.memory_space<vmem>>, vector<1x64x256xbf16>
    %57 = vector.shape_cast %56 : vector<1x64x256xbf16> to vector<64x256xbf16>
    %cst_42 = arith.constant dense<0.000000e+00> : vector<80x256xf32>
    %58 = tpu.matmul %3, %57, %cst_42 {dimension_numbers = #tpu.dot_dimension_numbers<[1], [0], [0], [1], [0, 0, 1, 1], [], []>} : vector<80x64xbf16>, vector<64x256xbf16>, vector<80x256xf32> -> vector<80x256xf32>
    %59 = arith.addf %55, %58 : vector<80x256xf32>
    %c5 = arith.constant 5 : index
    %c0_43 = arith.constant 0 : index
    %60 = vector.load %arg5[%c5, %c0_43] : memref<9x256xf32, #tpu.memory_space<vmem>>, vector<1x256xf32>
    %61 = vector.broadcast %60 : vector<1x256xf32> to vector<80x256xf32>
    %62 = arith.addf %59, %61 : vector<80x256xf32>
    %cst_44 = arith.constant 0.000000e+00 : f32
    %63 = vector.broadcast %cst_44 : f32 to vector<80x256xf32>
    %64 = arith.maximumf %62, %63 : vector<80x256xf32>
    %65 = arith.truncf %64 : vector<80x256xf32> to vector<80x256xbf16>
    %c5_45 = arith.constant 5 : index
    %c0_46 = arith.constant 0 : index
    %c0_47 = arith.constant 0 : index
    %66 = vector.load %arg4[%c5_45, %c0_46, %c0_47] : memref<8x256x256xbf16, #tpu.memory_space<vmem>>, vector<1x256x256xbf16>
    %67 = vector.shape_cast %66 : vector<1x256x256xbf16> to vector<256x256xbf16>
    %cst_48 = arith.constant dense<0.000000e+00> : vector<80x256xf32>
    %68 = tpu.matmul %65, %67, %cst_48 {dimension_numbers = #tpu.dot_dimension_numbers<[1], [0], [0], [1], [0, 0, 1, 1], [], []>} : vector<80x256xbf16>, vector<256x256xbf16>, vector<80x256xf32> -> vector<80x256xf32>
    %c6 = arith.constant 6 : index
    %c0_49 = arith.constant 0 : index
    %69 = vector.load %arg5[%c6, %c0_49] : memref<9x256xf32, #tpu.memory_space<vmem>>, vector<1x256xf32>
    %70 = vector.broadcast %69 : vector<1x256xf32> to vector<80x256xf32>
    %71 = arith.addf %68, %70 : vector<80x256xf32>
    %cst_50 = arith.constant 0.000000e+00 : f32
    %72 = vector.broadcast %cst_50 : f32 to vector<80x256xf32>
    %73 = arith.maximumf %71, %72 : vector<80x256xf32>
    %74 = arith.truncf %73 : vector<80x256xf32> to vector<80x256xbf16>
    %c6_51 = arith.constant 6 : index
    %c0_52 = arith.constant 0 : index
    %c0_53 = arith.constant 0 : index
    %75 = vector.load %arg4[%c6_51, %c0_52, %c0_53] : memref<8x256x256xbf16, #tpu.memory_space<vmem>>, vector<1x256x256xbf16>
    %76 = vector.shape_cast %75 : vector<1x256x256xbf16> to vector<256x256xbf16>
    %cst_54 = arith.constant dense<0.000000e+00> : vector<80x256xf32>
    %77 = tpu.matmul %74, %76, %cst_54 {dimension_numbers = #tpu.dot_dimension_numbers<[1], [0], [0], [1], [0, 0, 1, 1], [], []>} : vector<80x256xbf16>, vector<256x256xbf16>, vector<80x256xf32> -> vector<80x256xf32>
    %c7 = arith.constant 7 : index
    %c0_55 = arith.constant 0 : index
    %78 = vector.load %arg5[%c7, %c0_55] : memref<9x256xf32, #tpu.memory_space<vmem>>, vector<1x256xf32>
    %79 = vector.broadcast %78 : vector<1x256xf32> to vector<80x256xf32>
    %80 = arith.addf %77, %79 : vector<80x256xf32>
    %cst_56 = arith.constant 0.000000e+00 : f32
    %81 = vector.broadcast %cst_56 : f32 to vector<80x256xf32>
    %82 = arith.maximumf %80, %81 : vector<80x256xf32>
    %83 = arith.truncf %82 : vector<80x256xf32> to vector<80x256xbf16>
    %c7_57 = arith.constant 7 : index
    %c0_58 = arith.constant 0 : index
    %c0_59 = arith.constant 0 : index
    %84 = vector.load %arg4[%c7_57, %c0_58, %c0_59] : memref<8x256x256xbf16, #tpu.memory_space<vmem>>, vector<1x256x256xbf16>
    %85 = vector.shape_cast %84 : vector<1x256x256xbf16> to vector<256x256xbf16>
    %cst_60 = arith.constant dense<0.000000e+00> : vector<80x256xf32>
    %86 = tpu.matmul %83, %85, %cst_60 {dimension_numbers = #tpu.dot_dimension_numbers<[1], [0], [0], [1], [0, 0, 1, 1], [], []>} : vector<80x256xbf16>, vector<256x256xbf16>, vector<80x256xf32> -> vector<80x256xf32>
    %c8 = arith.constant 8 : index
    %c0_61 = arith.constant 0 : index
    %87 = vector.load %arg5[%c8, %c0_61] : memref<9x256xf32, #tpu.memory_space<vmem>>, vector<1x256xf32>
    %88 = vector.broadcast %87 : vector<1x256xf32> to vector<80x256xf32>
    %89 = arith.addf %86, %88 : vector<80x256xf32>
    %90 = arith.truncf %89 : vector<80x256xf32> to vector<80x256xbf16>
    %c0_62 = arith.constant 0 : index
    %c0_63 = arith.constant 0 : index
    %91 = vector.load %arg9[%c0_62, %c0_63] : memref<256x4xbf16, #tpu.memory_space<vmem>>, vector<256x4xbf16>
    %cst_64 = arith.constant dense<0.000000e+00> : vector<80x4xf32>
    %92 = tpu.matmul %83, %91, %cst_64 {dimension_numbers = #tpu.dot_dimension_numbers<[1], [0], [0], [1], [0, 0, 1, 1], [], []>} : vector<80x256xbf16>, vector<256x4xbf16>, vector<80x4xf32> -> vector<80x4xf32>
    %c0_65 = arith.constant 0 : index
    %c0_66 = arith.constant 0 : index
    %93 = vector.load %arg6[%c0_65, %c0_66] : memref<256x128xbf16, #tpu.memory_space<vmem>>, vector<256x128xbf16>
    %cst_67 = arith.constant dense<0.000000e+00> : vector<80x128xf32>
    %94 = tpu.matmul %90, %93, %cst_67 {dimension_numbers = #tpu.dot_dimension_numbers<[1], [0], [0], [1], [0, 0, 1, 1], [], []>} : vector<80x256xbf16>, vector<256x128xbf16>, vector<80x128xf32> -> vector<80x128xf32>
    %c0_68 = arith.constant 0 : index
    %c0_69 = arith.constant 0 : index
    %95 = vector.load %arg7[%c0_68, %c0_69] : memref<32x128xbf16, #tpu.memory_space<vmem>>, vector<32x128xbf16>
    %cst_70 = arith.constant dense<0.000000e+00> : vector<80x128xf32>
    %96 = tpu.matmul %7, %95, %cst_70 {dimension_numbers = #tpu.dot_dimension_numbers<[1], [0], [0], [1], [0, 0, 1, 1], [], []>} : vector<80x32xbf16>, vector<32x128xbf16>, vector<80x128xf32> -> vector<80x128xf32>
    %97 = arith.addf %94, %96 : vector<80x128xf32>
    %c0_71 = arith.constant 0 : index
    %c0_72 = arith.constant 0 : index
    %98 = vector.load %arg8[%c0_71, %c0_72] : memref<1x128xf32, #tpu.memory_space<vmem>>, vector<1x128xf32>
    %99 = vector.broadcast %98 : vector<1x128xf32> to vector<80x128xf32>
    %100 = arith.addf %97, %99 : vector<80x128xf32>
    %cst_73 = arith.constant 0.000000e+00 : f32
    %101 = vector.broadcast %cst_73 : f32 to vector<80x128xf32>
    %102 = arith.maximumf %100, %101 : vector<80x128xf32>
    %103 = arith.truncf %102 : vector<80x128xf32> to vector<80x128xbf16>
    %c0_74 = arith.constant 0 : index
    %c0_75 = arith.constant 0 : index
    %104 = vector.load %arg10[%c0_74, %c0_75] : memref<128x4xbf16, #tpu.memory_space<vmem>>, vector<128x4xbf16>
    %cst_76 = arith.constant dense<0.000000e+00> : vector<80x4xf32>
    %105 = tpu.matmul %103, %104, %cst_76 {dimension_numbers = #tpu.dot_dimension_numbers<[1], [0], [0], [1], [0, 0, 1, 1], [], []>} : vector<80x128xbf16>, vector<128x4xbf16>, vector<80x4xf32> -> vector<80x4xf32>
    %106 = arith.addf %105, %92 : vector<80x4xf32>
    %c0_77 = arith.constant 0 : index
    %c0_78 = arith.constant 0 : index
    %107 = vector.load %arg11[%c0_77, %c0_78] : memref<1x4xf32, #tpu.memory_space<vmem>>, vector<1x4xf32>
    %108 = vector.broadcast %107 : vector<1x4xf32> to vector<80x4xf32>
    %109 = arith.addf %106, %108 : vector<80x4xf32>
    %c0_79 = arith.constant 0 : index
    %c0_80 = arith.constant 0 : index
    %110 = vector.load %arg12[%c0_79, %c0_80] : memref<80x4xf32, #tpu.memory_space<vmem>>, vector<80x4xf32>
    tpu.vector_store %arg12[%c0_79, %c0_80], %109 {strides = array<i32>} : memref<80x4xf32, #tpu.memory_space<vmem>>, vector<80x4xf32>,
    return
  }
  func.func @transform_0(%arg0: i32) -> (i32, i32) {
    %c0_i32 = arith.constant 0 : i32
    %c0_i32_0 = arith.constant 0 : i32
    return %arg0, %c0_i32 : i32, i32
  }
  func.func @transform_1(%arg0: i32) -> (i32, i32) {
    %c0_i32 = arith.constant 0 : i32
    %c0_i32_0 = arith.constant 0 : i32
    return %arg0, %c0_i32 : i32, i32
  }
  func.func @transform_2(%arg0: i32) -> (i32, i32, i32) {
    %c0_i32 = arith.constant 0 : i32
    %c0_i32_0 = arith.constant 0 : i32
    %c0_i32_1 = arith.constant 0 : i32
    %c0_i32_2 = arith.constant 0 : i32
    return %c0_i32, %c0_i32_0, %c0_i32_1 : i32, i32, i32
  }
  func.func @transform_3(%arg0: i32) -> (i32, i32, i32) {
    %c0_i32 = arith.constant 0 : i32
    %c0_i32_0 = arith.constant 0 : i32
    %c0_i32_1 = arith.constant 0 : i32
    %c0_i32_2 = arith.constant 0 : i32
    return %c0_i32, %c0_i32_0, %c0_i32_1 : i32, i32, i32
  }
  func.func @transform_4(%arg0: i32) -> (i32, i32) {
    %c0_i32 = arith.constant 0 : i32
    %c0_i32_0 = arith.constant 0 : i32
    %c0_i32_1 = arith.constant 0 : i32
    return %c0_i32, %c0_i32_0 : i32, i32
  }
  func.func @transform_5(%arg0: i32) -> (i32, i32) {
    %c0_i32 = arith.constant 0 : i32
    %c0_i32_0 = arith.constant 0 : i32
    %c0_i32_1 = arith.constant 0 : i32
    return %c0_i32, %c0_i32_0 : i32, i32
  }
  func.func @transform_6(%arg0: i32) -> (i32, i32) {
    %c0_i32 = arith.constant 0 : i32
    %c0_i32_0 = arith.constant 0 : i32
    %c0_i32_1 = arith.constant 0 : i32
    return %c0_i32, %c0_i32_0 : i32, i32
  }
  func.func @transform_7(%arg0: i32) -> (i32, i32) {
    %c0_i32 = arith.constant 0 : i32
    %c0_i32_0 = arith.constant 0 : i32
    %c0_i32_1 = arith.constant 0 : i32
    return %c0_i32, %c0_i32_0 : i32, i32
  }
  func.func @transform_8(%arg0: i32) -> (i32, i32) {
    %c0_i32 = arith.constant 0 : i32
    %c0_i32_0 = arith.constant 0 : i32
    %c0_i32_1 = arith.constant 0 : i32
    return %c0_i32, %c0_i32_0 : i32, i32
  }
  func.func @transform_9(%arg0: i32) -> (i32, i32) {
    %c0_i32 = arith.constant 0 : i32
    %c0_i32_0 = arith.constant 0 : i32
    %c0_i32_1 = arith.constant 0 : i32
    return %c0_i32, %c0_i32_0 : i32, i32
  }
  func.func @transform_10(%arg0: i32) -> (i32, i32) {
    %c0_i32 = arith.constant 0 : i32
    %c0_i32_0 = arith.constant 0 : i32
    %c0_i32_1 = arith.constant 0 : i32
    return %c0_i32, %c0_i32_0 : i32, i32
  }
  func.func @transform_11(%arg0: i32) -> (i32, i32) {
    %c0_i32 = arith.constant 0 : i32
    %c0_i32_0 = arith.constant 0 : i32
    return %arg0, %c0_i32 : i32, i32
  }
}

</mosaic_0001>

<bundles_post_ra>
// kernel: tpu_custom_call.1
= control target key start
LH: loop header
LB: loop body
LE: loop exit
PB: predicated region body
PF: predicated region fallthrough
CT: control target
= control target key end

     0   :  { %16 = vsyncpa [#allocation3], 0  ;;  %s6556_s17 = smov 0   ;;  %s6558_s18 = smov 0   ;;  %s7430_s0 = inlined_call_operand.vmem [shape: f32[130,63], index: 0, kind: input, shape index: {}]   ;;  %s7431_s1 = inlined_call_operand.vmem [shape: f32[130,27], index: 1, kind: input, shape index: {}]   ;;  %s7432_s2 = inlined_call_operand.vmem [shape: bf16[2,64,256], index: 2, kind: input, shape index: {}]   ;;  %s7433_s3 = inlined_call_operand.hbm [shape: bf16[8,256,256], index: 3, kind: input, shape index: {}]   ;;  %s7434_s4 = inlined_call_operand.vmem [shape: f32[9,256], index: 4, kind: input, shape index: {}]   ;;  %s7435_s5 = inlined_call_operand.vmem [shape: bf16[256,128], index: 5, kind: input, shape index: {}]   ;;  %s7436_s6 = inlined_call_operand.vmem [shape: bf16[32,128], index: 6, kind: input, shape index: {}]   ;;  %s7437_s7 = inlined_call_operand.vmem [shape: f32[1,128], index: 7, kind: input, shape index: {}]   ;;  %s7438_s8 = inlined_call_operand.vmem [shape: bf16[256,4], index: 8, kind: input, shape index: {}]   ;;  %s7439_s9 = inlined_call_operand.vmem [shape: bf16[128,4], index: 9, kind: input, shape index: {}]   ;;  %s7440_s10 = inlined_call_operand.vmem [shape: f32[1,4], index: 10, kind: input, shape index: {}]   ;;  %s7441_s11 = inlined_call_operand.vmem [shape: f32[130,4], index: 11, kind: output, shape index: {}]  }
   0x1   :  { %s6560_s19 = smov 0  }
   0x2 LB: > { %s6569_s20 = sadd.s32 4294967295, %s6459_s19   ;;  %s6571_s21 = sadd.s32 1, %s6459_s19   ;;  %s6459_s19 = sphi %s6560_s19, %s7451_s19   ;;  %s6455_s18 = sphi %s6558_s18, %s7450_s18   ;;  %s6451_s17 = sphi %s6556_s17, %s7449_s17  }
   0x3   : > { %s267_s22 = ssub.s32 %s6459_s19, %s6571_s21  ;;  %s270_s23 = sadd.s32 1, %s6455_s18 }
   0x4   : > { %p268_p0 = scmp.eq.s32.totalorder %s267_s22, 0  ;;  %p280_p1 = scmp.ne.s32.totalorder %s6455_s18, %s6451_s17 }
   0x5   : > { %p281_p2 = scmp.eq.s32.totalorder %s6569_s20, 1  ;;  %p4621_p3 = scmp.ge.s32.totalorder %s6459_s19, 1 }
   0x6   : > { %s6579_s24 = scalar_select %p268_p0, %s6455_s18, %s270_s23  }
   0x7   : > { %p6581_p4 = por %p281_p2, %p280_p1  ;;  %p294_p5 = scmp.lt.s32.totalorder %s6459_s19, 3 }
   0x8   : > { %p6269_p6 = scmp.eq.s32.totalorder %s6569_s20, 0  ;;  %s308_s28 = sshll.u32 %s7433_s3, 4  ;;  %s309_s28 = int_to_ptr.hbm [resolvable:$true] %s308_s28 }
   0x9   : > { %p295_p7 = pnand %p4621_p3, %p294_p5  ;;  %s6493_s29 = smov [#allocation2]  }
   0xa   : > { %s310_s30 = sshll.u32 %s6493_s29, 4  ;;  %s6494_s12 = smov 128   ;;  %s311_s30 = int_to_ptr.vmem [resolvable:$true] %s310_s30 }
   0xb   : > { %p6265_p8 = pneg %p295_p7  ;;  %s6495_s13 = smov 8  }
   0xc   : > { %381 = sbr.rel (%p295_p7) target bundleno = 1780 (0x6f4), region = 64 }
   0xd   : > { %p6266_p9 = pnand %p6269_p6, %p6265_p8 }
   0xf   : > { %6268 = dma.hbm_to_vmem [thread:$0]  (!%p6266_p9), %s309_s28, 32768, %s311_s30, [#allocation3], %s6494_s12, %s6494_s12, %s6495_s13  }
  0x11   : > { %6446 = dma.done.wait (%p6269_p6), [#allocation3], 32768  }
  0x12   : > { %6448 = vsyncadd (%p6269_p6), [#allocation3], 4294934528  ;;  %s6596_s14 = smul.u32 10, %s6569_s20  ;;  %v4654_v0 = vld [vmem:[%s7432_s2 + $0x30] sm:$0xf]  ;;  %vm478_vm0 = vcmask 515072  }
  0x13   : > { %v5944_v1 = vld [vmem:[%s7432_s2 + $0x34] sm:$0xf0]  ;;  %v5943_v2 = vld [vmem:[%s7432_s2 + $0x34] sm:$0xf]  ;;  %v4656_v4 = vld [vmem:[%s7432_s2 + $0x38] sm:$0xf0] }
  0x14   : > { %p439_p10 = scmp.lt.s32.totalorder %s6596_s14, 16  ;;  %v4655_v3 = vor.u32 %v5944_v1, %v4654_v0  ;;  %v4646_v5 = vld [vmem:[%s7432_s2 + $0x20] sm:$0xf]  ;;  %v5942_v6 = vld [vmem:[%s7432_s2 + $0x24] sm:$0xf0]  ;;  %v4659_v7 = vor.u32 %v5943_v2, %v4656_v4  ;;  %vm574_vm1 = vcmask 523264  }
  0x15   : > { %v5941_v8 = vld [vmem:[%s7432_s2 + $0x24] sm:$0xf]  ;;  %v4648_v9 = vld [vmem:[%s7432_s2 + $0x28] sm:$0xf0]  ;;  %v4647_v10 = vor.u32 %v5942_v6, %v4646_v5  ;;  %v4638_v12 = vld [vmem:[%s7432_s2 + $0x10] sm:$0xf] }
  0x16   : > { %s6600_s15 = scalar_select %p439_p10, %s6596_s14, 16  ;;  %594 = vmatpush.bf16.msra.mxu0 %v4655_v3  ;;  %6252 = vmatpush.bf16.msra.mxu2 %v4655_v3  ;;  %v4651_v11 = vor.u32 %v5941_v8, %v4648_v9  ;;  %v5940_v13 = vld [vmem:[%s7432_s2 + $0x14] sm:$0xf0]  ;;  %v5939_v14 = vld [vmem:[%s7432_s2 + $0x14] sm:$0xf]  ;;  %vm504_vm2 = vcmask 220160  }
  0x17   : > { %628 = vmatpush.bf16.msra.mxu1 %v4659_v7  ;;  %6256 = vmatpush.bf16.msra.mxu3 %v4659_v7  ;;  %v4640_v15 = vld [vmem:[%s7432_s2 + $0x18] sm:$0xf0]  ;;  %v4630_v16 = vld [vmem:[%s7432_s2] sm:$0xf]  ;;  %v4639_v17 = vor.u32 %v5940_v13, %v4638_v12  ;;  %v5938_v18 = vld [vmem:[%s7432_s2 + $0x4] sm:$0xf0] }
  0x18   : > { %s7442_s16 = sshll.u32 %s6600_s15, 3  ;;  %v5937_v19 = vld [vmem:[%s7432_s2 + $0x4] sm:$0xf]  ;;  %v4643_v21 = vor.u32 %v5939_v14, %v4640_v15  ;;  %v4632_v25 = vld [vmem:[%s7432_s2 + $0x8] sm:$0xf0]  ;;  %v4631_v26 = vor.u32 %v5938_v18, %v4630_v16  ;;  %vm3976_vm3 = vcmask 261120  }
  0x19   : > { %s6638_s23 = scalar_lea.vmem %s7430_s0, %s7442_s16  ;;  %v4635_v31 = vor.u32 %v5937_v19, %v4632_v25  ;;  %v4729_v34 = vld [vmem:[#allocation2 + $0x70] sm:$0xf]  ;;  %v5960_v35 = vld [vmem:[#allocation2 + $0x74] sm:$0xf0]  ;;  %v4721_v41 = vld [vmem:[#allocation2 + $0x60] sm:$0xf] }
  0x1a   : > { %595 = vmatpush.bf16.msra.mxu0 %v4647_v10  ;;  %v468_v20 = vld [vmem:[%s6638_s23] sm:$0xff]  ;;  %6253 = vmatpush.bf16.msra.mxu2 %v4647_v10  ;;  %v469_v22 = vld [vmem:[%s6638_s23 + $0x8] sm:$0xff]  ;;  %v4793_v36 = vld [vmem:[#allocation2 + $0xf0] sm:$0xf]  ;;  %v4730_v39 = vor.u32 %v5960_v35, %v4729_v34  ;;  %s7444_s16 = sshll.u32 %s6600_s15, 3  ;;  %s431_s13 = sand.u32 1, %s6451_s17  }
  0x1b   : > { %629 = vmatpush.bf16.msra.mxu1 %v4651_v11  ;;  %6257 = vmatpush.bf16.msra.mxu3 %v4651_v11  ;;  %v472_v23 = vld [vmem:[%s6638_s23 + $0x20] sm:$0xff]  ;;  %v473_v24 = vld [vmem:[%s6638_s23 + $0x28] sm:$0xff]  ;;  %v479_v27 = vsel %vm478_vm0, %v468_v20, 0.0  ;;  %v480_v28 = vsel %vm478_vm0, %v469_v22, 0.0  ;;  %v470_v37 = vld [vmem:[%s6638_s23 + $0x10] sm:$0xff]  ;;  %s7203_s29 = scalar_lea.vmem %s7431_s1, %s7444_s16  ;;  %s6260_s19 = smul.u32 80, %s431_s13 }
  0x1c   : > { %v483_v29 = vsel %vm478_vm0, %v472_v23, 0.0  ;;  %v484_v30 = vsel %vm478_vm0, %v473_v24, 0.0  ;;  %v6666_v32 = vpack.c.bf16 %v480_v28, %v479_v27  ;;  %v471_v38 = vld [vmem:[%s6638_s23 + $0x18] sm:$0xff]  ;;  %v5958_v42 = vld [vmem:[#allocation2 + $0x64] sm:$0xf0]  ;;  %v474_v43 = vld [vmem:[%s6638_s23 + $0x30] sm:$0xff] }
  0x1d   : > { %v6668_v33 = vpack.c.bf16 %v484_v30, %v483_v29  ;;  %v5976_v40 = vld [vmem:[#allocation2 + $0xf4] sm:$0xf0]  ;;  %v4785_v45 = vld [vmem:[#allocation2 + $0xe0] sm:$0xf]  ;;  %v5974_v46 = vld [vmem:[#allocation2 + $0xe4] sm:$0xf0]  ;;  %v4722_v48 = vor.u32 %v5958_v42, %v4721_v41 }
  0x1e   : > { %596 = vmatpush.bf16.msra.mxu0 %v4639_v17  ;;  %6254 = vmatpush.bf16.msra.mxu2 %v4639_v17  ;;  %v4794_v44 = vor.u32 %v5976_v40, %v4793_v36  ;;  %v475_v47 = vld [vmem:[%s6638_s23 + $0x38] sm:$0xff]  ;;  %v4713_v49 = vld [vmem:[#allocation2 + $0x50] sm:$0xf]  ;;  %v4786_v51 = vor.u32 %v5974_v46, %v4785_v45  ;;  %v5959_v52 = vld [vmem:[#allocation2 + $0x74] sm:$0xf]  ;;  %v481_v59 = vsel %vm478_vm0, %v470_v37, 0.0 }
  0x1f   : > { %630 = vmatpush.bf16.msra.mxu1 %v4643_v21  ;;  %6258 = vmatpush.bf16.msra.mxu3 %v4643_v21  ;;  %v5956_v50 = vld [vmem:[#allocation2 + $0x54] sm:$0xf0]  ;;  %v4731_v53 = vld [vmem:[#allocation2 + $0x78] sm:$0xf0]  ;;  %v5975_v54 = vld [vmem:[#allocation2 + $0xf4] sm:$0xf] }
  0x20   : > { %v4777_v55 = vld [vmem:[#allocation2 + $0xd0] sm:$0xf]  ;;  %v5972_v56 = vld [vmem:[#allocation2 + $0xd4] sm:$0xf0]  ;;  %v4734_v57 = vor.u32 %v5959_v52, %v4731_v53  ;;  %v4795_v58 = vld [vmem:[#allocation2 + $0xf8] sm:$0xf0]  ;;  %v4714_v0 = vor.u32 %v5956_v50, %v4713_v49 }
  0x21   : > { %v482_v60 = vsel %vm478_vm0, %v471_v38, 0.0  ;;  %v485_v61 = vsel %vm478_vm0, %v474_v43, 0.0  ;;  %v4798_v62 = vor.u32 %v5975_v54, %v4795_v58  ;;  %v5957_v63 = vld [vmem:[#allocation2 + $0x64] sm:$0xf]  ;;  %v4723_v1 = vld [vmem:[#allocation2 + $0x68] sm:$0xf0]  ;;  %v4778_v5 = vor.u32 %v5972_v56, %v4777_v55 }
  0x22   : > { %597 = vmatpush.bf16.msra.mxu0 %v4631_v26  ;;  %6255 = vmatpush.bf16.msra.mxu2 %v4631_v26  ;;  %v5973_v2 = vld [vmem:[#allocation2 + $0xe4] sm:$0xf]  ;;  %v4787_v3 = vld [vmem:[#allocation2 + $0xe8] sm:$0xf0]  ;;  %v486_v4 = vsel %vm478_vm0, %v475_v47, 0.0  ;;  %v4726_v6 = vor.u32 %v5957_v63, %v4723_v1  ;;  %v6686_v13 = vpack.c.bf16 %v482_v60, %v481_v59  ;;  %vm4331_vm4 = vcmask 31744  }
  0x23   : > { %631 = vmatpush.bf16.msra.mxu1 %v4635_v31  ;;  %6259 = vmatpush.bf16.msra.mxu3 %v4635_v31  ;;  %v4790_v7 = vor.u32 %v5973_v2, %v4787_v3  ;;  %v4705_v8 = vld [vmem:[#allocation2 + $0x40] sm:$0xf]  ;;  %v5954_v9 = vld [vmem:[#allocation2 + $0x44] sm:$0xf0]  ;;  %v5955_v12 = vld [vmem:[#allocation2 + $0x54] sm:$0xf]  ;;  %v6688_v14 = vpack.c.bf16 %v486_v4, %v485_v61 }
  0x24   : > { %v4769_v10 = vld [vmem:[#allocation2 + $0xc0] sm:$0xf]  ;;  %v5970_v11 = vld [vmem:[#allocation2 + $0xc4] sm:$0xf0]  ;;  %v4715_v15 = vld [vmem:[#allocation2 + $0x58] sm:$0xf0]  ;;  %v4706_v18 = vor.u32 %v5954_v9, %v4705_v8 }
  0x25   : > { %4660 = vmatmul.msk.bf16.vlgmr.msra.gmra.mxu0 %vm574_vm1, %v6666_v32  ;;  %4662 = vmatmul.msk.bf16.vlgmr.msra.gmra.mxu2 %vm574_vm1, %v6668_v33  ;;  %v5971_v16 = vld [vmem:[#allocation2 + $0xd4] sm:$0xf]  ;;  %v4779_v17 = vld [vmem:[#allocation2 + $0xd8] sm:$0xf0]  ;;  %v4770_v19 = vor.u32 %v5970_v11, %v4769_v10  ;;  %v4697_v20 = vld [vmem:[#allocation2 + $0x30] sm:$0xf]  ;;  %v4718_v22 = vor.u32 %v5955_v12, %v4715_v15 }
  0x26   : > { %4665 = vmatmul.msk.bf16.vlgmr.msra.gmra.mxu1 %vm574_vm1, %v6666_v32  ;;  %4667 = vmatmul.msk.bf16.vlgmr.msra.gmra.mxu3 %vm574_vm1, %v6668_v33  ;;  %v5952_v21 = vld [vmem:[#allocation2 + $0x34] sm:$0xf0]  ;;  %v4782_v23 = vor.u32 %v5971_v16, %v4779_v17  ;;  %v4761_v24 = vld [vmem:[#allocation2 + $0xb0] sm:$0xf]  ;;  %v5953_v26 = vld [vmem:[#allocation2 + $0x44] sm:$0xf] }
  0x27   : > { %887 = vmatpush.bf16.msrb.mxu2 %v4730_v39  ;;  %921 = vmatpush.bf16.msrb.mxu3 %v4794_v44  ;;  %v5968_v25 = vld [vmem:[#allocation2 + $0xb4] sm:$0xf0]  ;;  %v4707_v27 = vld [vmem:[#allocation2 + $0x48] sm:$0xf0]  ;;  %v5969_v28 = vld [vmem:[#allocation2 + $0xc4] sm:$0xf]  ;;  %v4698_v30 = vor.u32 %v5952_v21, %v4697_v20 }
  0x28   : > { %955 = vmatpush.bf16.msrb.mxu0 %v4734_v57  ;;  %989 = vmatpush.bf16.msrb.mxu1 %v4798_v62  ;;  %v4771_v29 = vld [vmem:[#allocation2 + $0xc8] sm:$0xf0]  ;;  %v4762_v31 = vor.u32 %v5968_v25, %v4761_v24  ;;  %v4689_v34 = vld [vmem:[#allocation2 + $0x20] sm:$0xf]  ;;  %v4710_v35 = vor.u32 %v5953_v26, %v4707_v27  ;;  %v5950_v37 = vld [vmem:[#allocation2 + $0x24] sm:$0xf0] }
  0x29   : > { %v4774_v36 = vor.u32 %v5969_v28, %v4771_v29  ;;  %v4753_v38 = vld [vmem:[#allocation2 + $0xa0] sm:$0xf]  ;;  %v5966_v39 = vld [vmem:[#allocation2 + $0xa4] sm:$0xf0]  ;;  %v4690_v42 = vor.u32 %v5950_v37, %v4689_v34  ;;  %v5951_v47 = vld [vmem:[#allocation2 + $0x34] sm:$0xf] }
  0x2a   : > { %v476_v40 = vld [vmem:[%s6638_s23 + $0x40] sm:$0xff]  ;;  %v477_v41 = vld [vmem:[%s6638_s23 + $0x48] sm:$0xff]  ;;  %v4754_v43 = vor.u32 %v5966_v39, %v4753_v38  ;;  %v5967_v49 = vld [vmem:[#allocation2 + $0xb4] sm:$0xf]  ;;  %s7336_s26 = scalar_lea.vmem [#allocation4], %s6260_s19   ;;  %s4350_s17 = ssub.s32 (%p6581_p4), 17, %s6596_s14 }
  0x2b   : > { %888 = vmatpush.bf16.msrb.mxu2 %v4722_v48  ;;  %922 = vmatpush.bf16.msrb.mxu3 %v4786_v51  ;;  %v487_v44 = vsel %vm478_vm0, %v476_v40, 0.0  ;;  %v488_v45 = vsel %vm478_vm0, %v477_v41, 0.0  ;;  %v4699_v48 = vld [vmem:[#allocation2 + $0x38] sm:$0xf0]  ;;  %v5949_v53 = vld [vmem:[#allocation2 + $0x24] sm:$0xf] }
  0x2c   : > { %956 = vmatpush.bf16.msrb.mxu0 %v4726_v6  ;;  %990 = vmatpush.bf16.msrb.mxu1 %v4790_v7  ;;  %v6702_v46 = vpack.c.bf16 %v488_v45, %v487_v44  ;;  %v4702_v50 = vor.u32 %v5951_v47, %v4699_v48  ;;  %v4763_v51 = vld [vmem:[#allocation2 + $0xb8] sm:$0xf0]  ;;  %v4691_v54 = vld [vmem:[#allocation2 + $0x28] sm:$0xf0]  ;;  %v5965_v56 = vld [vmem:[#allocation2 + $0xa4] sm:$0xf] }
  0x2d   : > { %v4766_v52 = vor.u32 %v5967_v49, %v4763_v51  ;;  %v4694_v55 = vor.u32 %v5949_v53, %v4691_v54  ;;  %v4755_v57 = vld [vmem:[#allocation2 + $0xa8] sm:$0xf0]  ;;  %v4681_v58 = vld [vmem:[#allocation2 + $0x10] sm:$0xf]  ;;  %v5948_v59 = vld [vmem:[#allocation2 + $0x14] sm:$0xf0] }
  0x2e   : > { %v4758_v60 = vor.u32 %v5965_v56, %v4755_v57  ;;  %v4745_v61 = vld [vmem:[#allocation2 + $0x90] sm:$0xf]  ;;  %v4682_v62 = vor.u32 %v5948_v59, %v4681_v58  ;;  %v5964_v63 = vld [vmem:[#allocation2 + $0x94] sm:$0xf0]  ;;  %v5947_v1 = vld [vmem:[#allocation2 + $0x14] sm:$0xf] }
  0x2f   : > { %889 = vmatpush.bf16.msrb.mxu2 %v4714_v0  ;;  %923 = vmatpush.bf16.msrb.mxu3 %v4778_v5  ;;  %v4746_v0 = vor.u32 %v5964_v63, %v4745_v61  ;;  %v4683_v2 = vld [vmem:[#allocation2 + $0x18] sm:$0xf0]  ;;  %v5963_v3 = vld [vmem:[#allocation2 + $0x94] sm:$0xf]  ;;  %v4673_v7 = vld [vmem:[#allocation2] sm:$0xf] }
  0x30   : > { %957 = vmatpush.bf16.msrb.mxu0 %v4718_v22  ;;  %991 = vmatpush.bf16.msrb.mxu1 %v4782_v23  ;;  %v4686_v4 = vor.u32 %v5947_v1, %v4683_v2  ;;  %v4747_v5 = vld [vmem:[#allocation2 + $0x98] sm:$0xf0]  ;;  %v5946_v8 = vld [vmem:[#allocation2 + $0x4] sm:$0xf0]  ;;  %v4737_v9 = vld [vmem:[#allocation2 + $0x80] sm:$0xf] }
  0x31   : > { %v4750_v6 = vor.u32 %v5963_v3, %v4747_v5  ;;  %v4674_v10 = vor.u32 %v5946_v8, %v4673_v7  ;;  %v5962_v11 = vld [vmem:[#allocation2 + $0x84] sm:$0xf0]  ;;  %v5945_v12 = vld [vmem:[#allocation2 + $0x4] sm:$0xf]  ;;  %v4675_v15 = vld [vmem:[#allocation2 + $0x8] sm:$0xf0] }
  0x32   : > { %v4738_v16 = vor.u32 %v5962_v11, %v4737_v9  ;;  %v4678_v17 = vor.u32 %v5945_v12, %v4675_v15  ;;  %v528_v21 = vld [vmem:[%s7434_s4] ss:$8 sm:$0x3]  ;;  %v5992_v11 = vld [vmem:[#allocation2 + $0x174] sm:$0xf0]  ;;  %s6251_s27 = smul.u32 (%p6581_p4), 80, %s6569_s20 }
  0x33   : > { %890 = vmatpush.bf16.msrb.mxu2 %v4706_v18  ;;  %924 = vmatpush.bf16.msrb.mxu3 %v4770_v19  ;;  %v5961_v18 = vld [vmem:[#allocation2 + $0x84] sm:$0xf]  ;;  %v4739_v19 = vld [vmem:[#allocation2 + $0x88] sm:$0xf0]  ;;  %v6711_v24 = vperm.slane %v528_v21, 0  ;;  %v6713_v25 = vperm.slane %v528_v21, 1 }
  0x34   : > { %958 = vmatpush.bf16.msrb.mxu0 %v4710_v35  ;;  %992 = vmatpush.bf16.msrb.mxu1 %v4774_v36  ;;  %v4742_v20 = vor.u32 %v5961_v18, %v4739_v19  ;;  %v4922_v12 = vld [vmem:[#allocation2 + $0x1f0] sm:$0xf]  ;;  %v4850_v21 = vld [vmem:[#allocation2 + $0x160] sm:$0xf]  ;;  %p4351_p11 = scmp.lt.s32.totalorder (%p6581_p4), %s4350_s17, 10  ;;  %s7374_s28 = scalar_lea.vmem (%p6581_p4), %s7441_s11, %s6251_s27  }
  0x35   : > { %4661 = vmatmul.msk.bf16.gmra.mxu0 %vm574_vm1, %v6686_v13  ;;  %4663 = vmatmul.msk.bf16.gmra.mxu2 %vm574_vm1, %v6688_v14 }
  0x36   : > { %4666 = vmatmul.msk.bf16.gmra.mxu1 %vm574_vm1, %v6686_v13  ;;  %4668 = vmatmul.msk.bf16.gmra.mxu3 %vm574_vm1, %v6688_v14 }
  0x37   : > { %891 = vmatpush.bf16.msrb.mxu2 %v4698_v30  ;;  %925 = vmatpush.bf16.msrb.mxu3 %v4762_v31 }
  0x38   : > { %959 = vmatpush.bf16.msrb.mxu0 %v4702_v50  ;;  %993 = vmatpush.bf16.msrb.mxu1 %v4766_v52 }
  0x3b   : > { %892 = vmatpush.bf16.msrb.mxu2 %v4690_v42  ;;  %926 = vmatpush.bf16.msrb.mxu3 %v4754_v43 }
  0x3c   : > { %960 = vmatpush.bf16.msrb.mxu0 %v4694_v55  ;;  %994 = vmatpush.bf16.msrb.mxu1 %v4758_v60 }
  0x3f   : > { %893 = vmatpush.bf16.msrb.mxu2 %v4682_v62  ;;  %927 = vmatpush.bf16.msrb.mxu3 %v4746_v0 }
  0x40   : > { %961 = vmatpush.bf16.msrb.mxu0 %v4686_v4  ;;  %995 = vmatpush.bf16.msrb.mxu1 %v4750_v6 }
  0x43   : > { %894 = vmatpush.bf16.msrb.mxu2 %v4674_v10  ;;  %928 = vmatpush.bf16.msrb.mxu3 %v4738_v16  ;;  %v4858_v10 = vld [vmem:[#allocation2 + $0x170] sm:$0xf]  ;;  %v6008_v16 = vld [vmem:[#allocation2 + $0x1f4] sm:$0xf0] }
  0x44   : > { %962 = vmatpush.bf16.msrb.mxu0 %v4678_v17  ;;  %996 = vmatpush.bf16.msrb.mxu1 %v4742_v20  ;;  %v4859_v15 = vor.u32 %v5992_v11, %v4858_v10  ;;  %v5991_v17 = vld [vmem:[#allocation2 + $0x174] sm:$0xf]  ;;  %v4923_v19 = vor.u32 %v6008_v16, %v4922_v12  ;;  %v4860_v20 = vld [vmem:[#allocation2 + $0x178] sm:$0xf0]  ;;  %v5984_v10 = vld [vmem:[#allocation2 + $0x134] sm:$0xf0] }
  0x45   : > { %4664 = vmatmul.msk.bf16.gmra.mxu2 %vm574_vm1, %v6702_v46  ;;  %v4890_v16 = vld [vmem:[#allocation2 + $0x1b0] sm:$0xf] }
  0x46   : > { %4669 = vmatmul.msk.bf16.gmra.mxu3 %vm574_vm1, %v6702_v46 }
  0x47   : > { %1253 = vmatpush.bf16.msra.mxu2 %v4859_v15  ;;  %1287 = vmatpush.bf16.msra.mxu3 %v4923_v19  ;;  %v5983_v19 = vld [vmem:[#allocation2 + $0x134] sm:$0xf] }
  0xa2   : > { %v599_v22 = vpop.f32.mrf.mxu0 }
  0xa3   : > { %v633_v23 = vpop.f32.mrf.mxu1  ;;  %v600_v26 = vadd.f32 %v599_v22, %v6711_v24 }
  0xa4   : > { %v634_v27 = vadd.f32 %v633_v23, %v6713_v25  ;;  %v4863_v23 = vor.u32 %v5991_v17, %v4860_v20  ;;  %v6000_v17 = vld [vmem:[#allocation2 + $0x1b4] sm:$0xf0]  ;;  %v4828_v20 = vld [vmem:[#allocation2 + $0x138] sm:$0xf0] }
  0xa5   : > { %v658_v34 = vmax.f32 %v600_v26, 0.0  ;;  %v5990_v26 = vld [vmem:[#allocation2 + $0x164] sm:$0xf0] }
  0xa6   : > { %v659_v36 = vmax.f32 %v634_v27, 0.0  ;;  %v6007_v27 = vld [vmem:[#allocation2 + $0x1f4] sm:$0xf]  ;;  %1321 = vmatpush.bf16.msra.mxu0 %v4863_v23  ;;  %v4891_v23 = vor.u32 %v6000_v17, %v4890_v16 }
  0xa8   : > { %v609_v41 = vpop.f32.mrf.mxu2 }
  0xa9   : > { %v643_v43 = vpop.f32.mrf.mxu3  ;;  %v610_v60 = vadd.f32 %v609_v41, %v6711_v24  ;;  %v5988_v41 = vld [vmem:[#allocation2 + $0x154] sm:$0xf0] }
  0xaa   : > { %v601_v28 = vpop.f32.mrf.mxu0  ;;  %v644_v63 = vadd.f32 %v643_v43, %v6713_v25  ;;  %v6005_v43 = vld [vmem:[#allocation2 + $0x1e4] sm:$0xf] }
  0xab   : > { %v602_v29 = vadd.f32 %v601_v28, %v6711_v24  ;;  %v635_v30 = vpop.f32.mrf.mxu1  ;;  %v666_v1 = vmax.f32 %v610_v60, 0.0  ;;  %v4924_v28 = vld [vmem:[#allocation2 + $0x1f8] sm:$0xf0]  ;;  %v4834_v60 = vld [vmem:[#allocation2 + $0x140] sm:$0xf] }
  0xac   : > { %v636_v31 = vadd.f32 %v635_v30, %v6713_v25  ;;  %v667_v3 = vmax.f32 %v644_v63, 0.0 }
  0xad   : > { %v660_v35 = vmax.f32 %v602_v29, 0.0 }
  0xae   : > { %v661_v37 = vmax.f32 %v636_v31, 0.0  ;;  %v4851_v31 = vor.u32 %v5990_v26, %v4850_v21  ;;  %v5999_v21 = vld [vmem:[#allocation2 + $0x1b4] sm:$0xf]  ;;  %v4818_v26 = vld [vmem:[#allocation2 + $0x120] sm:$0xf] }
  0xaf   : > { %v678_v38 = vpack.c.bf16 %v660_v35, %v658_v34  ;;  %v4927_v34 = vor.u32 %v6007_v27, %v4924_v28  ;;  %v4914_v35 = vld [vmem:[#allocation2 + $0x1e0] sm:$0xf]  ;;  %v4831_v28 = vor.u32 %v5983_v19, %v4828_v20 }
  0xb0   : > { %v679_v39 = vpack.c.bf16 %v661_v37, %v659_v36  ;;  %v611_v51 = vpop.f32.mrf.mxu2  ;;  %v6006_v36 = vld [vmem:[#allocation2 + $0x1e4] sm:$0xf0]  ;;  %v5989_v37 = vld [vmem:[#allocation2 + $0x164] sm:$0xf]  ;;  %1254 = vmatpush.bf16.msra.mxu2 %v4851_v31  ;;  %v4882_v31 = vld [vmem:[#allocation2 + $0x1a0] sm:$0xf] }
  0xb1   : > { %895 = vmatmul.bf16.vlgmr.msrb.gmra.mxu2 %v678_v38  ;;  %963 = vmatmul.bf16.vlgmr.msrb.gmra.mxu0 %v678_v38  ;;  %v645_v54 = vpop.f32.mrf.mxu3  ;;  %v612_v61 = vadd.f32 %v611_v51, %v6711_v24  ;;  %v4915_v38 = vor.u32 %v6006_v36, %v4914_v35  ;;  %v4844_v51 = vld [vmem:[#allocation2 + $0x158] sm:$0xf0] }
  0xb2   : > { %929 = vmatmul.bf16.vlgmr.msrb.gmra.mxu3 %v679_v39  ;;  %997 = vmatmul.bf16.vlgmr.msrb.gmra.mxu1 %v679_v39  ;;  %v604_v40 = vpop.f32.mrf.mxu0  ;;  %v646_v0 = vadd.f32 %v645_v54, %v6713_v25  ;;  %v4852_v39 = vld [vmem:[#allocation2 + $0x168] sm:$0xf0] }
  0xb3   : > { %v638_v42 = vpop.f32.mrf.mxu1  ;;  %v605_v44 = vadd.f32 %v604_v40, %v6711_v24  ;;  %v668_v2 = vmax.f32 %v612_v61, 0.0  ;;  %v4842_v40 = vld [vmem:[#allocation2 + $0x150] sm:$0xf]  ;;  %1355 = vmatpush.bf16.msra.mxu1 %v4927_v34  ;;  %1288 = vmatpush.bf16.msra.mxu3 %v4915_v38  ;;  %v5986_v61 = vld [vmem:[#allocation2 + $0x144] sm:$0xf0] }
  0xb4   : > { %v639_v45 = vadd.f32 %v638_v42, %v6713_v25  ;;  %v669_v4 = vmax.f32 %v646_v0, 0.0  ;;  %v4855_v42 = vor.u32 %v5989_v37, %v4852_v39  ;;  %v4898_v0 = vld [vmem:[#allocation2 + $0x1c0] sm:$0xf]  ;;  %v5998_v34 = vld [vmem:[#allocation2 + $0x1a4] sm:$0xf0] }
  0xb5   : > { %v662_v52 = vmax.f32 %v605_v44, 0.0  ;;  %v682_v5 = vpack.c.bf16 %v668_v2, %v666_v1  ;;  %v4916_v44 = vld [vmem:[#allocation2 + $0x1e8] sm:$0xf0]  ;;  %v6002_v1 = vld [vmem:[#allocation2 + $0x1c4] sm:$0xf0]  ;;  %v4883_v39 = vor.u32 %v5998_v34, %v4882_v31 }
  0xb6   : > { %v663_v55 = vmax.f32 %v639_v45, 0.0  ;;  %v683_v7 = vpack.c.bf16 %v669_v4, %v667_v3  ;;  %v4906_v45 = vld [vmem:[#allocation2 + $0x1d0] sm:$0xf]  ;;  %1322 = vmatpush.bf16.msra.mxu0 %v4855_v42  ;;  %v5985_v2 = vld [vmem:[#allocation2 + $0x144] sm:$0xf] }
  0xb7   : > { %v4836_v3 = vld [vmem:[#allocation2 + $0x148] sm:$0xf0]  ;;  %v6001_v4 = vld [vmem:[#allocation2 + $0x1c4] sm:$0xf] }
  0xb8   : > { %v614_v59 = vpop.f32.mrf.mxu2  ;;  %v4839_v12 = vor.u32 %v5985_v2, %v4836_v3  ;;  %v4868_v2 = vld [vmem:[#allocation2 + $0x188] sm:$0xf0]  ;;  %v5979_v3 = vld [vmem:[#allocation2 + $0x114] sm:$0xf] }
  0xb9   : > { %v648_v62 = vpop.f32.mrf.mxu3  ;;  %v6728_v6 = vadd.f32 %v614_v59, %v6711_v24 }
  0xba   : > { %v606_v47 = vpop.f32.mrf.mxu0  ;;  %v649_v22 = vadd.f32 %v648_v62, %v6713_v25  ;;  %v4908_v62 = vld [vmem:[#allocation2 + $0x1d8] sm:$0xf0] }
  0xbb   : > { %v607_v48 = vadd.f32 %v606_v47, %v6711_v24  ;;  %v640_v49 = vpop.f32.mrf.mxu1  ;;  %v670_v18 = vmax.f32 %v6728_v6, 0.0  ;;  %v4843_v47 = vor.u32 %v5988_v41, %v4842_v40 }
  0xbc   : > { %v641_v50 = vadd.f32 %v640_v49, %v6713_v25  ;;  %v6004_v49 = vld [vmem:[#allocation2 + $0x1d4] sm:$0xf0] }
  0xbd   : > { %v664_v53 = vmax.f32 %v607_v48, 0.0  ;;  %v4919_v48 = vor.u32 %v6005_v43, %v4916_v44  ;;  %1255 = vmatpush.bf16.msra.mxu2 %v4843_v47 }
  0xbe   : > { %v665_v56 = vmax.f32 %v641_v50, 0.0  ;;  %v5987_v50 = vld [vmem:[#allocation2 + $0x154] sm:$0xf] }
  0xbf   : > { %v680_v57 = vpack.c.bf16 %v664_v53, %v662_v52  ;;  %v671_v52 = vmax.f32 %v649_v22, 0.0  ;;  %v4847_v59 = vor.u32 %v5987_v50, %v4844_v51  ;;  %1356 = vmatpush.bf16.msra.mxu1 %v4919_v48  ;;  %v4892_v22 = vld [vmem:[#allocation2 + $0x1b8] sm:$0xf0]  ;;  %v5981_v50 = vld [vmem:[#allocation2 + $0x124] sm:$0xf] }
  0xc0   : > { %v681_v58 = vpack.c.bf16 %v665_v56, %v663_v55  ;;  %v616_v8 = vpop.f32.mrf.mxu2  ;;  %v4907_v56 = vor.u32 %v6004_v49, %v4906_v45  ;;  %v4884_v49 = vld [vmem:[#allocation2 + $0x1a8] sm:$0xf0] }
  0xc1   : > { %900 = vmatmul.bf16.gmra.mxu2 %v680_v57  ;;  %968 = vmatmul.bf16.gmra.mxu0 %v680_v57  ;;  %v650_v9 = vpop.f32.mrf.mxu3  ;;  %v617_v29 = vadd.f32 %v616_v8, %v6711_v24  ;;  %v6003_v57 = vld [vmem:[#allocation2 + $0x1d4] sm:$0xf]  ;;  %v4899_v8 = vor.u32 %v6002_v1, %v4898_v0  ;;  %v4820_v51 = vld [vmem:[#allocation2 + $0x128] sm:$0xf0]  ;;  %v5993_v0 = vld [vmem:[#allocation2 + $0x184] sm:$0xf] }
  0xc2   : > { %934 = vmatmul.bf16.gmra.mxu3 %v681_v58  ;;  %1002 = vmatmul.bf16.gmra.mxu1 %v681_v58  ;;  %v651_v30 = vadd.f32 %v650_v9, %v6713_v25  ;;  %v4911_v63 = vor.u32 %v6003_v57, %v4908_v62  ;;  %v4826_v9 = vld [vmem:[#allocation2 + $0x130] sm:$0xf]  ;;  %v4866_v62 = vld [vmem:[#allocation2 + $0x180] sm:$0xf] }
  0xc3   : > { %v672_v53 = vmax.f32 %v617_v29, 0.0  ;;  %1289 = vmatpush.bf16.msra.mxu3 %v4907_v56  ;;  %1323 = vmatpush.bf16.msra.mxu0 %v4847_v59  ;;  %v5982_v29 = vld [vmem:[#allocation2 + $0x124] sm:$0xf0]  ;;  %v5996_v56 = vld [vmem:[#allocation2 + $0x194] sm:$0xf0] }
  0xc4   : > { %v673_v54 = vmax.f32 %v651_v30, 0.0  ;;  %1357 = vmatpush.bf16.msra.mxu1 %v4911_v63  ;;  %v4895_v30 = vor.u32 %v5999_v21, %v4892_v22  ;;  %v4819_v38 = vor.u32 %v5982_v29, %v4818_v26  ;;  %v5995_v59 = vld [vmem:[#allocation2 + $0x194] sm:$0xf]  ;;  %v5994_v63 = vld [vmem:[#allocation2 + $0x184] sm:$0xf0] }
  0xc5   : > { %v684_v6 = vpack.c.bf16 %v672_v53, %v670_v18  ;;  %v4827_v18 = vor.u32 %v5984_v10, %v4826_v9  ;;  %v4823_v53 = vor.u32 %v5981_v50, %v4820_v51  ;;  %v4867_v1 = vor.u32 %v5994_v63, %v4866_v62  ;;  %v5977_v10 = vld [vmem:[#allocation2 + $0x104] sm:$0xf] }
  0xc6   : > { %v685_v11 = vpack.c.bf16 %v673_v54, %v671_v52  ;;  %v4810_v52 = vld [vmem:[#allocation2 + $0x110] sm:$0xf]  ;;  %v5980_v54 = vld [vmem:[#allocation2 + $0x114] sm:$0xf0] }
  0xc7   : > { %1290 = vmatpush.bf16.msra.mxu3 %v4899_v8  ;;  %1324 = vmatpush.bf16.msra.mxu0 %v4839_v12  ;;  %v4811_v57 = vor.u32 %v5980_v54, %v4810_v52  ;;  %v5978_v8 = vld [vmem:[#allocation2 + $0x104] sm:$0xf0] }
  0xc8   : > { %v619_v55 = vpop.f32.mrf.mxu2 }
  0xc9   : > { %v653_v58 = vpop.f32.mrf.mxu3  ;;  %v620_v36 = vadd.f32 %v619_v55, %v6711_v24  ;;  %v4874_v55 = vld [vmem:[#allocation2 + $0x190] sm:$0xf] }
  0xca   : > { %v654_v40 = vadd.f32 %v653_v58, %v6713_v25  ;;  %v4875_v58 = vor.u32 %v5996_v56, %v4874_v55 }
  0xcb   : > { %1291 = vmatpush.bf16.msra.mxu3 %v4891_v23  ;;  %1325 = vmatpush.bf16.msra.mxu0 %v4831_v28  ;;  %v674_v42 = vmax.f32 %v620_v36, 0.0 }
  0xcc   : > { %v675_v44 = vmax.f32 %v654_v40, 0.0 }
  0xcf   : > { %1292 = vmatpush.bf16.msra.mxu3 %v4883_v39  ;;  %1326 = vmatpush.bf16.msra.mxu0 %v4823_v53 }
  0xd0   : > { %v621_v27 = vpop.f32.mrf.mxu2 }
  0xd1   : > { %905 = vmatmul.bf16.gmra.mxu2 %v682_v5  ;;  %973 = vmatmul.bf16.gmra.mxu0 %v682_v5  ;;  %v4900_v5 = vld [vmem:[#allocation2 + $0x1c8] sm:$0xf0]  ;;  %v655_v35 = vpop.f32.mrf.mxu3  ;;  %v622_v37 = vadd.f32 %v621_v27, %v6711_v24  ;;  %v5997_v24 = vld [vmem:[#allocation2 + $0x1a4] sm:$0xf] }
  0xd2   : > { %939 = vmatmul.bf16.gmra.mxu3 %v683_v7  ;;  %1007 = vmatmul.bf16.gmra.mxu1 %v683_v7  ;;  %v4835_v7 = vor.u32 %v5986_v61, %v4834_v60  ;;  %v4903_v15 = vor.u32 %v6001_v4, %v4900_v5  ;;  %v656_v41 = vadd.f32 %v655_v35, %v6713_v25  ;;  %v4876_v60 = vld [vmem:[#allocation2 + $0x198] sm:$0xf0] }
  0xd3   : > { %v676_v43 = vmax.f32 %v622_v37, 0.0  ;;  %v4887_v25 = vor.u32 %v5997_v24, %v4884_v49  ;;  %1293 = vmatpush.bf16.msra.mxu3 %v4875_v58  ;;  %v4879_v61 = vor.u32 %v5995_v59, %v4876_v60  ;;  %v4812_v4 = vld [vmem:[#allocation2 + $0x118] sm:$0xf0]  ;;  %v4871_v5 = vor.u32 %v5993_v0, %v4868_v2 }
  0xd4   : > { %1256 = vmatpush.bf16.msra.mxu2 %v4835_v7  ;;  %1358 = vmatpush.bf16.msra.mxu1 %v4903_v15  ;;  %v677_v45 = vmax.f32 %v656_v41, 0.0  ;;  %v4802_v7 = vld [vmem:[#allocation2 + $0x100] sm:$0xf] }
  0xd5   : > { %v686_v47 = vpack.c.bf16 %v676_v43, %v674_v42  ;;  %v4803_v9 = vor.u32 %v5978_v8, %v4802_v7  ;;  %v4670_v15 = vld [vmem:[%s7434_s4 + $0x1] ss:$8 sm:$0x3] }
  0xd6   : > { %v687_v48 = vpack.c.bf16 %v677_v45, %v675_v44  ;;  %v6741_v17 = vperm.slane %v4670_v15, 1  ;;  %v6744_v22 = vperm.slane %v4670_v15, 0 }
  0xd7   : > { %1294 = vmatpush.bf16.msra.mxu3 %v4867_v1 }
  0xd8   : > { %1257 = vmatpush.bf16.msra.mxu2 %v4827_v18  ;;  %1359 = vmatpush.bf16.msra.mxu1 %v4895_v30 }
  0xdc   : > { %1258 = vmatpush.bf16.msra.mxu2 %v4819_v38  ;;  %1360 = vmatpush.bf16.msra.mxu1 %v4887_v25 }
  0xe0   : > { %1259 = vmatpush.bf16.msra.mxu2 %v4811_v57  ;;  %1361 = vmatpush.bf16.msra.mxu1 %v4879_v61 }
  0xe1   : > { %910 = vmatmul.bf16.gmra.mxu2 %v684_v6  ;;  %978 = vmatmul.bf16.gmra.mxu0 %v684_v6  ;;  %v4815_v6 = vor.u32 %v5979_v3, %v4812_v4 }
  0xe2   : > { %944 = vmatmul.bf16.gmra.mxu3 %v685_v11  ;;  %1012 = vmatmul.bf16.gmra.mxu1 %v685_v11  ;;  %v4804_v11 = vld [vmem:[#allocation2 + $0x108] sm:$0xf0] }
  0xe3   : > { %1327 = vmatpush.bf16.msra.mxu0 %v4815_v6  ;;  %v4807_v12 = vor.u32 %v5977_v10, %v4804_v11 }
  0xe4   : > { %1362 = vmatpush.bf16.msra.mxu1 %v4871_v5  ;;  %1260 = vmatpush.bf16.msra.mxu2 %v4803_v9 }
  0xe7   : > { %1328 = vmatpush.bf16.msra.mxu0 %v4807_v12 }
  0xf1   : > { %915 = vmatmul.bf16.gmra.mxu2 %v686_v47  ;;  %983 = vmatmul.bf16.gmra.mxu0 %v686_v47 }
  0xf2   : > { %949 = vmatmul.bf16.gmra.mxu3 %v687_v48  ;;  %1017 = vmatmul.bf16.gmra.mxu1 %v687_v48 }
 0x12e   : > { %v964_v16 = vpop.f32.mrf.mxu0 }
 0x12f   : > { %v998_v19 = vpop.f32.mrf.mxu1  ;;  %v965_v20 = vadd.f32 %v964_v16, %v6741_v17 }
 0x131   : > { %v999_v26 = vadd.f32 %v998_v19, %v965_v20 }
 0x133   : > { %v1024_v31 = vmax.f32 %v999_v26, 0.0 }
 0x134   : > { %v896_v21 = vpop.f32.mrf.mxu2 }
 0x135   : > { %v930_v18 = vpop.f32.mrf.mxu3  ;;  %v897_v29 = vadd.f32 %v896_v21, %v6744_v22 }
 0x136   : > { %v966_v23 = vpop.f32.mrf.mxu0 }
 0x137   : > { %v967_v27 = vadd.f32 %v966_v23, %v6741_v17  ;;  %v1000_v28 = vpop.f32.mrf.mxu1  ;;  %v931_v36 = vadd.f32 %v930_v18, %v897_v29 }
 0x139   : > { %v1001_v30 = vadd.f32 %v1000_v28, %v967_v27  ;;  %v1023_v43 = vmax.f32 %v931_v36, 0.0  ;;  %v4987_v36 = vld [vmem:[#allocation2 + $0x270] sm:$0xf] }
 0x13b   : > { %v1026_v34 = vmax.f32 %v1001_v30, 0.0 }
 0x13c   : > { %v898_v35 = vpop.f32.mrf.mxu2 }
 0x13d   : > { %v1044_v37 = vpack.c.bf16 %v1026_v34, %v1024_v31  ;;  %v899_v38 = vadd.f32 %v898_v35, %v6744_v22  ;;  %v932_v39 = vpop.f32.mrf.mxu3 }
 0x13e   : > { %v969_v40 = vpop.f32.mrf.mxu0 }
 0x13f   : > { %v933_v41 = vadd.f32 %v932_v39, %v899_v38  ;;  %v1003_v42 = vpop.f32.mrf.mxu1  ;;  %1295 = vmatmul.bf16.vlgmr.msra.gmra.mxu3 %v1044_v37  ;;  %1363 = vmatmul.bf16.vlgmr.msra.gmra.mxu1 %v1044_v37  ;;  %v970_v47 = vadd.f32 %v969_v40, %v6741_v17  ;;  %v6024_v37 = vld [vmem:[#allocation2 + $0x274] sm:$0xf0]  ;;  %v5051_v38 = vld [vmem:[#allocation2 + $0x2f0] sm:$0xf] }
 0x140   : > { %v4988_v40 = vor.u32 %v6024_v37, %v4987_v36 }
 0x141   : > { %v1025_v44 = vmax.f32 %v933_v41, 0.0  ;;  %v1004_v50 = vadd.f32 %v1003_v42, %v970_v47  ;;  %v6040_v41 = vld [vmem:[#allocation2 + $0x2f4] sm:$0xf0]  ;;  %v6023_v42 = vld [vmem:[#allocation2 + $0x274] sm:$0xf] }
 0x142   : > { %1619 = vmatpush.bf16.msrb.mxu2 %v4988_v40 }
 0x143   : > { %v1043_v45 = vpack.c.bf16 %v1025_v44, %v1023_v43  ;;  %v1028_v54 = vmax.f32 %v1004_v50, 0.0  ;;  %v4989_v43 = vld [vmem:[#allocation2 + $0x278] sm:$0xf0]  ;;  %v6022_v50 = vld [vmem:[#allocation2 + $0x264] sm:$0xf0] }
 0x144   : > { %v901_v48 = vpop.f32.mrf.mxu2 }
 0x145   : > { %v935_v24 = vpop.f32.mrf.mxu3  ;;  %1261 = vmatmul.bf16.vlgmr.msra.gmra.mxu2 %v1043_v45  ;;  %1329 = vmatmul.bf16.vlgmr.msra.gmra.mxu0 %v1043_v45  ;;  %v902_v25 = vadd.f32 %v901_v48, %v6744_v22  ;;  %v5052_v48 = vor.u32 %v6040_v41, %v5051_v38  ;;  %v4955_v38 = vld [vmem:[#allocation2 + $0x230] sm:$0xf] }
 0x146   : > { %v971_v49 = vpop.f32.mrf.mxu0 }
 0x147   : > { %v972_v51 = vadd.f32 %v971_v49, %v6741_v17  ;;  %v1005_v52 = vpop.f32.mrf.mxu1  ;;  %v936_v57 = vadd.f32 %v935_v24, %v902_v25  ;;  %v4992_v24 = vor.u32 %v6023_v42, %v4989_v43  ;;  %v4979_v49 = vld [vmem:[#allocation2 + $0x260] sm:$0xf]  ;;  %1653 = vmatpush.bf16.msrb.mxu3 %v5052_v48  ;;  %v6033_v42 = vld [vmem:[#allocation2 + $0x2c4] sm:$0xf]  ;;  %v5029_v43 = vld [vmem:[#allocation2 + $0x2c8] sm:$0xf0] }
 0x148   : > { %v4980_v25 = vor.u32 %v6022_v50, %v4979_v49  ;;  %v6032_v49 = vld [vmem:[#allocation2 + $0x2b4] sm:$0xf0]  ;;  %v6015_v50 = vld [vmem:[#allocation2 + $0x234] sm:$0xf] }
 0x149   : > { %v1006_v53 = vadd.f32 %v1005_v52, %v972_v51  ;;  %v1027_v0 = vmax.f32 %v936_v57, 0.0  ;;  %v6039_v51 = vld [vmem:[#allocation2 + $0x2f4] sm:$0xf]  ;;  %1687 = vmatpush.bf16.msrb.mxu0 %v4992_v24 }
 0x14a   : > { %1620 = vmatpush.bf16.msrb.mxu2 %v4980_v25 }
 0x14b   : > { %v1030_v55 = vmax.f32 %v1006_v53, 0.0  ;;  %v5053_v53 = vld [vmem:[#allocation2 + $0x2f8] sm:$0xf0] }
 0x14c   : > { %v903_v56 = vpop.f32.mrf.mxu2  ;;  %v5056_v57 = vor.u32 %v6039_v51, %v5053_v53  ;;  %v4957_v51 = vld [vmem:[#allocation2 + $0x238] sm:$0xf0]  ;;  %v5032_v53 = vor.u32 %v6033_v42, %v5029_v43  ;;  %v6025_v42 = vld [vmem:[#allocation2 + $0x284] sm:$0xf] }
 0x14d   : > { %v904_v58 = vadd.f32 %v903_v56, %v6744_v22  ;;  %v937_v59 = vpop.f32.mrf.mxu3  ;;  %v1046_v60 = vpack.c.bf16 %v1030_v55, %v1028_v54  ;;  %v5043_v54 = vld [vmem:[#allocation2 + $0x2e0] sm:$0xf]  ;;  %v6038_v55 = vld [vmem:[#allocation2 + $0x2e4] sm:$0xf0] }
 0x14e   : > { %v974_v61 = vpop.f32.mrf.mxu0  ;;  %1721 = vmatpush.bf16.msrb.mxu1 %v5056_v57  ;;  %v6031_v57 = vld [vmem:[#allocation2 + $0x2b4] sm:$0xf] }
 0x14f   : > { %v938_v62 = vadd.f32 %v937_v59, %v904_v58  ;;  %v1008_v63 = vpop.f32.mrf.mxu1  ;;  %1300 = vmatmul.bf16.gmra.mxu3 %v1046_v60  ;;  %1368 = vmatmul.bf16.gmra.mxu1 %v1046_v60  ;;  %v975_v2 = vadd.f32 %v974_v61, %v6741_v17  ;;  %v5044_v58 = vor.u32 %v6038_v55, %v5043_v54  ;;  %v6021_v59 = vld [vmem:[#allocation2 + $0x264] sm:$0xf]  ;;  %v4981_v60 = vld [vmem:[#allocation2 + $0x268] sm:$0xf0]  ;;  %v4947_v54 = vld [vmem:[#allocation2 + $0x220] sm:$0xf] }
 0x150   : > { %v4984_v61 = vor.u32 %v6021_v59, %v4981_v60 }
 0x151   : > { %v1029_v1 = vmax.f32 %v938_v62, 0.0  ;;  %v1009_v7 = vadd.f32 %v1008_v63, %v975_v2  ;;  %v4971_v62 = vld [vmem:[#allocation2 + $0x250] sm:$0xf]  ;;  %v6020_v63 = vld [vmem:[#allocation2 + $0x254] sm:$0xf0]  ;;  %1654 = vmatpush.bf16.msrb.mxu3 %v5044_v58 }
 0x152   : > { %1688 = vmatpush.bf16.msrb.mxu0 %v4984_v61  ;;  %v5021_v58 = vld [vmem:[#allocation2 + $0x2b8] sm:$0xf0]  ;;  %v4960_v61 = vor.u32 %v6015_v50, %v4957_v51  ;;  %v6010_v50 = vld [vmem:[#allocation2 + $0x204] sm:$0xf0] }
 0x153   : > { %v1045_v3 = vpack.c.bf16 %v1029_v1, %v1027_v0  ;;  %v1032_v12 = vmax.f32 %v1009_v7, 0.0  ;;  %v6037_v0 = vld [vmem:[#allocation2 + $0x2e4] sm:$0xf]  ;;  %v4972_v7 = vor.u32 %v6020_v63, %v4971_v62 }
 0x154   : > { %v906_v4 = vpop.f32.mrf.mxu2 }
 0x155   : > { %v940_v5 = vpop.f32.mrf.mxu3  ;;  %1266 = vmatmul.bf16.gmra.mxu2 %v1045_v3  ;;  %1334 = vmatmul.bf16.gmra.mxu0 %v1045_v3  ;;  %v907_v10 = vadd.f32 %v906_v4, %v6744_v22  ;;  %v5045_v3 = vld [vmem:[#allocation2 + $0x2e8] sm:$0xf0]  ;;  %v5035_v4 = vld [vmem:[#allocation2 + $0x2d0] sm:$0xf] }
 0x156   : > { %v976_v6 = vpop.f32.mrf.mxu0  ;;  %1621 = vmatpush.bf16.msrb.mxu2 %v4972_v7 }
 0x157   : > { %v977_v8 = vadd.f32 %v976_v6, %v6741_v17  ;;  %v1010_v9 = vpop.f32.mrf.mxu1  ;;  %v941_v19 = vadd.f32 %v940_v5, %v907_v10  ;;  %v6019_v10 = vld [vmem:[#allocation2 + $0x254] sm:$0xf] }
 0x159   : > { %v1011_v11 = vadd.f32 %v1010_v9, %v977_v8  ;;  %v1031_v28 = vmax.f32 %v941_v19, 0.0  ;;  %v5048_v8 = vor.u32 %v6037_v0, %v5045_v3  ;;  %v6036_v9 = vld [vmem:[#allocation2 + $0x2d4] sm:$0xf0] }
 0x15a   : > { %v5036_v19 = vor.u32 %v6036_v9, %v5035_v4 }
 0x15b   : > { %v1034_v15 = vmax.f32 %v1011_v11, 0.0  ;;  %v4973_v11 = vld [vmem:[#allocation2 + $0x258] sm:$0xf0]  ;;  %1722 = vmatpush.bf16.msrb.mxu1 %v5048_v8 }
 0x15c   : > { %v908_v16 = vpop.f32.mrf.mxu2  ;;  %1655 = vmatpush.bf16.msrb.mxu3 %v5036_v19  ;;  %v5011_v19 = vld [vmem:[#allocation2 + $0x2a0] sm:$0xf] }
 0x15d   : > { %v909_v20 = vadd.f32 %v908_v16, %v6744_v22  ;;  %v942_v21 = vpop.f32.mrf.mxu3  ;;  %v1048_v18 = vpack.c.bf16 %v1034_v15, %v1032_v12 }
 0x15e   : > { %v979_v23 = vpop.f32.mrf.mxu0 }
 0x15f   : > { %v943_v26 = vadd.f32 %v942_v21, %v909_v20  ;;  %v1013_v27 = vpop.f32.mrf.mxu1  ;;  %1305 = vmatmul.bf16.gmra.mxu3 %v1048_v18  ;;  %1373 = vmatmul.bf16.gmra.mxu1 %v1048_v18  ;;  %v980_v30 = vadd.f32 %v979_v23, %v6741_v17  ;;  %v4963_v20 = vld [vmem:[#allocation2 + $0x240] sm:$0xf]  ;;  %v6018_v21 = vld [vmem:[#allocation2 + $0x244] sm:$0xf0]  ;;  %v6035_v18 = vld [vmem:[#allocation2 + $0x2d4] sm:$0xf] }
 0x160   : > { %v4964_v36 = vor.u32 %v6018_v21, %v4963_v20  ;;  %v6030_v20 = vld [vmem:[#allocation2 + $0x2a4] sm:$0xf0] }
 0x161   : > { %v1033_v29 = vmax.f32 %v943_v26, 0.0  ;;  %v1014_v44 = vadd.f32 %v1013_v27, %v980_v30  ;;  %v4976_v26 = vor.u32 %v6019_v10, %v4973_v11  ;;  %v5037_v27 = vld [vmem:[#allocation2 + $0x2d8] sm:$0xf0]  ;;  %v5012_v21 = vor.u32 %v6030_v20, %v5011_v19 }
 0x162   : > { %v5040_v37 = vor.u32 %v6035_v18, %v5037_v27  ;;  %1622 = vmatpush.bf16.msrb.mxu2 %v4964_v36  ;;  %v6029_v18 = vld [vmem:[#allocation2 + $0x2a4] sm:$0xf]  ;;  %v4949_v27 = vld [vmem:[#allocation2 + $0x228] sm:$0xf0] }
 0x163   : > { %v1047_v31 = vpack.c.bf16 %v1033_v29, %v1031_v28  ;;  %v1036_v1 = vmax.f32 %v1014_v44, 0.0  ;;  %v5027_v28 = vld [vmem:[#allocation2 + $0x2c0] sm:$0xf]  ;;  %1689 = vmatpush.bf16.msrb.mxu0 %v4976_v26  ;;  %v6013_v26 = vld [vmem:[#allocation2 + $0x224] sm:$0xf] }
 0x164   : > { %v911_v34 = vpop.f32.mrf.mxu2  ;;  %1723 = vmatpush.bf16.msrb.mxu1 %v5040_v37  ;;  %v6027_v37 = vld [vmem:[#allocation2 + $0x294] sm:$0xf] }
 0x165   : > { %v945_v35 = vpop.f32.mrf.mxu3  ;;  %1271 = vmatmul.bf16.gmra.mxu2 %v1047_v31  ;;  %1339 = vmatmul.bf16.gmra.mxu0 %v1047_v31  ;;  %v912_v52 = vadd.f32 %v911_v34, %v6744_v22  ;;  %v6034_v31 = vld [vmem:[#allocation2 + $0x2c4] sm:$0xf0]  ;;  %v6017_v34 = vld [vmem:[#allocation2 + $0x244] sm:$0xf] }
 0x166   : > { %v981_v39 = vpop.f32.mrf.mxu0  ;;  %v5028_v44 = vor.u32 %v6034_v31, %v5027_v28  ;;  %v4939_v28 = vld [vmem:[#allocation2 + $0x210] sm:$0xf] }
 0x167   : > { %v982_v45 = vadd.f32 %v981_v39, %v6741_v17  ;;  %v1015_v47 = vpop.f32.mrf.mxu1  ;;  %v946_v5 = vadd.f32 %v945_v35, %v912_v52  ;;  %v4965_v35 = vld [vmem:[#allocation2 + $0x248] sm:$0xf0]  ;;  %v6016_v39 = vld [vmem:[#allocation2 + $0x234] sm:$0xf0]  ;;  %v5003_v31 = vld [vmem:[#allocation2 + $0x290] sm:$0xf] }
 0x168   : > { %v4956_v25 = vor.u32 %v6016_v39, %v4955_v38  ;;  %1656 = vmatpush.bf16.msrb.mxu3 %v5028_v44  ;;  %1724 = vmatpush.bf16.msrb.mxu1 %v5032_v53  ;;  %v5005_v38 = vld [vmem:[#allocation2 + $0x298] sm:$0xf0]  ;;  %v4997_v44 = vld [vmem:[#allocation2 + $0x288] sm:$0xf0] }
 0x169   : > { %v1016_v56 = vadd.f32 %v1015_v47, %v982_v45  ;;  %v1035_v40 = vmax.f32 %v946_v5, 0.0  ;;  %v4968_v45 = vor.u32 %v6017_v34, %v4965_v35  ;;  %v5019_v47 = vld [vmem:[#allocation2 + $0x2b0] sm:$0xf]  ;;  %v6028_v34 = vld [vmem:[#allocation2 + $0x294] sm:$0xf0]  ;;  %v5008_v39 = vor.u32 %v6027_v37, %v5005_v38 }
 0x16a   : > { %v5020_v60 = vor.u32 %v6032_v49, %v5019_v47  ;;  %1623 = vmatpush.bf16.msrb.mxu2 %v4956_v25  ;;  %v5004_v36 = vor.u32 %v6028_v34, %v5003_v31  ;;  %v4941_v47 = vld [vmem:[#allocation2 + $0x218] sm:$0xf0]  ;;  %v4931_v49 = vld [vmem:[#allocation2 + $0x200] sm:$0xf]  ;;  %v4933_v25 = vld [vmem:[#allocation2 + $0x208] sm:$0xf0] }
 0x16b   : > { %v1038_v2 = vmax.f32 %v1016_v56, 0.0  ;;  %v6014_v56 = vld [vmem:[#allocation2 + $0x224] sm:$0xf0]  ;;  %1690 = vmatpush.bf16.msrb.mxu0 %v4968_v45  ;;  %v6011_v45 = vld [vmem:[#allocation2 + $0x214] sm:$0xf]  ;;  %v4932_v51 = vor.u32 %v6010_v50, %v4931_v49 }
 0x16c   : > { %v913_v6 = vpop.f32.mrf.mxu2  ;;  %1657 = vmatpush.bf16.msrb.mxu3 %v5020_v60 }
 0x16d   : > { %v914_v12 = vadd.f32 %v913_v6, %v6744_v22  ;;  %v947_v15 = vpop.f32.mrf.mxu3  ;;  %v1050_v16 = vpack.c.bf16 %v1038_v2, %v1036_v1  ;;  %v4948_v1 = vor.u32 %v6014_v56, %v4947_v54  ;;  %v5024_v2 = vor.u32 %v6031_v57, %v5021_v58 }
 0x16e   : > { %v984_v23 = vpop.f32.mrf.mxu0 }
 0x16f   : > { %v948_v29 = vadd.f32 %v947_v15, %v914_v12  ;;  %v1018_v30 = vpop.f32.mrf.mxu1  ;;  %1310 = vmatmul.bf16.gmra.mxu3 %v1050_v16  ;;  %1378 = vmatmul.bf16.gmra.mxu1 %v1050_v16  ;;  %v985_v48 = vadd.f32 %v984_v23, %v6741_v17  ;;  %v5013_v23 = vld [vmem:[#allocation2 + $0x2a8] sm:$0xf0] }
 0x170   : > { %1691 = vmatpush.bf16.msrb.mxu0 %v4960_v61  ;;  %1624 = vmatpush.bf16.msrb.mxu2 %v4948_v1 }
 0x171   : > { %v1037_v41 = vmax.f32 %v948_v29, 0.0  ;;  %v1019_v62 = vadd.f32 %v1018_v30, %v985_v48  ;;  %1725 = vmatpush.bf16.msrb.mxu1 %v5024_v2  ;;  %1658 = vmatpush.bf16.msrb.mxu3 %v5012_v21  ;;  %v4952_v29 = vor.u32 %v6013_v26, %v4949_v27  ;;  %v6012_v30 = vld [vmem:[#allocation2 + $0x214] sm:$0xf0]  ;;  %v5000_v48 = vor.u32 %v6025_v42, %v4997_v44 }
 0x172   : > { %v4940_v35 = vor.u32 %v6012_v30, %v4939_v28 }
 0x173   : > { %v1049_v24 = vpack.c.bf16 %v1037_v41, %v1035_v40  ;;  %v1040_v5 = vmax.f32 %v1019_v62, 0.0  ;;  %v4995_v40 = vld [vmem:[#allocation2 + $0x280] sm:$0xf]  ;;  %v6026_v41 = vld [vmem:[#allocation2 + $0x284] sm:$0xf0] }
 0x174   : > { %v916_v52 = vpop.f32.mrf.mxu2  ;;  %1692 = vmatpush.bf16.msrb.mxu0 %v4952_v29  ;;  %1625 = vmatpush.bf16.msrb.mxu2 %v4940_v35  ;;  %v4996_v43 = vor.u32 %v6026_v41, %v4995_v40 }
 0x175   : > { %v950_v55 = vpop.f32.mrf.mxu3  ;;  %1276 = vmatmul.bf16.gmra.mxu2 %v1049_v24  ;;  %1344 = vmatmul.bf16.gmra.mxu0 %v1049_v24  ;;  %v917_v3 = vadd.f32 %v916_v52, %v6744_v22  ;;  %v4944_v24 = vor.u32 %v6011_v45, %v4941_v47  ;;  %v6009_v52 = vld [vmem:[#allocation2 + $0x204] sm:$0xf] }
 0x176   : > { %v986_v59 = vpop.f32.mrf.mxu0  ;;  %1659 = vmatpush.bf16.msrb.mxu3 %v5004_v36  ;;  %v4936_v53 = vor.u32 %v6009_v52, %v4933_v25 }
 0x177   : > { %v987_v63 = vadd.f32 %v986_v59, %v6741_v17  ;;  %v1020_v0 = vpop.f32.mrf.mxu1  ;;  %v951_v8 = vadd.f32 %v950_v55, %v917_v3  ;;  %v4799_v55 = vld [vmem:[%s7434_s4 + $0x2] ss:$8 sm:$0x3] }
 0x178   : > { %1693 = vmatpush.bf16.msrb.mxu0 %v4944_v24  ;;  %1626 = vmatpush.bf16.msrb.mxu2 %v4932_v51  ;;  %v6768_v58 = vperm.slane %v4799_v55, 1  ;;  %v6771_v62 = vperm.slane %v4799_v55, 0 }
 0x179   : > { %v1021_v4 = vadd.f32 %v1020_v0, %v987_v63  ;;  %v1039_v12 = vmax.f32 %v951_v8, 0.0 }
 0x17a   : > { %1660 = vmatpush.bf16.msrb.mxu3 %v4996_v43 }
 0x17b   : > { %v1042_v6 = vmax.f32 %v1021_v4, 0.0 }
 0x17c   : > { %v918_v7 = vpop.f32.mrf.mxu2  ;;  %1694 = vmatpush.bf16.msrb.mxu0 %v4936_v53 }
 0x17d   : > { %v919_v9 = vadd.f32 %v918_v7, %v6744_v22  ;;  %v1052_v10 = vpack.c.bf16 %v1042_v6, %v1040_v5  ;;  %v952_v17 = vpop.f32.mrf.mxu3  ;;  %v5016_v22 = vor.u32 %v6029_v18, %v5013_v23 }
 0x17f   : > { %v953_v11 = vadd.f32 %v952_v17, %v919_v9  ;;  %1315 = vmatmul.bf16.gmra.mxu3 %v1052_v10  ;;  %1383 = vmatmul.bf16.gmra.mxu1 %v1052_v10 }
 0x180   : > { %1726 = vmatpush.bf16.msrb.mxu1 %v5016_v22 }
 0x181   : > { %v1041_v15 = vmax.f32 %v953_v11, 0.0 }
 0x183   : > { %v1051_v16 = vpack.c.bf16 %v1041_v15, %v1039_v12 }
 0x184   : > { %1727 = vmatpush.bf16.msrb.mxu1 %v5008_v39 }
 0x185   : > { %1281 = vmatmul.bf16.gmra.mxu2 %v1051_v16  ;;  %1349 = vmatmul.bf16.gmra.mxu0 %v1051_v16 }
 0x188   : > { %1728 = vmatpush.bf16.msrb.mxu1 %v5000_v48 }
 0x1bc   : > { %v1364_v54 = vpop.f32.mrf.mxu1 }
 0x1c2   : > { %v1296_v56 = vpop.f32.mrf.mxu3  ;;  %v1330_v57 = vpop.f32.mrf.mxu0 }
 0x1c3   : > { %v1331_v60 = vadd.f32 %v1330_v57, %v6768_v58 }
 0x1c4   : > { %v1366_v59 = vpop.f32.mrf.mxu1 }
 0x1c5   : > { %v1365_v1 = vadd.f32 %v1364_v54, %v1331_v60 }
 0x1c7   : > { %v1390_v6 = vmax.f32 %v1365_v1, 0.0 }
 0x1c8   : > { %v1262_v61 = vpop.f32.mrf.mxu2 }
 0x1c9   : > { %v1263_v4 = vadd.f32 %v1262_v61, %v6771_v62 }
 0x1ca   : > { %v1298_v63 = vpop.f32.mrf.mxu3  ;;  %v1332_v0 = vpop.f32.mrf.mxu0 }
 0x1cb   : > { %v1333_v2 = vadd.f32 %v1332_v0, %v6768_v58  ;;  %v1297_v9 = vadd.f32 %v1296_v56, %v1263_v4 }
 0x1cc   : > { %v1369_v3 = vpop.f32.mrf.mxu1 }
 0x1cd   : > { %v1367_v5 = vadd.f32 %v1366_v59, %v1333_v2  ;;  %v1389_v19 = vmax.f32 %v1297_v9, 0.0  ;;  %v6056_v9 = vld [vmem:[#allocation2 + $0x374] sm:$0xf0] }
 0x1cf   : > { %v1392_v7 = vmax.f32 %v1367_v5, 0.0 }
 0x1d0   : > { %v1264_v8 = vpop.f32.mrf.mxu2 }
 0x1d1   : > { %v1410_v10 = vpack.c.bf16 %v1392_v7, %v1390_v6  ;;  %v1265_v17 = vadd.f32 %v1264_v8, %v6771_v62  ;;  %v5116_v8 = vld [vmem:[#allocation2 + $0x370] sm:$0xf] }
 0x1d2   : > { %v1301_v11 = vpop.f32.mrf.mxu3  ;;  %v1335_v12 = vpop.f32.mrf.mxu0 }
 0x1d3   : > { %v1299_v15 = vadd.f32 %v1298_v63, %v1265_v17  ;;  %1661 = vmatmul.bf16.vlgmr.msrb.gmra.mxu3 %v1410_v10  ;;  %1729 = vmatmul.bf16.vlgmr.msrb.gmra.mxu1 %v1410_v10  ;;  %v1336_v18 = vadd.f32 %v1335_v12, %v6768_v58  ;;  %v5180_v10 = vld [vmem:[#allocation2 + $0x3f0] sm:$0xf]  ;;  %v6072_v12 = vld [vmem:[#allocation2 + $0x3f4] sm:$0xf0] }
 0x1d4   : > { %v1371_v16 = vpop.f32.mrf.mxu1 }
 0x1d5   : > { %v1391_v20 = vmax.f32 %v1299_v15, 0.0  ;;  %v1370_v28 = vadd.f32 %v1369_v3, %v1336_v18  ;;  %v5108_v15 = vld [vmem:[#allocation2 + $0x360] sm:$0xf] }
 0x1d6   : > { %v5172_v18 = vld [vmem:[#allocation2 + $0x3e0] sm:$0xf] }
 0x1d7   : > { %v1409_v21 = vpack.c.bf16 %v1391_v20, %v1389_v19  ;;  %v1394_v34 = vmax.f32 %v1370_v28, 0.0  ;;  %v5100_v28 = vld [vmem:[#allocation2 + $0x350] sm:$0xf] }
 0x1d8   : > { %v1267_v23 = vpop.f32.mrf.mxu2 }
 0x1d9   : > { %1627 = vmatmul.bf16.vlgmr.msrb.gmra.mxu2 %v1409_v21  ;;  %1695 = vmatmul.bf16.vlgmr.msrb.gmra.mxu0 %v1409_v21  ;;  %v1268_v30 = vadd.f32 %v1267_v23, %v6771_v62  ;;  %v5181_v21 = vor.u32 %v6072_v12, %v5180_v10  ;;  %v6070_v23 = vld [vmem:[#allocation2 + $0x3e4] sm:$0xf0]  ;;  %v6049_v10 = vld [vmem:[#allocation2 + $0x344] sm:$0xf] }
 0x1da   : > { %v1303_v26 = vpop.f32.mrf.mxu3  ;;  %v1337_v27 = vpop.f32.mrf.mxu0 }
 0x1db   : > { %v1338_v22 = vadd.f32 %v1337_v27, %v6768_v58  ;;  %v1302_v37 = vadd.f32 %v1301_v11, %v1268_v30  ;;  %v5117_v11 = vor.u32 %v6056_v9, %v5116_v8  ;;  %2019 = vmatpush.bf16.msra.mxu3 %v5181_v21 }
 0x1dc   : > { %v1374_v29 = vpop.f32.mrf.mxu1 }
 0x1dd   : > { %v1372_v31 = vadd.f32 %v1371_v16, %v1338_v22  ;;  %v1393_v44 = vmax.f32 %v1302_v37, 0.0  ;;  %v6054_v16 = vld [vmem:[#allocation2 + $0x364] sm:$0xf0]  ;;  %1985 = vmatpush.bf16.msra.mxu2 %v5117_v11  ;;  %v6055_v22 = vld [vmem:[#allocation2 + $0x374] sm:$0xf] }
 0x1de   : > { %v5109_v27 = vor.u32 %v6054_v16, %v5108_v15  ;;  %v6068_v37 = vld [vmem:[#allocation2 + $0x3d4] sm:$0xf0] }
 0x1df   : > { %v1396_v35 = vmax.f32 %v1372_v31, 0.0  ;;  %v5173_v31 = vor.u32 %v6070_v23, %v5172_v18 }
 0x1e0   : > { %v1269_v36 = vpop.f32.mrf.mxu2 }
 0x1e1   : > { %v1270_v38 = vadd.f32 %v1269_v36, %v6771_v62  ;;  %v1412_v39 = vpack.c.bf16 %v1396_v35, %v1394_v34  ;;  %v6052_v34 = vld [vmem:[#allocation2 + $0x354] sm:$0xf0]  ;;  %v5164_v36 = vld [vmem:[#allocation2 + $0x3d0] sm:$0xf]  ;;  %1986 = vmatpush.bf16.msra.mxu2 %v5109_v27  ;;  %2020 = vmatpush.bf16.msra.mxu3 %v5173_v31  ;;  %v5076_v27 = vld [vmem:[#allocation2 + $0x320] sm:$0xf] }
 0x1e2   : > { %v1306_v40 = vpop.f32.mrf.mxu3  ;;  %v1340_v41 = vpop.f32.mrf.mxu0 }
 0x1e3   : > { %v1304_v42 = vadd.f32 %v1303_v26, %v1270_v38  ;;  %1666 = vmatmul.bf16.gmra.mxu3 %v1412_v39  ;;  %1734 = vmatmul.bf16.gmra.mxu1 %v1412_v39  ;;  %v1341_v47 = vadd.f32 %v1340_v41, %v6768_v58  ;;  %v6071_v39 = vld [vmem:[#allocation2 + $0x3f4] sm:$0xf] }
 0x1e4   : > { %v1376_v43 = vpop.f32.mrf.mxu1 }
 0x1e5   : > { %v1395_v45 = vmax.f32 %v1304_v42, 0.0  ;;  %v1375_v51 = vadd.f32 %v1374_v29, %v1341_v47  ;;  %v5118_v29 = vld [vmem:[#allocation2 + $0x378] sm:$0xf0] }
 0x1e6   : > { %v5121_v35 = vor.u32 %v6055_v22, %v5118_v29 }
 0x1e7   : > { %v1411_v48 = vpack.c.bf16 %v1395_v45, %v1393_v44  ;;  %v1398_v55 = vmax.f32 %v1375_v51, 0.0  ;;  %v6053_v44 = vld [vmem:[#allocation2 + $0x364] sm:$0xf] }
 0x1e8   : > { %v1272_v24 = vpop.f32.mrf.mxu2  ;;  %2053 = vmatpush.bf16.msra.mxu0 %v5121_v35 }
 0x1e9   : > { %1632 = vmatmul.bf16.gmra.mxu2 %v1411_v48  ;;  %1700 = vmatmul.bf16.gmra.mxu0 %v1411_v48  ;;  %v1273_v25 = vadd.f32 %v1272_v24, %v6771_v62  ;;  %v5101_v48 = vor.u32 %v6052_v34, %v5100_v28  ;;  %v5165_v24 = vor.u32 %v6068_v37, %v5164_v36  ;;  %v6046_v28 = vld [vmem:[#allocation2 + $0x324] sm:$0xf0] }
 0x1ea   : > { %v1308_v49 = vpop.f32.mrf.mxu3  ;;  %v1342_v50 = vpop.f32.mrf.mxu0  ;;  %v5077_v35 = vor.u32 %v6046_v28, %v5076_v27  ;;  %v6041_v28 = vld [vmem:[#allocation2 + $0x304] sm:$0xf] }
 0x1eb   : > { %v1343_v52 = vadd.f32 %v1342_v50, %v6768_v58  ;;  %v1307_v59 = vadd.f32 %v1306_v40, %v1273_v25  ;;  %v5182_v40 = vld [vmem:[#allocation2 + $0x3f8] sm:$0xf0]  ;;  %v5110_v50 = vld [vmem:[#allocation2 + $0x368] sm:$0xf0]  ;;  %v6050_v25 = vld [vmem:[#allocation2 + $0x344] sm:$0xf0]  ;;  %1987 = vmatpush.bf16.msra.mxu2 %v5101_v48  ;;  %2021 = vmatpush.bf16.msra.mxu3 %v5165_v24 }
 0x1ec   : > { %v1379_v54 = vpop.f32.mrf.mxu1  ;;  %v5140_v24 = vld [vmem:[#allocation2 + $0x3a0] sm:$0xf] }
 0x1ed   : > { %v1377_v53 = vadd.f32 %v1376_v43, %v1343_v52  ;;  %v1397_v2 = vmax.f32 %v1307_v59, 0.0  ;;  %v5185_v43 = vor.u32 %v6071_v39, %v5182_v40 }
 0x1ef   : > { %v1400_v56 = vmax.f32 %v1377_v53, 0.0  ;;  %2087 = vmatpush.bf16.msra.mxu1 %v5185_v43  ;;  %v5113_v53 = vor.u32 %v6053_v44, %v5110_v50  ;;  %v6065_v50 = vld [vmem:[#allocation2 + $0x3c4] sm:$0xf] }
 0x1f0   : > { %v1274_v57 = vpop.f32.mrf.mxu2 }
 0x1f1   : > { %v1275_v60 = vadd.f32 %v1274_v57, %v6771_v62  ;;  %v1414_v61 = vpack.c.bf16 %v1400_v56, %v1398_v55  ;;  %v5174_v55 = vld [vmem:[#allocation2 + $0x3e8] sm:$0xf0]  ;;  %2054 = vmatpush.bf16.msra.mxu0 %v5113_v53  ;;  %v6063_v53 = vld [vmem:[#allocation2 + $0x3b4] sm:$0xf] }
 0x1f2   : > { %v1345_v63 = vpop.f32.mrf.mxu0  ;;  %v1311_v1 = vpop.f32.mrf.mxu3 }
 0x1f3   : > { %v1309_v0 = vadd.f32 %v1308_v49, %v1275_v60  ;;  %1671 = vmatmul.bf16.gmra.mxu3 %v1414_v61  ;;  %1739 = vmatmul.bf16.gmra.mxu1 %v1414_v61  ;;  %v1346_v4 = vadd.f32 %v1345_v63, %v6768_v58  ;;  %v5092_v49 = vld [vmem:[#allocation2 + $0x340] sm:$0xf]  ;;  %v6051_v60 = vld [vmem:[#allocation2 + $0x354] sm:$0xf]  ;;  %v5102_v61 = vld [vmem:[#allocation2 + $0x358] sm:$0xf0] }
 0x1f4   : > { %v1381_v6 = vpop.f32.mrf.mxu1 }
 0x1f5   : > { %v1399_v3 = vmax.f32 %v1309_v0, 0.0  ;;  %v1380_v19 = vadd.f32 %v1379_v54, %v1346_v4  ;;  %v6069_v54 = vld [vmem:[#allocation2 + $0x3e4] sm:$0xf]  ;;  %v5156_v0 = vld [vmem:[#allocation2 + $0x3c0] sm:$0xf] }
 0x1f6   : > { %v5177_v59 = vor.u32 %v6069_v54, %v5174_v55  ;;  %v5084_v4 = vld [vmem:[#allocation2 + $0x330] sm:$0xf]  ;;  %v6061_v55 = vld [vmem:[#allocation2 + $0x3a4] sm:$0xf] }
 0x1f7   : > { %v1413_v5 = vpack.c.bf16 %v1399_v3, %v1397_v2  ;;  %v1402_v41 = vmax.f32 %v1380_v19, 0.0  ;;  %v6067_v2 = vld [vmem:[#allocation2 + $0x3d4] sm:$0xf]  ;;  %v5093_v3 = vor.u32 %v6050_v25, %v5092_v49  ;;  %v5148_v19 = vld [vmem:[#allocation2 + $0x3b0] sm:$0xf] }
 0x1f8   : > { %v1277_v7 = vpop.f32.mrf.mxu2  ;;  %2088 = vmatpush.bf16.msra.mxu1 %v5177_v59  ;;  %v6062_v49 = vld [vmem:[#allocation2 + $0x3a4] sm:$0xf0]  ;;  %v6044_v59 = vld [vmem:[#allocation2 + $0x314] sm:$0xf0] }
 0x1f9   : > { %1637 = vmatmul.bf16.gmra.mxu2 %v1413_v5  ;;  %1705 = vmatmul.bf16.gmra.mxu0 %v1413_v5  ;;  %v1278_v26 = vadd.f32 %v1277_v7, %v6771_v62  ;;  %v6048_v5 = vld [vmem:[#allocation2 + $0x334] sm:$0xf0]  ;;  %v5166_v7 = vld [vmem:[#allocation2 + $0x3d8] sm:$0xf0] }
 0x1fa   : > { %v1347_v17 = vpop.f32.mrf.mxu0  ;;  %v1313_v38 = vpop.f32.mrf.mxu3  ;;  %v5169_v12 = vor.u32 %v6067_v2, %v5166_v7  ;;  %1988 = vmatpush.bf16.msra.mxu2 %v5093_v3  ;;  %v5085_v23 = vor.u32 %v6048_v5, %v5084_v4  ;;  %v6060_v2 = vld [vmem:[#allocation2 + $0x394] sm:$0xf0]  ;;  %v6059_v5 = vld [vmem:[#allocation2 + $0x394] sm:$0xf] }
 0x1fb   : > { %v1348_v20 = vadd.f32 %v1347_v17, %v6768_v58  ;;  %v1312_v45 = vadd.f32 %v1311_v1, %v1278_v26  ;;  %v6066_v1 = vld [vmem:[#allocation2 + $0x3c4] sm:$0xf0]  ;;  %v5094_v17 = vld [vmem:[#allocation2 + $0x348] sm:$0xf0] }
 0x1fc   : > { %v1384_v56 = vpop.f32.mrf.mxu1  ;;  %v5157_v11 = vor.u32 %v6066_v1, %v5156_v0  ;;  %v5097_v26 = vor.u32 %v6049_v10, %v5094_v17  ;;  %2089 = vmatpush.bf16.msra.mxu1 %v5169_v12  ;;  %v5086_v0 = vld [vmem:[#allocation2 + $0x338] sm:$0xf0]  ;;  %v5132_v1 = vld [vmem:[#allocation2 + $0x390] sm:$0xf]  ;;  %v5124_v17 = vld [vmem:[#allocation2 + $0x380] sm:$0xf] }
 0x1fd   : > { %v1382_v30 = vadd.f32 %v1381_v6, %v1348_v20  ;;  %v5105_v6 = vor.u32 %v6051_v60, %v5102_v61  ;;  %v1401_v8 = vmax.f32 %v1312_v45, 0.0  ;;  %v6064_v20 = vld [vmem:[#allocation2 + $0x3b4] sm:$0xf0]  ;;  %v6047_v60 = vld [vmem:[#allocation2 + $0x334] sm:$0xf]  ;;  %v5133_v4 = vor.u32 %v6060_v2, %v5132_v1 }
 0x1fe   : > { %2022 = vmatpush.bf16.msra.mxu3 %v5157_v11  ;;  %v5149_v29 = vor.u32 %v6064_v20, %v5148_v19  ;;  %1989 = vmatpush.bf16.msra.mxu2 %v5085_v23  ;;  %v5089_v3 = vor.u32 %v6047_v60, %v5086_v0  ;;  %v6058_v11 = vld [vmem:[#allocation2 + $0x384] sm:$0xf0]  ;;  %v6057_v12 = vld [vmem:[#allocation2 + $0x384] sm:$0xf]  ;;  %v6043_v20 = vld [vmem:[#allocation2 + $0x314] sm:$0xf] }
 0x1ff   : > { %v1404_v42 = vmax.f32 %v1382_v30, 0.0  ;;  %2055 = vmatpush.bf16.msra.mxu0 %v5105_v6  ;;  %v5134_v6 = vld [vmem:[#allocation2 + $0x398] sm:$0xf0]  ;;  %v6042_v23 = vld [vmem:[#allocation2 + $0x304] sm:$0xf0] }
 0x200   : > { %v1279_v47 = vpop.f32.mrf.mxu2  ;;  %v5137_v7 = vor.u32 %v6059_v5, %v5134_v6 }
 0x201   : > { %v1280_v51 = vadd.f32 %v1279_v47, %v6771_v62  ;;  %v1416_v52 = vpack.c.bf16 %v1404_v42, %v1402_v41 }
 0x202   : > { %v1350_v57 = vpop.f32.mrf.mxu0  ;;  %v1316_v21 = vpop.f32.mrf.mxu3  ;;  %2023 = vmatpush.bf16.msra.mxu3 %v5149_v29  ;;  %1990 = vmatpush.bf16.msra.mxu2 %v5077_v35 }
 0x203   : > { %v1314_v63 = vadd.f32 %v1313_v38, %v1280_v51  ;;  %1676 = vmatmul.bf16.gmra.mxu3 %v1416_v52  ;;  %1744 = vmatmul.bf16.gmra.mxu1 %v1416_v52  ;;  %v1351_v15 = vadd.f32 %v1350_v57, %v6768_v58  ;;  %v5141_v51 = vor.u32 %v6062_v49, %v5140_v24  ;;  %v5158_v52 = vld [vmem:[#allocation2 + $0x3c8] sm:$0xf0]  ;;  %v5068_v57 = vld [vmem:[#allocation2 + $0x310] sm:$0xf] }
 0x204   : > { %v1386_v34 = vpop.f32.mrf.mxu1  ;;  %2056 = vmatpush.bf16.msra.mxu0 %v5097_v26  ;;  %v5161_v25 = vor.u32 %v6065_v50, %v5158_v52 }
 0x205   : > { %v1403_v9 = vmax.f32 %v1314_v63, 0.0  ;;  %v1385_v30 = vadd.f32 %v1384_v56, %v1351_v15  ;;  %v5142_v56 = vld [vmem:[#allocation2 + $0x3a8] sm:$0xf0]  ;;  %v5069_v63 = vor.u32 %v6044_v59, %v5068_v57  ;;  %v5125_v15 = vor.u32 %v6058_v11, %v5124_v17  ;;  %v6109_v57 = vld [vmem:[%s7432_s2 + $0x64] sm:$0xf] }
 0x206   : > { %2024 = vmatpush.bf16.msra.mxu3 %v5141_v51  ;;  %2090 = vmatpush.bf16.msra.mxu1 %v5161_v25  ;;  %v5145_v61 = vor.u32 %v6061_v55, %v5142_v56  ;;  %v5214_v59 = vld [vmem:[%s7432_s2 + $0x68] sm:$0xf0] }
 0x207   : > { %v1415_v16 = vpack.c.bf16 %v1403_v9, %v1401_v8  ;;  %v1406_v38 = vmax.f32 %v1385_v30, 0.0  ;;  %1991 = vmatpush.bf16.msra.mxu2 %v5069_v63  ;;  %v6045_v8 = vld [vmem:[#allocation2 + $0x324] sm:$0xf]  ;;  %v5078_v9 = vld [vmem:[#allocation2 + $0x328] sm:$0xf0]  ;;  %v5217_v0 = vor.u32 %v6109_v57, %v5214_v59 }
 0x208   : > { %v1282_v18 = vpop.f32.mrf.mxu2  ;;  %2057 = vmatpush.bf16.msra.mxu0 %v5089_v3  ;;  %v5081_v10 = vor.u32 %v6045_v8, %v5078_v9 }
 0x209   : > { %1642 = vmatmul.bf16.gmra.mxu2 %v1415_v16  ;;  %1710 = vmatmul.bf16.gmra.mxu0 %v1415_v16  ;;  %v1283_v36 = vadd.f32 %v1282_v18, %v6771_v62  ;;  %v5126_v16 = vld [vmem:[#allocation2 + $0x388] sm:$0xf0]  ;;  %v5060_v18 = vld [vmem:[#allocation2 + $0x300] sm:$0xf] }
 0x20a   : > { %v1352_v22 = vpop.f32.mrf.mxu0  ;;  %v1318_v44 = vpop.f32.mrf.mxu3  ;;  %2025 = vmatpush.bf16.msra.mxu3 %v5133_v4  ;;  %v5129_v19 = vor.u32 %v6057_v12, %v5126_v16  ;;  %v5061_v27 = vor.u32 %v6042_v23, %v5060_v18 }
 0x20b   : > { %v1353_v31 = vadd.f32 %v1352_v22, %v6768_v58  ;;  %v1317_v41 = vadd.f32 %v1316_v21, %v1283_v36  ;;  %v5070_v21 = vld [vmem:[#allocation2 + $0x318] sm:$0xf0]  ;;  %v5062_v22 = vld [vmem:[#allocation2 + $0x308] sm:$0xf0]  ;;  %v6111_v36 = vld [vmem:[%s7432_s2 + $0x74] sm:$0xf] }
 0x20c   : > { %2058 = vmatpush.bf16.msra.mxu0 %v5081_v10  ;;  %v5073_v26 = vor.u32 %v6043_v20, %v5070_v21  ;;  %1992 = vmatpush.bf16.msra.mxu2 %v5061_v27  ;;  %v5065_v29 = vor.u32 %v6041_v28, %v5062_v22 }
 0x20d   : > { %v1387_v37 = vadd.f32 %v1386_v34, %v1353_v31  ;;  %v1405_v58 = vmax.f32 %v1317_v41, 0.0  ;;  %v5220_v31 = vld [vmem:[%s7432_s2 + $0x70] sm:$0xf]  ;;  %v6112_v34 = vld [vmem:[%s7432_s2 + $0x74] sm:$0xf0] }
 0x20e   : > { %2026 = vmatpush.bf16.msra.mxu3 %v5125_v15  ;;  %v5221_v35 = vor.u32 %v6112_v34, %v5220_v31 }
 0x20f   : > { %v1408_v39 = vmax.f32 %v1387_v37, 0.0  ;;  %v5222_v37 = vld [vmem:[%s7432_s2 + $0x78] sm:$0xf0] }
 0x210   : > { %v1284_v40 = vpop.f32.mrf.mxu2  ;;  %2059 = vmatpush.bf16.msra.mxu0 %v5073_v26  ;;  %2237 = vmatpush.bf16.msrb.mxu2 %v5221_v35  ;;  %v5204_v35 = vld [vmem:[%s7432_s2 + $0x50] sm:$0xf] }
 0x211   : > { %v1285_v42 = vadd.f32 %v1284_v40, %v6771_v62  ;;  %v1418_v43 = vpack.c.bf16 %v1408_v39, %v1406_v38  ;;  %v5150_v62 = vld [vmem:[#allocation2 + $0x3b8] sm:$0xf0]  ;;  %v4928_v38 = vld [vmem:[%s7434_s4 + $0x3] ss:$8 sm:$0x3]  ;;  %v5225_v39 = vor.u32 %v6111_v36, %v5222_v37 }
 0x212   : > { %v5153_v54 = vor.u32 %v6063_v53, %v5150_v62  ;;  %v5212_v62 = vld [vmem:[%s7432_s2 + $0x60] sm:$0xf]  ;;  %v6108_v36 = vld [vmem:[%s7432_s2 + $0x54] sm:$0xf0] }
 0x213   : > { %v1319_v45 = vadd.f32 %v1318_v44, %v1285_v42  ;;  %1681 = vmatmul.bf16.gmra.mxu3 %v1418_v43  ;;  %1749 = vmatmul.bf16.gmra.mxu1 %v1418_v43  ;;  %v6807_v42 = vperm.slane %v4928_v38, 1  ;;  %v5205_v37 = vor.u32 %v6108_v36, %v5204_v35  ;;  %v6087_v36 = vld [vmem:[#allocation2 + $0x474] sm:$0xf] }
 0x214   : > { %2091 = vmatpush.bf16.msra.mxu1 %v5153_v54  ;;  %2060 = vmatpush.bf16.msra.mxu0 %v5065_v29  ;;  %v6110_v54 = vld [vmem:[%s7432_s2 + $0x64] sm:$0xf0] }
 0x215   : > { %v1407_v47 = vmax.f32 %v1319_v45, 0.0  ;;  %2271 = vmatpush.bf16.msrb.mxu3 %v5225_v39  ;;  %v5213_v56 = vor.u32 %v6110_v54, %v5212_v62 }
 0x217   : > { %v1417_v48 = vpack.c.bf16 %v1407_v47, %v1405_v58  ;;  %v6810_v58 = vperm.slane %v4928_v38, 0  ;;  %2238 = vmatpush.bf16.msrb.mxu2 %v5213_v56 }
 0x218   : > { %2092 = vmatpush.bf16.msra.mxu1 %v5145_v61 }
 0x219   : > { %1647 = vmatmul.bf16.gmra.mxu2 %v1417_v48  ;;  %1715 = vmatmul.bf16.gmra.mxu0 %v1417_v48 }
 0x21a   : > { %2272 = vmatpush.bf16.msrb.mxu3 %v5217_v0  ;;  %v6106_v0 = vld [vmem:[%s7432_s2 + $0x44] sm:$0xf0] }
 0x21b   : > { %2239 = vmatpush.bf16.msrb.mxu2 %v5205_v37  ;;  %v5296_v37 = vld [vmem:[#allocation2 + $0x478] sm:$0xf0] }
 0x21c   : > { %2093 = vmatpush.bf16.msra.mxu1 %v5137_v7 }
 0x220   : > { %2094 = vmatpush.bf16.msra.mxu1 %v5129_v19 }
 0x250   : > { %v1730_v30 = vpop.f32.mrf.mxu1 }
 0x256   : > { %v1662_v40 = vpop.f32.mrf.mxu3  ;;  %v1696_v41 = vpop.f32.mrf.mxu0 }
 0x257   : > { %v1697_v44 = vadd.f32 %v1696_v41, %v6807_v42  ;;  %v5206_v41 = vld [vmem:[%s7432_s2 + $0x58] sm:$0xf0] }
 0x258   : > { %v1732_v43 = vpop.f32.mrf.mxu1 }
 0x259   : > { %v1731_v24 = vadd.f32 %v1730_v30, %v1697_v44 }
 0x25b   : > { %v1756_v25 = vmax.f32 %v1731_v24, 0.0 }
 0x25c   : > { %v1628_v45 = vpop.f32.mrf.mxu2 }
 0x25d   : > { %v1629_v51 = vadd.f32 %v1628_v45, %v6810_v58 }
 0x25e   : > { %v1664_v47 = vpop.f32.mrf.mxu3  ;;  %v1698_v48 = vpop.f32.mrf.mxu0 }
 0x25f   : > { %v1699_v49 = vadd.f32 %v1698_v48, %v6807_v42  ;;  %v1663_v60 = vadd.f32 %v1662_v40, %v1629_v51  ;;  %v6107_v40 = vld [vmem:[%s7432_s2 + $0x54] sm:$0xf] }
 0x260   : > { %v1735_v50 = vpop.f32.mrf.mxu1  ;;  %v5209_v44 = vor.u32 %v6107_v40, %v5206_v41  ;;  %v5299_v40 = vor.u32 %v6087_v36, %v5296_v37  ;;  %v5360_v41 = vld [vmem:[#allocation2 + $0x4f8] sm:$0xf0]  ;;  %v6082_v37 = vld [vmem:[#allocation2 + $0x444] sm:$0xf0] }
 0x261   : > { %v1733_v52 = vadd.f32 %v1732_v43, %v1699_v49  ;;  %v1755_v5 = vmax.f32 %v1663_v60, 0.0 }
 0x262   : > { %2273 = vmatpush.bf16.msrb.mxu3 %v5209_v44  ;;  %v6088_v44 = vld [vmem:[#allocation2 + $0x474] sm:$0xf0] }
 0x263   : > { %v1758_v53 = vmax.f32 %v1733_v52, 0.0 }
 0x264   : > { %v1630_v55 = vpop.f32.mrf.mxu2 }
 0x265   : > { %v1776_v61 = vpack.c.bf16 %v1758_v53, %v1756_v25  ;;  %v1631_v63 = vadd.f32 %v1630_v55, %v6810_v58 }
 0x266   : > { %v1667_v1 = vpop.f32.mrf.mxu3  ;;  %v1701_v2 = vpop.f32.mrf.mxu0 }
 0x267   : > { %v1665_v3 = vadd.f32 %v1664_v47, %v1631_v63  ;;  %2027 = vmatmul.bf16.vlgmr.msra.gmra.mxu3 %v1776_v61  ;;  %2095 = vmatmul.bf16.vlgmr.msra.gmra.mxu1 %v1776_v61  ;;  %v1702_v8 = vadd.f32 %v1701_v2, %v6807_v42  ;;  %v5196_v63 = vld [vmem:[%s7432_s2 + $0x40] sm:$0xf]  ;;  %v6105_v2 = vld [vmem:[%s7432_s2 + $0x44] sm:$0xf] }
 0x268   : > { %v1737_v4 = vpop.f32.mrf.mxu1 }
 0x269   : > { %v1757_v6 = vmax.f32 %v1665_v3, 0.0  ;;  %v1736_v11 = vadd.f32 %v1735_v50, %v1702_v8  ;;  %v5198_v3 = vld [vmem:[%s7432_s2 + $0x48] sm:$0xf0] }
 0x26b   : > { %v1775_v7 = vpack.c.bf16 %v1757_v6, %v1755_v5  ;;  %v1760_v20 = vmax.f32 %v1736_v11, 0.0  ;;  %v5201_v6 = vor.u32 %v6105_v2, %v5198_v3  ;;  %v5352_v2 = vld [vmem:[#allocation2 + $0x4e8] sm:$0xf0]  ;;  %v5286_v3 = vld [vmem:[#allocation2 + $0x460] sm:$0xf] }
 0x26c   : > { %v1633_v9 = vpop.f32.mrf.mxu2 }
 0x26d   : > { %1993 = vmatmul.bf16.vlgmr.msra.gmra.mxu2 %v1775_v7  ;;  %2061 = vmatmul.bf16.vlgmr.msra.gmra.mxu0 %v1775_v7  ;;  %v1634_v16 = vadd.f32 %v1633_v9, %v6810_v58 }
 0x26e   : > { %v1669_v10 = vpop.f32.mrf.mxu3  ;;  %v1703_v17 = vpop.f32.mrf.mxu0  ;;  %2274 = vmatpush.bf16.msrb.mxu3 %v5201_v6 }
 0x26f   : > { %v1704_v12 = vadd.f32 %v1703_v17, %v6807_v42  ;;  %v1668_v23 = vadd.f32 %v1667_v1, %v1634_v16  ;;  %v5197_v1 = vor.u32 %v6106_v0, %v5196_v63  ;;  %v5288_v63 = vld [vmem:[#allocation2 + $0x468] sm:$0xf0]  ;;  %v6101_v0 = vld [vmem:[#allocation2 + $0x4e4] sm:$0xf] }
 0x270   : > { %v1740_v15 = vpop.f32.mrf.mxu1 }
 0x271   : > { %v1738_v19 = vadd.f32 %v1737_v4, %v1704_v12  ;;  %v1759_v31 = vmax.f32 %v1668_v23, 0.0  ;;  %2240 = vmatpush.bf16.msrb.mxu2 %v5197_v1 }
 0x273   : > { %v1762_v21 = vmax.f32 %v1738_v19, 0.0 }
 0x274   : > { %v1635_v18 = vpop.f32.mrf.mxu2 }
 0x275   : > { %v1636_v26 = vadd.f32 %v1635_v18, %v6810_v58  ;;  %v1778_v27 = vpack.c.bf16 %v1762_v21, %v1760_v20  ;;  %2529 = vmatpush.bf16.msra.mxu2 %v5299_v40 }
 0x276   : > { %v1672_v28 = vpop.f32.mrf.mxu3  ;;  %v1706_v22 = vpop.f32.mrf.mxu0 }
 0x277   : > { %v1670_v29 = vadd.f32 %v1669_v10, %v1636_v26  ;;  %2032 = vmatmul.bf16.gmra.mxu3 %v1778_v27  ;;  %2100 = vmatmul.bf16.gmra.mxu1 %v1778_v27  ;;  %v1707_v38 = vadd.f32 %v1706_v22, %v6807_v42 }
 0x278   : > { %v1742_v30 = vpop.f32.mrf.mxu1 }
 0x279   : > { %v1761_v34 = vmax.f32 %v1670_v29, 0.0  ;;  %v1741_v48 = vadd.f32 %v1740_v15, %v1707_v38  ;;  %v6103_v38 = vld [vmem:[#allocation2 + $0x4f4] sm:$0xf] }
 0x27b   : > { %v1777_v39 = vpack.c.bf16 %v1761_v34, %v1759_v31  ;;  %v1764_v52 = vmax.f32 %v1741_v48, 0.0  ;;  %v5363_v48 = vor.u32 %v6103_v38, %v5360_v41  ;;  %v5334_v38 = vld [vmem:[#allocation2 + $0x4c0] sm:$0xf] }
 0x27c   : > { %v1638_v43 = vpop.f32.mrf.mxu2 }
 0x27d   : > { %1998 = vmatmul.bf16.gmra.mxu2 %v1777_v39  ;;  %2066 = vmatmul.bf16.gmra.mxu0 %v1777_v39  ;;  %v1639_v49 = vadd.f32 %v1638_v43, %v6810_v58  ;;  %v5294_v43 = vld [vmem:[#allocation2 + $0x470] sm:$0xf] }
 0x27e   : > { %v1674_v45 = vpop.f32.mrf.mxu3  ;;  %v1708_v47 = vpop.f32.mrf.mxu0  ;;  %2563 = vmatpush.bf16.msra.mxu3 %v5363_v48  ;;  %v5262_v48 = vld [vmem:[#allocation2 + $0x430] sm:$0xf] }
 0x27f   : > { %v1709_v24 = vadd.f32 %v1708_v47, %v6807_v42  ;;  %v1673_v62 = vadd.f32 %v1672_v28, %v1639_v49  ;;  %v5358_v49 = vld [vmem:[#allocation2 + $0x4f0] sm:$0xf] }
 0x280   : > { %v1745_v51 = vpop.f32.mrf.mxu1 }
 0x281   : > { %v1743_v50 = vadd.f32 %v1742_v30, %v1709_v24  ;;  %v1763_v60 = vmax.f32 %v1673_v62, 0.0  ;;  %v5295_v24 = vor.u32 %v6088_v44, %v5294_v43  ;;  %v6079_v43 = vld [vmem:[#allocation2 + $0x434] sm:$0xf]  ;;  %v5264_v44 = vld [vmem:[#allocation2 + $0x438] sm:$0xf0] }
 0x283   : > { %v1766_v25 = vmax.f32 %v1743_v50, 0.0  ;;  %v6104_v50 = vld [vmem:[#allocation2 + $0x4f4] sm:$0xf0]  ;;  %2461 = vmatpush.bf16.msrb.mxu0 %v5295_v24 }
 0x284   : > { %v1640_v53 = vpop.f32.mrf.mxu2 }
 0x285   : > { %v1641_v54 = vadd.f32 %v1640_v53, %v6810_v58  ;;  %v1780_v55 = vpack.c.bf16 %v1766_v25, %v1764_v52  ;;  %v5359_v52 = vor.u32 %v6104_v50, %v5358_v49  ;;  %v6080_v49 = vld [vmem:[#allocation2 + $0x434] sm:$0xf0] }
 0x286   : > { %v1711_v56 = vpop.f32.mrf.mxu0  ;;  %v1677_v59 = vpop.f32.mrf.mxu3  ;;  %v5263_v50 = vor.u32 %v6080_v49, %v5262_v48 }
 0x287   : > { %v1675_v57 = vadd.f32 %v1674_v45, %v1641_v54  ;;  %2037 = vmatmul.bf16.gmra.mxu3 %v1780_v55  ;;  %2105 = vmatmul.bf16.gmra.mxu1 %v1780_v55  ;;  %v1712_v4 = vadd.f32 %v1711_v56, %v6807_v42 }
 0x288   : > { %v1747_v7 = vpop.f32.mrf.mxu1  ;;  %2495 = vmatpush.bf16.msrb.mxu1 %v5359_v52  ;;  %v6096_v52 = vld [vmem:[#allocation2 + $0x4b4] sm:$0xf0] }
 0x289   : > { %v1765_v61 = vmax.f32 %v1675_v57, 0.0  ;;  %v1746_v10 = vadd.f32 %v1745_v51, %v1712_v4  ;;  %v6086_v4 = vld [vmem:[#allocation2 + $0x464] sm:$0xf0] }
 0x28b   : > { %v1779_v5 = vpack.c.bf16 %v1765_v61, %v1763_v60  ;;  %v1768_v16 = vmax.f32 %v1746_v10, 0.0  ;;  %v6085_v61 = vld [vmem:[#allocation2 + $0x464] sm:$0xf]  ;;  %v6102_v10 = vld [vmem:[#allocation2 + $0x4e4] sm:$0xf0] }
 0x28c   : > { %v1643_v8 = vpop.f32.mrf.mxu2  ;;  %v5291_v1 = vor.u32 %v6085_v61, %v5288_v63  ;;  %v5254_v61 = vld [vmem:[#allocation2 + $0x420] sm:$0xf]  ;;  %v6078_v63 = vld [vmem:[#allocation2 + $0x424] sm:$0xf0] }
 0x28d   : > { %2003 = vmatmul.bf16.gmra.mxu2 %v1779_v5  ;;  %2071 = vmatmul.bf16.gmra.mxu0 %v1779_v5  ;;  %v1644_v11 = vadd.f32 %v1643_v8, %v6810_v58  ;;  %v5287_v8 = vor.u32 %v6086_v4, %v5286_v3  ;;  %v6090_v4 = vld [vmem:[#allocation2 + $0x484] sm:$0xf0] }
 0x28e   : > { %v1713_v9 = vpop.f32.mrf.mxu0  ;;  %v1679_v15 = vpop.f32.mrf.mxu3  ;;  %2530 = vmatpush.bf16.msra.mxu2 %v5291_v1  ;;  %v5320_v1 = vld [vmem:[#allocation2 + $0x4a8] sm:$0xf0] }
 0x28f   : > { %v1714_v17 = vadd.f32 %v1713_v9, %v6807_v42  ;;  %v1678_v21 = vadd.f32 %v1677_v59, %v1644_v11  ;;  %2462 = vmatpush.bf16.msrb.mxu0 %v5287_v8 }
 0x290   : > { %v1750_v26 = vpop.f32.mrf.mxu1 }
 0x291   : > { %v1748_v12 = vadd.f32 %v1747_v7, %v1714_v17  ;;  %v1767_v22 = vmax.f32 %v1678_v21, 0.0  ;;  %v5355_v7 = vor.u32 %v6101_v0, %v5352_v2  ;;  %v6083_v17 = vld [vmem:[#allocation2 + $0x454] sm:$0xf]  ;;  %v5278_v21 = vld [vmem:[#allocation2 + $0x450] sm:$0xf]  ;;  %v5255_v2 = vor.u32 %v6078_v63, %v5254_v61 }
 0x292   : > { %v6093_v0 = vld [vmem:[#allocation2 + $0x4a4] sm:$0xf] }
 0x293   : > { %v1770_v19 = vmax.f32 %v1748_v12, 0.0  ;;  %2564 = vmatpush.bf16.msra.mxu3 %v5355_v7  ;;  %v5280_v12 = vld [vmem:[#allocation2 + $0x458] sm:$0xf0]  ;;  %v5323_v3 = vor.u32 %v6093_v0, %v5320_v1  ;;  %v6076_v7 = vld [vmem:[#allocation2 + $0x414] sm:$0xf0] }
 0x294   : > { %v1645_v20 = vpop.f32.mrf.mxu2 }
 0x295   : > { %v1646_v18 = vadd.f32 %v1645_v20, %v6810_v58  ;;  %v1782_v23 = vpack.c.bf16 %v1770_v19, %v1768_v16  ;;  %v5344_v16 = vld [vmem:[#allocation2 + $0x4d8] sm:$0xf0]  ;;  %v5283_v19 = vor.u32 %v6083_v17, %v5280_v12  ;;  %v6091_v17 = vld [vmem:[#allocation2 + $0x494] sm:$0xf] }
 0x296   : > { %v1716_v27 = vpop.f32.mrf.mxu0  ;;  %v1682_v34 = vpop.f32.mrf.mxu3  ;;  %v6075_v12 = vld [vmem:[#allocation2 + $0x414] sm:$0xf] }
 0x297   : > { %v1680_v28 = vadd.f32 %v1679_v15, %v1646_v18  ;;  %2042 = vmatmul.bf16.gmra.mxu3 %v1782_v23  ;;  %2110 = vmatmul.bf16.gmra.mxu1 %v1782_v23  ;;  %v1717_v30 = vadd.f32 %v1716_v27, %v6807_v42  ;;  %v6099_v15 = vld [vmem:[#allocation2 + $0x4d4] sm:$0xf]  ;;  %v6084_v18 = vld [vmem:[#allocation2 + $0x454] sm:$0xf0] }
 0x298   : > { %v1752_v51 = vpop.f32.mrf.mxu1  ;;  %v5347_v20 = vor.u32 %v6099_v15, %v5344_v16  ;;  %v5279_v23 = vor.u32 %v6084_v18, %v5278_v21  ;;  %2531 = vmatpush.bf16.msra.mxu2 %v5283_v19  ;;  %v6100_v27 = vld [vmem:[#allocation2 + $0x4d4] sm:$0xf0]  ;;  %v5248_v15 = vld [vmem:[#allocation2 + $0x418] sm:$0xf0]  ;;  %v5304_v21 = vld [vmem:[#allocation2 + $0x488] sm:$0xf0] }
 0x299   : > { %v1769_v29 = vmax.f32 %v1680_v28, 0.0  ;;  %v1751_v45 = vadd.f32 %v1750_v26, %v1717_v30  ;;  %v5342_v26 = vld [vmem:[#allocation2 + $0x4d0] sm:$0xf]  ;;  %v6081_v28 = vld [vmem:[#allocation2 + $0x444] sm:$0xf]  ;;  %v5251_v19 = vor.u32 %v6075_v12, %v5248_v15 }
 0x29a   : > { %2565 = vmatpush.bf16.msra.mxu3 %v5347_v20  ;;  %2463 = vmatpush.bf16.msrb.mxu0 %v5279_v23  ;;  %v6089_v20 = vld [vmem:[#allocation2 + $0x484] sm:$0xf] }
 0x29b   : > { %v1781_v31 = vpack.c.bf16 %v1769_v29, %v1767_v22  ;;  %v1772_v62 = vmax.f32 %v1751_v45, 0.0  ;;  %v5343_v22 = vor.u32 %v6100_v27, %v5342_v26  ;;  %v5272_v29 = vld [vmem:[#allocation2 + $0x448] sm:$0xf0]  ;;  %v5267_v45 = vor.u32 %v6079_v43, %v5264_v44  ;;  %v6073_v26 = vld [vmem:[#allocation2 + $0x404] sm:$0xf] }
 0x29c   : > { %v1648_v35 = vpop.f32.mrf.mxu2  ;;  %v5275_v30 = vor.u32 %v6081_v28, %v5272_v29  ;;  %v5307_v18 = vor.u32 %v6089_v20, %v5304_v21  ;;  %v5057_v27 = vld [vmem:[%s7434_s4 + $0x4] ss:$8 sm:$0x3] }
 0x29d   : > { %2008 = vmatmul.bf16.gmra.mxu2 %v1781_v31  ;;  %2076 = vmatmul.bf16.gmra.mxu0 %v1781_v31  ;;  %v1649_v25 = vadd.f32 %v1648_v35, %v6810_v58  ;;  %v6097_v31 = vld [vmem:[#allocation2 + $0x4c4] sm:$0xf]  ;;  %v5270_v35 = vld [vmem:[#allocation2 + $0x440] sm:$0xf] }
 0x29e   : > { %v1718_v39 = vpop.f32.mrf.mxu0  ;;  %v1684_v59 = vpop.f32.mrf.mxu3  ;;  %2532 = vmatpush.bf16.msra.mxu2 %v5275_v30  ;;  %v5271_v40 = vor.u32 %v6082_v37, %v5270_v35  ;;  %v6884_v30 = vperm.slane %v5057_v27, 1 }
 0x29f   : > { %v1719_v47 = vadd.f32 %v1718_v39, %v6807_v42  ;;  %v1683_v56 = vadd.f32 %v1682_v34, %v1649_v25  ;;  %v5336_v34 = vld [vmem:[#allocation2 + $0x4c8] sm:$0xf0]  ;;  %v6098_v39 = vld [vmem:[#allocation2 + $0x4c4] sm:$0xf0] }
 0x2a0   : > { %v5339_v36 = vor.u32 %v6097_v31, %v5336_v34  ;;  %v5335_v41 = vor.u32 %v6098_v39, %v5334_v38  ;;  %2464 = vmatpush.bf16.msrb.mxu0 %v5271_v40 }
 0x2a1   : > { %v1753_v53 = vadd.f32 %v1752_v51, %v1719_v47  ;;  %v1771_v5 = vmax.f32 %v1683_v56, 0.0  ;;  %v5328_v47 = vld [vmem:[#allocation2 + $0x4b8] sm:$0xf0]  ;;  %v5326_v51 = vld [vmem:[#allocation2 + $0x4b0] sm:$0xf] }
 0x2a2   : > { %2566 = vmatpush.bf16.msra.mxu3 %v5339_v36  ;;  %2533 = vmatpush.bf16.msra.mxu2 %v5267_v45  ;;  %v5327_v25 = vor.u32 %v6096_v52, %v5326_v51  ;;  %v6889_v36 = vperm.slane %v5057_v27, 0 }
 0x2a3   : > { %v1774_v54 = vmax.f32 %v1753_v53, 0.0  ;;  %v5318_v53 = vld [vmem:[#allocation2 + $0x4a0] sm:$0xf] }
 0x2a4   : > { %v1650_v55 = vpop.f32.mrf.mxu2  ;;  %2465 = vmatpush.bf16.msrb.mxu0 %v5263_v50 }
 0x2a5   : > { %v1651_v57 = vadd.f32 %v1650_v55, %v6810_v58  ;;  %v1784_v42 = vpack.c.bf16 %v1774_v54, %v1772_v62  ;;  %v5350_v58 = vld [vmem:[#allocation2 + $0x4e0] sm:$0xf]  ;;  %v6094_v62 = vld [vmem:[#allocation2 + $0x4a4] sm:$0xf0]  ;;  %v6077_v54 = vld [vmem:[#allocation2 + $0x424] sm:$0xf] }
 0x2a6   : > { %v5351_v11 = vor.u32 %v6102_v10, %v5350_v58  ;;  %v5256_v55 = vld [vmem:[#allocation2 + $0x428] sm:$0xf0]  ;;  %v5319_v56 = vor.u32 %v6094_v62, %v5318_v53  ;;  %v6074_v58 = vld [vmem:[#allocation2 + $0x404] sm:$0xf0] }
 0x2a7   : > { %v1685_v60 = vadd.f32 %v1684_v59, %v1651_v57  ;;  %2047 = vmatmul.bf16.gmra.mxu3 %v1784_v42  ;;  %2115 = vmatmul.bf16.gmra.mxu1 %v1784_v42  ;;  %v5259_v57 = vor.u32 %v6077_v54, %v5256_v55  ;;  %v5310_v42 = vld [vmem:[#allocation2 + $0x490] sm:$0xf]  ;;  %v6092_v59 = vld [vmem:[#allocation2 + $0x494] sm:$0xf0] }
 0x2a8   : > { %2496 = vmatpush.bf16.msrb.mxu1 %v5351_v11  ;;  %2466 = vmatpush.bf16.msrb.mxu0 %v5255_v2  ;;  %v5312_v11 = vld [vmem:[#allocation2 + $0x498] sm:$0xf0] }
 0x2a9   : > { %v1773_v6 = vmax.f32 %v1685_v60, 0.0  ;;  %2534 = vmatpush.bf16.msra.mxu2 %v5259_v57  ;;  %v5311_v60 = vor.u32 %v6092_v59, %v5310_v42  ;;  %v5315_v16 = vor.u32 %v6091_v17, %v5312_v11 }
 0x2ab   : > { %v1783_v9 = vpack.c.bf16 %v1773_v6, %v1771_v5  ;;  %v5246_v6 = vld [vmem:[#allocation2 + $0x410] sm:$0xf] }
 0x2ac   : > { %2497 = vmatpush.bf16.msrb.mxu1 %v5343_v22  ;;  %v5247_v8 = vor.u32 %v6076_v7, %v5246_v6 }
 0x2ad   : > { %2013 = vmatmul.bf16.gmra.mxu2 %v1783_v9  ;;  %2081 = vmatmul.bf16.gmra.mxu0 %v1783_v9  ;;  %v5238_v9 = vld [vmem:[#allocation2 + $0x400] sm:$0xf] }
 0x2ae   : > { %2467 = vmatpush.bf16.msrb.mxu0 %v5247_v8  ;;  %v5239_v10 = vor.u32 %v6074_v58, %v5238_v9  ;;  %2535 = vmatpush.bf16.msra.mxu2 %v5251_v19 }
 0x2b0   : > { %2498 = vmatpush.bf16.msrb.mxu1 %v5335_v41 }
 0x2b2   : > { %2468 = vmatpush.bf16.msrb.mxu0 %v5239_v10 }
 0x2b4   : > { %2499 = vmatpush.bf16.msrb.mxu1 %v5327_v25 }
 0x2b7   : > { %5231 = vmatmul.msk.bf16.vlgmr.msrb.gmra.mxu3 %vm574_vm1, %v6666_v32 }
 0x2b8   : > { %2500 = vmatpush.bf16.msrb.mxu1 %v5319_v56 }
 0x2bc   : > { %2501 = vmatpush.bf16.msrb.mxu1 %v5311_v60 }
 0x2bd   : > { %5226 = vmatmul.msk.bf16.vlgmr.msrb.gmra.mxu2 %vm574_vm1, %v6666_v32  ;;  %v6095_v32 = vld [vmem:[#allocation2 + $0x4b4] sm:$0xf] }
 0x2be   : > { %v5331_v24 = vor.u32 %v6095_v32, %v5328_v47 }
 0x2c0   : > { %2567 = vmatpush.bf16.msra.mxu3 %v5331_v24 }
 0x2c4   : > { %2568 = vmatpush.bf16.msra.mxu3 %v5323_v3 }
 0x2c7   : > { %5232 = vmatmul.msk.bf16.gmra.mxu3 %vm574_vm1, %v6686_v13 }
 0x2c8   : > { %2569 = vmatpush.bf16.msra.mxu3 %v5315_v16 }
 0x2cc   : > { %2570 = vmatpush.bf16.msra.mxu3 %v5307_v18 }
 0x2cd   : > { %5227 = vmatmul.msk.bf16.gmra.mxu2 %vm574_vm1, %v6686_v13  ;;  %v5302_v13 = vld [vmem:[#allocation2 + $0x480] sm:$0xf] }
 0x2ce   : > { %v5303_v5 = vor.u32 %v6090_v4, %v5302_v13 }
 0x2d0   : > { %2502 = vmatpush.bf16.msrb.mxu1 %v5303_v5 }
 0x2d7   : > { %5233 = vmatmul.msk.bf16.gmra.mxu3 %vm574_vm1, %v6668_v33 }
 0x2dd   : > { %5228 = vmatmul.msk.bf16.gmra.mxu2 %vm574_vm1, %v6668_v33  ;;  %v5240_v33 = vld [vmem:[#allocation2 + $0x408] sm:$0xf0] }
 0x2de   : > { %v5243_v28 = vor.u32 %v6073_v26, %v5240_v33 }
 0x2e0   : > { %2536 = vmatpush.bf16.msra.mxu2 %v5243_v28 }
 0x2e4   : > { %v2096_v23 = vpop.f32.mrf.mxu1 }
 0x2e7   : > { %5234 = vmatmul.msk.bf16.gmra.mxu3 %vm574_vm1, %v6688_v14 }
 0x2ea   : > { %v2028_v22 = vpop.f32.mrf.mxu3  ;;  %v2062_v29 = vpop.f32.mrf.mxu0 }
 0x2eb   : > { %v2063_v34 = vadd.f32 %v2062_v29, %v6884_v30 }
 0x2ec   : > { %v2098_v31 = vpop.f32.mrf.mxu1 }
 0x2ed   : > { %5229 = vmatmul.msk.bf16.gmra.mxu2 %vm574_vm1, %v6688_v14  ;;  %v2097_v39 = vadd.f32 %v2096_v23, %v2063_v34 }
 0x2ef   : > { %v2122_v45 = vmax.f32 %v2097_v39, 0.0 }
 0x2f0   : > { %v1994_v35 = vpop.f32.mrf.mxu2 }
 0x2f1   : > { %v1995_v43 = vadd.f32 %v1994_v35, %v6889_v36 }
 0x2f2   : > { %v2030_v37 = vpop.f32.mrf.mxu3  ;;  %v2064_v38 = vpop.f32.mrf.mxu0 }
 0x2f3   : > { %v2065_v40 = vadd.f32 %v2064_v38, %v6884_v30  ;;  %v2029_v47 = vadd.f32 %v2028_v22, %v1995_v43 }
 0x2f4   : > { %v2101_v41 = vpop.f32.mrf.mxu1 }
 0x2f5   : > { %v2099_v44 = vadd.f32 %v2098_v31, %v2065_v40  ;;  %v2121_v25 = vmax.f32 %v2029_v47, 0.0 }
 0x2f7   : > { %v2124_v32 = vmax.f32 %v2099_v44, 0.0  ;;  %5235 = vmatmul.msk.bf16.gmra.mxu3 %vm574_vm1, %v6702_v46 }
 0x2f8   : > { %v1996_v14 = vpop.f32.mrf.mxu2 }
 0x2f9   : > { %v2142_v48 = vpack.c.bf16 %v2124_v32, %v2122_v45  ;;  %v1997_v24 = vadd.f32 %v1996_v14, %v6889_v36 }
 0x2fa   : > { %v2033_v49 = vpop.f32.mrf.mxu3  ;;  %v2067_v50 = vpop.f32.mrf.mxu0 }
 0x2fb   : > { %v2031_v51 = vadd.f32 %v2030_v37, %v1997_v24  ;;  %2503 = vmatmul.bf16.vlgmr.msrb.gmra.mxu1 %v2142_v48  ;;  %v2068_v54 = vadd.f32 %v2067_v50, %v6884_v30 }
 0x2fc   : > { %v2103_v52 = vpop.f32.mrf.mxu1 }
 0x2fd   : > { %v2123_v53 = vmax.f32 %v2031_v51, 0.0  ;;  %5230 = vmatmul.msk.bf16.gmra.mxu2 %vm574_vm1, %v6702_v46  ;;  %v2102_v42 = vadd.f32 %v2101_v41, %v2068_v54 }
 0x2ff   : > { %v2141_v62 = vpack.c.bf16 %v2123_v53, %v2121_v25  ;;  %v2126_v0 = vmax.f32 %v2102_v42, 0.0 }
 0x300   : > { %v1999_v55 = vpop.f32.mrf.mxu2 }
 0x301   : > { %2469 = vmatmul.bf16.vlgmr.msrb.gmra.mxu0 %v2141_v62  ;;  %v2000_v61 = vadd.f32 %v1999_v55, %v6889_v36 }
 0x302   : > { %v2035_v56 = vpop.f32.mrf.mxu3  ;;  %v2069_v57 = vpop.f32.mrf.mxu0 }
 0x303   : > { %v2070_v59 = vadd.f32 %v2069_v57, %v6884_v30  ;;  %v2034_v3 = vadd.f32 %v2033_v49, %v2000_v61 }
 0x304   : > { %v2106_v60 = vpop.f32.mrf.mxu1 }
 0x305   : > { %v2104_v63 = vadd.f32 %v2103_v52, %v2070_v59  ;;  %v2125_v8 = vmax.f32 %v2034_v3, 0.0  ;;  %v6127_v59 = vld [vmem:[#allocation2 + $0x574] sm:$0xf]  ;;  %v5424_v3 = vld [vmem:[#allocation2 + $0x570] sm:$0xf] }
 0x307   : > { %v2128_v1 = vmax.f32 %v2104_v63, 0.0  ;;  %2571 = vmatmul.bf16.vlgmr.msra.gmra.mxu3 %v2142_v48 }
 0x308   : > { %v2001_v2 = vpop.f32.mrf.mxu2 }
 0x309   : > { %v2002_v46 = vadd.f32 %v2001_v2, %v6889_v36  ;;  %v2144_v13 = vpack.c.bf16 %v2128_v1, %v2126_v0  ;;  %v6143_v1 = vld [vmem:[#allocation2 + $0x5f4] sm:$0xf]  ;;  %v5490_v2 = vld [vmem:[#allocation2 + $0x5f8] sm:$0xf0] }
 0x30a   : > { %v2038_v4 = vpop.f32.mrf.mxu3  ;;  %v2072_v5 = vpop.f32.mrf.mxu0 }
 0x30b   : > { %v2036_v6 = vadd.f32 %v2035_v56, %v2002_v46  ;;  %2508 = vmatmul.bf16.gmra.mxu1 %v2144_v13  ;;  %v2073_v58 = vadd.f32 %v2072_v5, %v6884_v30  ;;  %v6128_v5 = vld [vmem:[#allocation2 + $0x574] sm:$0xf0] }
 0x30c   : > { %v2108_v7 = vpop.f32.mrf.mxu1 }
 0x30d   : > { %v2127_v9 = vmax.f32 %v2036_v6, 0.0  ;;  %2537 = vmatmul.bf16.vlgmr.msra.gmra.mxu2 %v2141_v62  ;;  %v2107_v15 = vadd.f32 %v2106_v60, %v2073_v58  ;;  %v5426_v60 = vld [vmem:[#allocation2 + $0x578] sm:$0xf0]  ;;  %v5488_v6 = vld [vmem:[#allocation2 + $0x5f0] sm:$0xf] }
 0x30e   : > { %v5429_v61 = vor.u32 %v6127_v59, %v5426_v60 }
 0x30f   : > { %v2143_v10 = vpack.c.bf16 %v2127_v9, %v2125_v8  ;;  %v2130_v18 = vmax.f32 %v2107_v15, 0.0  ;;  %v5425_v9 = vor.u32 %v6128_v5, %v5424_v3 }
 0x310   : > { %v2004_v17 = vpop.f32.mrf.mxu2  ;;  %2922 = vmatpush.bf16.msrb.mxu2 %v5429_v61  ;;  %v5400_v61 = vld [vmem:[#allocation2 + $0x540] sm:$0xf] }
 0x311   : > { %2474 = vmatmul.bf16.gmra.mxu0 %v2143_v10  ;;  %v2005_v19 = vadd.f32 %v2004_v17, %v6889_v36 }
 0x312   : > { %v2040_v11 = vpop.f32.mrf.mxu3  ;;  %v2074_v12 = vpop.f32.mrf.mxu0  ;;  %2854 = vmatpush.bf16.msra.mxu0 %v5425_v9  ;;  %v5392_v9 = vld [vmem:[#allocation2 + $0x530] sm:$0xf] }
 0x313   : > { %v2075_v16 = vadd.f32 %v2074_v12, %v6884_v30  ;;  %v2039_v33 = vadd.f32 %v2038_v4, %v2005_v19  ;;  %v5493_v4 = vor.u32 %v6143_v1, %v5490_v2  ;;  %v6138_v2 = vld [vmem:[#allocation2 + $0x5c4] sm:$0xf0] }
 0x314   : > { %v2111_v21 = vpop.f32.mrf.mxu1 }
 0x315   : > { %v2109_v20 = vadd.f32 %v2108_v7, %v2075_v16  ;;  %v2129_v34 = vmax.f32 %v2039_v33, 0.0  ;;  %v6144_v7 = vld [vmem:[#allocation2 + $0x5f4] sm:$0xf0]  ;;  %2956 = vmatpush.bf16.msrb.mxu3 %v5493_v4  ;;  %v5394_v4 = vld [vmem:[#allocation2 + $0x538] sm:$0xf0] }
 0x316   : > { %v5489_v58 = vor.u32 %v6144_v7, %v5488_v6  ;;  %v6135_v7 = vld [vmem:[#allocation2 + $0x5b4] sm:$0xf] }
 0x317   : > { %v2132_v23 = vmax.f32 %v2109_v20, 0.0  ;;  %2576 = vmatmul.bf16.gmra.mxu3 %v2144_v13 }
 0x318   : > { %v2006_v26 = vpop.f32.mrf.mxu2  ;;  %2888 = vmatpush.bf16.msra.mxu1 %v5489_v58 }
 0x319   : > { %v2007_v27 = vadd.f32 %v2006_v26, %v6889_v36  ;;  %v2146_v28 = vpack.c.bf16 %v2132_v23, %v2130_v18  ;;  %v5418_v18 = vld [vmem:[#allocation2 + $0x568] sm:$0xf0]  ;;  %v6141_v23 = vld [vmem:[#allocation2 + $0x5e4] sm:$0xf] }
 0x31a   : > { %v2043_v22 = vpop.f32.mrf.mxu3  ;;  %v2077_v29 = vpop.f32.mrf.mxu0 }
 0x31b   : > { %v2041_v31 = vadd.f32 %v2040_v11, %v2007_v27  ;;  %2513 = vmatmul.bf16.gmra.mxu1 %v2146_v28  ;;  %v2078_v37 = vadd.f32 %v2077_v29, %v6884_v30  ;;  %v5482_v27 = vld [vmem:[#allocation2 + $0x5e8] sm:$0xf0] }
 0x31c   : > { %v2113_v38 = vpop.f32.mrf.mxu1  ;;  %v5485_v29 = vor.u32 %v6141_v23, %v5482_v27  ;;  %v6133_v23 = vld [vmem:[#allocation2 + $0x5a4] sm:$0xf]  ;;  %v6118_v27 = vld [vmem:[#allocation2 + $0x524] sm:$0xf0] }
 0x31d   : > { %v2131_v35 = vmax.f32 %v2041_v31, 0.0  ;;  %2542 = vmatmul.bf16.gmra.mxu2 %v2143_v10  ;;  %v2112_v44 = vadd.f32 %v2111_v21, %v2078_v37  ;;  %v6125_v21 = vld [vmem:[#allocation2 + $0x564] sm:$0xf] }
 0x31e   : > { %v5421_v33 = vor.u32 %v6125_v21, %v5418_v18  ;;  %2957 = vmatpush.bf16.msrb.mxu3 %v5485_v29  ;;  %v6136_v21 = vld [vmem:[#allocation2 + $0x5b4] sm:$0xf0] }
 0x31f   : > { %v2145_v39 = vpack.c.bf16 %v2131_v35, %v2129_v34  ;;  %v2134_v47 = vmax.f32 %v2112_v44, 0.0  ;;  %v5410_v44 = vld [vmem:[#allocation2 + $0x558] sm:$0xf0] }
 0x320   : > { %v2009_v40 = vpop.f32.mrf.mxu2  ;;  %2923 = vmatpush.bf16.msrb.mxu2 %v5421_v33  ;;  %v5450_v33 = vld [vmem:[#allocation2 + $0x5a8] sm:$0xf0] }
 0x321   : > { %2479 = vmatmul.bf16.gmra.mxu0 %v2145_v39  ;;  %v2010_v32 = vadd.f32 %v2009_v40, %v6889_v36 }
 0x322   : > { %v2045_v41 = vpop.f32.mrf.mxu3  ;;  %v2079_v43 = vpop.f32.mrf.mxu0 }
 0x323   : > { %v2080_v45 = vadd.f32 %v2079_v43, %v6884_v30  ;;  %v2044_v49 = vadd.f32 %v2043_v22, %v2010_v32  ;;  %v6126_v22 = vld [vmem:[#allocation2 + $0x564] sm:$0xf0]  ;;  %v6123_v43 = vld [vmem:[#allocation2 + $0x554] sm:$0xf] }
 0x324   : > { %v2116_v50 = vpop.f32.mrf.mxu1  ;;  %v5413_v32 = vor.u32 %v6123_v43, %v5410_v44  ;;  %v5368_v43 = vld [vmem:[#allocation2 + $0x500] sm:$0xf]  ;;  %v6114_v44 = vld [vmem:[#allocation2 + $0x504] sm:$0xf0] }
 0x325   : > { %v2114_v14 = vadd.f32 %v2113_v38, %v2080_v45  ;;  %v2133_v54 = vmax.f32 %v2044_v49, 0.0  ;;  %v5480_v38 = vld [vmem:[#allocation2 + $0x5e0] sm:$0xf]  ;;  %v6139_v45 = vld [vmem:[#allocation2 + $0x5d4] sm:$0xf] }
 0x326   : > { %2924 = vmatpush.bf16.msrb.mxu2 %v5413_v32  ;;  %v6124_v49 = vld [vmem:[#allocation2 + $0x554] sm:$0xf0]  ;;  %v5369_v32 = vor.u32 %v6114_v44, %v5368_v43 }
 0x327   : > { %v2136_v48 = vmax.f32 %v2114_v14, 0.0  ;;  %2581 = vmatmul.bf16.gmra.mxu3 %v2146_v28  ;;  %v5416_v28 = vld [vmem:[#allocation2 + $0x560] sm:$0xf]  ;;  %v5474_v14 = vld [vmem:[#allocation2 + $0x5d8] sm:$0xf0] }
 0x328   : > { %v2011_v24 = vpop.f32.mrf.mxu2  ;;  %v5417_v31 = vor.u32 %v6126_v22, %v5416_v28  ;;  %v5453_v28 = vor.u32 %v6133_v23, %v5450_v33 }
 0x329   : > { %v2012_v51 = vadd.f32 %v2011_v24, %v6889_v36  ;;  %v2148_v52 = vpack.c.bf16 %v2136_v48, %v2134_v47  ;;  %v5477_v47 = vor.u32 %v6139_v45, %v5474_v14  ;;  %v5408_v24 = vld [vmem:[#allocation2 + $0x550] sm:$0xf]  ;;  %v6113_v45 = vld [vmem:[#allocation2 + $0x504] sm:$0xf]  ;;  %v5370_v14 = vld [vmem:[#allocation2 + $0x508] sm:$0xf0] }
 0x32a   : > { %v2048_v25 = vpop.f32.mrf.mxu3  ;;  %v2082_v53 = vpop.f32.mrf.mxu0  ;;  %2855 = vmatpush.bf16.msra.mxu0 %v5417_v31  ;;  %v5376_v31 = vld [vmem:[#allocation2 + $0x510] sm:$0xf] }
 0x32b   : > { %v2046_v62 = vadd.f32 %v2045_v41, %v2012_v51  ;;  %2518 = vmatmul.bf16.gmra.mxu1 %v2148_v52  ;;  %v2083_v56 = vadd.f32 %v2082_v53, %v6884_v30  ;;  %2958 = vmatpush.bf16.msrb.mxu3 %v5477_v47  ;;  %v6121_v53 = vld [vmem:[#allocation2 + $0x544] sm:$0xf]  ;;  %v5373_v47 = vor.u32 %v6113_v45, %v5370_v14 }
 0x32c   : > { %v2118_v8 = vpop.f32.mrf.mxu1 }
 0x32d   : > { %v2135_v55 = vmax.f32 %v2046_v62, 0.0  ;;  %2547 = vmatmul.bf16.gmra.mxu2 %v2145_v39  ;;  %v2117_v46 = vadd.f32 %v2116_v50, %v2083_v56  ;;  %v6142_v39 = vld [vmem:[#allocation2 + $0x5e4] sm:$0xf0]  ;;  %v5409_v50 = vor.u32 %v6124_v49, %v5408_v24  ;;  %v5448_v24 = vld [vmem:[#allocation2 + $0x5a0] sm:$0xf] }
 0x32e   : > { %v5481_v40 = vor.u32 %v6142_v39, %v5480_v38  ;;  %v5378_v38 = vld [vmem:[#allocation2 + $0x518] sm:$0xf0]  ;;  %v6134_v49 = vld [vmem:[#allocation2 + $0x5a4] sm:$0xf0] }
 0x32f   : > { %v2147_v57 = vpack.c.bf16 %v2135_v55, %v2133_v54  ;;  %v2138_v11 = vmax.f32 %v2117_v46, 0.0  ;;  %2856 = vmatpush.bf16.msra.mxu0 %v5409_v50  ;;  %v5402_v54 = vld [vmem:[#allocation2 + $0x548] sm:$0xf0] }
 0x330   : > { %v2014_v42 = vpop.f32.mrf.mxu2  ;;  %2889 = vmatpush.bf16.msra.mxu1 %v5481_v40  ;;  %v5405_v55 = vor.u32 %v6121_v53, %v5402_v54  ;;  %v6131_v53 = vld [vmem:[#allocation2 + $0x594] sm:$0xf] }
 0x331   : > { %2484 = vmatmul.bf16.gmra.mxu0 %v2147_v57  ;;  %v2015_v10 = vadd.f32 %v2014_v42, %v6889_v36  ;;  %v5466_v42 = vld [vmem:[#allocation2 + $0x5c8] sm:$0xf0] }
 0x332   : > { %v2050_v63 = vpop.f32.mrf.mxu3  ;;  %v2084_v0 = vpop.f32.mrf.mxu0  ;;  %2925 = vmatpush.bf16.msrb.mxu2 %v5405_v55  ;;  %v5440_v55 = vld [vmem:[#allocation2 + $0x590] sm:$0xf] }
 0x333   : > { %v2085_v13 = vadd.f32 %v2084_v0, %v6884_v30  ;;  %v2049_v16 = vadd.f32 %v2048_v25, %v2015_v10  ;;  %v6140_v25 = vld [vmem:[#allocation2 + $0x5d4] sm:$0xf0]  ;;  %v5464_v0 = vld [vmem:[#allocation2 + $0x5c0] sm:$0xf] }
 0x334   : > { %v5465_v3 = vor.u32 %v6138_v2, %v5464_v0  ;;  %v6120_v10 = vld [vmem:[#allocation2 + $0x534] sm:$0xf0]  ;;  %v5434_v2 = vld [vmem:[#allocation2 + $0x588] sm:$0xf0] }
 0x335   : > { %v2119_v17 = vadd.f32 %v2118_v8, %v2085_v13  ;;  %v2137_v34 = vmax.f32 %v2049_v16, 0.0  ;;  %v6119_v13 = vld [vmem:[#allocation2 + $0x534] sm:$0xf]  ;;  %v5458_v8 = vld [vmem:[#allocation2 + $0x5b8] sm:$0xf0] }
 0x336   : > { %v5397_v5 = vor.u32 %v6119_v13, %v5394_v4  ;;  %v5461_v58 = vor.u32 %v6135_v7, %v5458_v8  ;;  %v5386_v16 = vld [vmem:[#allocation2 + $0x528] sm:$0xf0]  ;;  %v6130_v4 = vld [vmem:[#allocation2 + $0x584] sm:$0xf0] }
 0x337   : > { %v2140_v12 = vmax.f32 %v2119_v17, 0.0  ;;  %2586 = vmatmul.bf16.gmra.mxu3 %v2148_v52  ;;  %v5472_v52 = vld [vmem:[#allocation2 + $0x5d0] sm:$0xf]  ;;  %v5393_v17 = vor.u32 %v6120_v10, %v5392_v9 }
 0x338   : > { %v2016_v15 = vpop.f32.mrf.mxu2  ;;  %v5473_v62 = vor.u32 %v6140_v25, %v5472_v52  ;;  %2926 = vmatpush.bf16.msrb.mxu2 %v5397_v5  ;;  %v5449_v52 = vor.u32 %v6134_v49, %v5448_v24 }
 0x339   : > { %v2017_v30 = vadd.f32 %v2016_v15, %v6889_v36  ;;  %v2150_v19 = vpack.c.bf16 %v2140_v12, %v2138_v11  ;;  %v6117_v15 = vld [vmem:[#allocation2 + $0x524] sm:$0xf] }
 0x33a   : > { %v6914_v20 = vpop.f32.mrf.mxu3  ;;  %2890 = vmatpush.bf16.msra.mxu1 %v5473_v62  ;;  %v5389_v18 = vor.u32 %v6117_v15, %v5386_v16  ;;  %v5442_v62 = vld [vmem:[#allocation2 + $0x598] sm:$0xf0] }
 0x33b   : > { %v2051_v26 = vadd.f32 %v2050_v63, %v2017_v30  ;;  %2523 = vmatmul.bf16.gmra.mxu1 %v2150_v19  ;;  %v6122_v63 = vld [vmem:[#allocation2 + $0x544] sm:$0xf0]  ;;  %v5384_v30 = vld [vmem:[#allocation2 + $0x520] sm:$0xf]  ;;  %v5445_v54 = vor.u32 %v6131_v53, %v5442_v62 }
 0x33c   : > { %v5401_v1 = vor.u32 %v6122_v63, %v5400_v61  ;;  %2927 = vmatpush.bf16.msrb.mxu2 %v5389_v18  ;;  %v5385_v22 = vor.u32 %v6118_v27, %v5384_v30 }
 0x33d   : > { %v2139_v35 = vmax.f32 %v2051_v26, 0.0  ;;  %2552 = vmatmul.bf16.gmra.mxu2 %v2147_v57  ;;  %v6137_v57 = vld [vmem:[#allocation2 + $0x5c4] sm:$0xf] }
 0x33e   : > { %v5469_v59 = vor.u32 %v6137_v57, %v5466_v42  ;;  %2857 = vmatpush.bf16.msra.mxu0 %v5401_v1  ;;  %2891 = vmatpush.bf16.msra.mxu1 %v5465_v3  ;;  %v6132_v57 = vld [vmem:[#allocation2 + $0x594] sm:$0xf0]  ;;  %v6129_v1 = vld [vmem:[#allocation2 + $0x584] sm:$0xf]  ;;  %v5432_v3 = vld [vmem:[#allocation2 + $0x580] sm:$0xf] }
 0x33f   : > { %v2149_v36 = vpack.c.bf16 %v2139_v35, %v2137_v34  ;;  %v6116_v34 = vld [vmem:[#allocation2 + $0x514] sm:$0xf0]  ;;  %v6115_v35 = vld [vmem:[#allocation2 + $0x514] sm:$0xf]  ;;  %v5441_v61 = vor.u32 %v6132_v57, %v5440_v55  ;;  %v5437_v13 = vor.u32 %v6129_v1, %v5434_v2  ;;  %v5433_v8 = vor.u32 %v6130_v4, %v5432_v3 }
 0x340   : > { %v6916_v37 = vpop.f32.mrf.mxu2  ;;  %2959 = vmatpush.bf16.msrb.mxu3 %v5469_v59  ;;  %v5381_v40 = vor.u32 %v6115_v35, %v5378_v38 }
 0x341   : > { %2489 = vmatmul.bf16.gmra.mxu0 %v2149_v36 }
 0x342   : > { %v6918_v41 = vpop.f32.mrf.mxu3  ;;  %2858 = vmatpush.bf16.msra.mxu0 %v5393_v17  ;;  %2928 = vmatpush.bf16.msrb.mxu2 %v5381_v40 }
 0x344   : > { %2960 = vmatpush.bf16.msrb.mxu3 %v5461_v58  ;;  %v5364_v58 = vld [vmem:[%s7434_s4 + $0x5] ss:$8 sm:$0x3] }
 0x345   : > { %v6956_v15 = vperm.slane %v5364_v58, 0  ;;  %v6965_v44 = vperm.slane %v5364_v58, 1 }
 0x346   : > { %2859 = vmatpush.bf16.msra.mxu0 %v5385_v22  ;;  %2929 = vmatpush.bf16.msrb.mxu2 %v5373_v47 }
 0x347   : > { %2591 = vmatmul.bf16.gmra.mxu3 %v2150_v19  ;;  %v5456_v19 = vld [vmem:[#allocation2 + $0x5b0] sm:$0xf] }
 0x348   : > { %v6920_v48 = vpop.f32.mrf.mxu2  ;;  %v5457_v26 = vor.u32 %v6136_v21, %v5456_v19  ;;  %2961 = vmatpush.bf16.msrb.mxu3 %v5453_v28 }
 0x34a   : > { %v6922_v51 = vpop.f32.mrf.mxu3  ;;  %2892 = vmatpush.bf16.msra.mxu1 %v5457_v26 }
 0x34c   : > { %2962 = vmatpush.bf16.msrb.mxu3 %v5445_v54 }
 0x34d   : > { %2557 = vmatmul.bf16.gmra.mxu2 %v2149_v36  ;;  %v5377_v36 = vor.u32 %v6116_v34, %v5376_v31 }
 0x34e   : > { %2893 = vmatpush.bf16.msra.mxu1 %v5449_v52 }
 0x34f   : > { %2860 = vmatpush.bf16.msra.mxu0 %v5377_v36 }
 0x350   : > { %v6924_v56 = vpop.f32.mrf.mxu2  ;;  %2963 = vmatpush.bf16.msrb.mxu3 %v5437_v13 }
 0x352   : > { %v6926_v60 = vpop.f32.mrf.mxu3  ;;  %2894 = vmatpush.bf16.msra.mxu1 %v5441_v61 }
 0x353   : > { %2861 = vmatpush.bf16.msra.mxu0 %v5369_v32 }
 0x356   : > { %2895 = vmatpush.bf16.msra.mxu1 %v5433_v8 }
 0x358   : > { %v6928_v46 = vpop.f32.mrf.mxu2 }
 0x35a   : > { %v6930_v6 = vpop.f32.mrf.mxu3 }
 0x360   : > { %v6932_v11 = vpop.f32.mrf.mxu2 }
 0x362   : > { %v6934_v12 = vpop.f32.mrf.mxu3 }
 0x368   : > { %v6936_v29 = vpop.f32.mrf.mxu2 }
 0x36a   : > { %v6938_v39 = vpop.f32.mrf.mxu3 }
 0x370   : > { %v6940_v50 = vpop.f32.mrf.mxu2 }
 0x372   : > { %v6942_v25 = vpop.f32.mrf.mxu3 }
 0x378   : > { %v6944_v42 = vpop.f32.mrf.mxu2  ;;  %v2504_v59 = vpop.f32.mrf.mxu1 }
 0x37a   : > { %v6946_v63 = vpop.f32.mrf.mxu3 }
 0x37e   : > { %v2470_v0 = vpop.f32.mrf.mxu0 }
 0x37f   : > { %v2471_v9 = vadd.f32 %v2470_v0, %v6916_v37 }
 0x380   : > { %v6948_v5 = vpop.f32.mrf.mxu2  ;;  %v2506_v7 = vpop.f32.mrf.mxu1 }
 0x381   : > { %v2505_v17 = vadd.f32 %v2504_v59, %v2471_v9 }
 0x382   : > { %v6954_v10 = vpop.f32.mrf.mxu3 }
 0x383   : > { %v2604_v18 = vadd.f32 %v6956_v15, %v2505_v17 }
 0x385   : > { %v2624_v33 = vmax.f32 %v2604_v18, 0.0 }
 0x386   : > { %v2472_v16 = vpop.f32.mrf.mxu0 }
 0x387   : > { %v2473_v30 = vadd.f32 %v2472_v16, %v6920_v48 }
 0x388   : > { %v6959_v19 = vpop.f32.mrf.mxu2  ;;  %v2509_v21 = vpop.f32.mrf.mxu1 }
 0x389   : > { %v2507_v37 = vadd.f32 %v2506_v7, %v2473_v30 }
 0x38a   : > { %v2572_v23 = vpop.f32.mrf.mxu3 }
 0x38b   : > { %v2606_v26 = vadd.f32 %v6956_v15, %v2507_v37 }
 0x38d   : > { %v2626_v27 = vmax.f32 %v2606_v26, 0.0 }
 0x38e   : > { %v2475_v28 = vpop.f32.mrf.mxu0 }
 0x38f   : > { %v2644_v22 = vpack.c.bf16 %v2626_v27, %v2624_v33  ;;  %v2476_v35 = vadd.f32 %v2475_v28, %v6924_v56 }
 0x390   : > { %v2511_v31 = vpop.f32.mrf.mxu1  ;;  %v2538_v34 = vpop.f32.mrf.mxu2 }
 0x391   : > { %2862 = vmatmul.bf16.vlgmr.msra.gmra.mxu0 %v2644_v22  ;;  %2930 = vmatmul.bf16.vlgmr.msrb.gmra.mxu2 %v2644_v22  ;;  %v2539_v36 = vadd.f32 %v2538_v34, %v6914_v20  ;;  %v2510_v38 = vadd.f32 %v2509_v21, %v2476_v35 }
 0x392   : > { %v2574_v48 = vpop.f32.mrf.mxu3 }
 0x393   : > { %v2573_v43 = vadd.f32 %v2572_v23, %v2539_v36  ;;  %v2608_v47 = vadd.f32 %v6956_v15, %v2510_v38 }
 0x395   : > { %v2605_v52 = vadd.f32 %v6965_v44, %v2573_v43  ;;  %v2628_v62 = vmax.f32 %v2608_v47, 0.0 }
 0x396   : > { %v2477_v40 = vpop.f32.mrf.mxu0 }
 0x397   : > { %v2478_v45 = vadd.f32 %v2477_v40, %v6928_v46  ;;  %v2625_v59 = vmax.f32 %v2605_v52, 0.0 }
 0x398   : > { %v2514_v32 = vpop.f32.mrf.mxu1  ;;  %v2540_v14 = vpop.f32.mrf.mxu2 }
 0x399   : > { %v2512_v24 = vadd.f32 %v2511_v31, %v2478_v45  ;;  %v2541_v49 = vadd.f32 %v2540_v14, %v6918_v41 }
 0x39a   : > { %v2577_v56 = vpop.f32.mrf.mxu3 }
 0x39b   : > { %v2610_v53 = vadd.f32 %v6956_v15, %v2512_v24  ;;  %v2575_v20 = vadd.f32 %v2574_v48, %v2541_v49 }
 0x39d   : > { %v2607_v54 = vadd.f32 %v6965_v44, %v2575_v20  ;;  %v2630_v55 = vmax.f32 %v2610_v53, 0.0 }
 0x39e   : > { %v2480_v57 = vpop.f32.mrf.mxu0 }
 0x39f   : > { %v2627_v46 = vmax.f32 %v2607_v54, 0.0  ;;  %v2646_v61 = vpack.c.bf16 %v2630_v55, %v2628_v62  ;;  %v2481_v3 = vadd.f32 %v2480_v57, %v6932_v11 }
 0x3a0   : > { %v2516_v0 = vpop.f32.mrf.mxu1  ;;  %v2543_v1 = vpop.f32.mrf.mxu2 }
 0x3a1   : > { %v2645_v2 = vpack.c.bf16 %v2627_v46, %v2625_v59  ;;  %2867 = vmatmul.bf16.gmra.mxu0 %v2646_v61  ;;  %2935 = vmatmul.bf16.gmra.mxu2 %v2646_v61  ;;  %v2544_v13 = vadd.f32 %v2543_v1, %v6922_v51  ;;  %v2515_v4 = vadd.f32 %v2514_v32, %v2481_v3  ;;  %v6160_v3 = vld [vmem:[#allocation2 + $0x674] sm:$0xf0] }
 0x3a2   : > { %v2579_v41 = vpop.f32.mrf.mxu3 }
 0x3a3   : > { %2896 = vmatmul.bf16.vlgmr.msra.gmra.mxu1 %v2645_v2  ;;  %2964 = vmatmul.bf16.vlgmr.msrb.gmra.mxu3 %v2645_v2  ;;  %v2578_v8 = vadd.f32 %v2577_v56, %v2544_v13  ;;  %v2612_v17 = vadd.f32 %v6956_v15, %v2515_v4  ;;  %v5553_v2 = vld [vmem:[#allocation2 + $0x670] sm:$0xf]  ;;  %v6176_v4 = vld [vmem:[#allocation2 + $0x6f4] sm:$0xf0] }
 0x3a4   : > { %v5554_v13 = vor.u32 %v6160_v3, %v5553_v2 }
 0x3a5   : > { %v2609_v18 = vadd.f32 %v6965_v44, %v2578_v8  ;;  %v2632_v23 = vmax.f32 %v2612_v17, 0.0  ;;  %v6158_v17 = vld [vmem:[#allocation2 + $0x664] sm:$0xf0] }
 0x3a6   : > { %v2482_v7 = vpop.f32.mrf.mxu0  ;;  %3220 = vmatpush.bf16.msrb.mxu0 %v5554_v13  ;;  %v5595_v13 = vld [vmem:[#allocation2 + $0x6c8] sm:$0xf0] }
 0x3a7   : > { %v2483_v9 = vadd.f32 %v2482_v7, %v6936_v29  ;;  %v2629_v28 = vmax.f32 %v2609_v18, 0.0  ;;  %v5555_v7 = vld [vmem:[#allocation2 + $0x678] sm:$0xf0] }
 0x3a8   : > { %v2545_v58 = vpop.f32.mrf.mxu2  ;;  %v2519_v21 = vpop.f32.mrf.mxu1  ;;  %v5619_v18 = vld [vmem:[#allocation2 + $0x6f8] sm:$0xf0] }
 0x3a9   : > { %v2517_v16 = vadd.f32 %v2516_v0, %v2483_v9  ;;  %v2546_v30 = vadd.f32 %v2545_v58, %v6926_v60  ;;  %v5545_v58 = vld [vmem:[#allocation2 + $0x660] sm:$0xf] }
 0x3aa   : > { %v2582_v11 = vpop.f32.mrf.mxu3 }
 0x3ab   : > { %v2614_v37 = vadd.f32 %v6956_v15, %v2517_v16  ;;  %v2580_v51 = vadd.f32 %v2579_v41, %v2546_v30  ;;  %v5617_v41 = vld [vmem:[#allocation2 + $0x6f0] sm:$0xf] }
 0x3ac   : > { %v5618_v8 = vor.u32 %v6176_v4, %v5617_v41  ;;  %v6169_v41 = vld [vmem:[#allocation2 + $0x6c4] sm:$0xf] }
 0x3ad   : > { %v2611_v26 = vadd.f32 %v6965_v44, %v2580_v51  ;;  %v2634_v33 = vmax.f32 %v2614_v37, 0.0  ;;  %v5609_v37 = vld [vmem:[#allocation2 + $0x6e0] sm:$0xf] }
 0x3ae   : > { %v2485_v27 = vpop.f32.mrf.mxu0  ;;  %3254 = vmatpush.bf16.msrb.mxu1 %v5618_v8 }
 0x3af   : > { %v2648_v29 = vpack.c.bf16 %v2634_v33, %v2632_v23  ;;  %v2631_v22 = vmax.f32 %v2611_v26, 0.0  ;;  %v2486_v34 = vadd.f32 %v2485_v27, %v6940_v50  ;;  %v6174_v26 = vld [vmem:[#allocation2 + $0x6e4] sm:$0xf0]  ;;  %v6157_v33 = vld [vmem:[#allocation2 + $0x664] sm:$0xf] }
 0x3b0   : > { %v2548_v31 = vpop.f32.mrf.mxu2  ;;  %v2521_v36 = vpop.f32.mrf.mxu1 }
 0x3b1   : > { %2872 = vmatmul.bf16.gmra.mxu0 %v2648_v29  ;;  %2940 = vmatmul.bf16.gmra.mxu2 %v2648_v29  ;;  %v2647_v60 = vpack.c.bf16 %v2631_v22, %v2629_v28  ;;  %v2549_v48 = vadd.f32 %v2548_v31, %v6930_v6  ;;  %v2520_v38 = vadd.f32 %v2519_v21, %v2486_v34  ;;  %v5547_v22 = vld [vmem:[#allocation2 + $0x668] sm:$0xf0]  ;;  %v5537_v31 = vld [vmem:[#allocation2 + $0x650] sm:$0xf]  ;;  %v6156_v34 = vld [vmem:[#allocation2 + $0x654] sm:$0xf0] }
 0x3b2   : > { %v2584_v35 = vpop.f32.mrf.mxu3  ;;  %v5610_v29 = vor.u32 %v6174_v26, %v5609_v37 }
 0x3b3   : > { %2901 = vmatmul.bf16.gmra.mxu1 %v2647_v60  ;;  %2969 = vmatmul.bf16.gmra.mxu3 %v2647_v60  ;;  %v2583_v43 = vadd.f32 %v2582_v11, %v2549_v48  ;;  %v2616_v14 = vadd.f32 %v6956_v15, %v2520_v38  ;;  %v6175_v11 = vld [vmem:[#allocation2 + $0x6f4] sm:$0xf]  ;;  %v5550_v48 = vor.u32 %v6157_v33, %v5547_v22  ;;  %v5611_v38 = vld [vmem:[#allocation2 + $0x6e8] sm:$0xf0] }
 0x3b4   : > { %v5622_v23 = vor.u32 %v6175_v11, %v5619_v18  ;;  %3255 = vmatpush.bf16.msrb.mxu1 %v5610_v29  ;;  %v5523_v29 = vld [vmem:[#allocation2 + $0x638] sm:$0xf0] }
 0x3b5   : > { %v2613_v24 = vadd.f32 %v6965_v44, %v2583_v43  ;;  %v2636_v52 = vmax.f32 %v2616_v14, 0.0  ;;  %v5538_v43 = vor.u32 %v6156_v34, %v5537_v31  ;;  %v6155_v14 = vld [vmem:[#allocation2 + $0x654] sm:$0xf]  ;;  %v5513_v31 = vld [vmem:[#allocation2 + $0x620] sm:$0xf] }
 0x3b6   : > { %v2487_v40 = vpop.f32.mrf.mxu0  ;;  %3322 = vmatpush.bf16.msra.mxu3 %v5622_v23  ;;  %v6150_v34 = vld [vmem:[#allocation2 + $0x624] sm:$0xf0] }
 0x3b7   : > { %v2488_v45 = vadd.f32 %v2487_v40, %v6944_v42  ;;  %v2633_v55 = vmax.f32 %v2613_v24, 0.0  ;;  %v5601_v40 = vld [vmem:[#allocation2 + $0x6d0] sm:$0xf] }
 0x3b8   : > { %v2550_v32 = vpop.f32.mrf.mxu2  ;;  %v2524_v62 = vpop.f32.mrf.mxu1 }
 0x3b9   : > { %v2522_v47 = vadd.f32 %v2521_v36, %v2488_v45  ;;  %v2551_v50 = vadd.f32 %v2550_v32, %v6934_v12  ;;  %v6173_v36 = vld [vmem:[#allocation2 + $0x6e4] sm:$0xf]  ;;  %v6172_v32 = vld [vmem:[#allocation2 + $0x6d4] sm:$0xf0] }
 0x3ba   : > { %v2587_v6 = vpop.f32.mrf.mxu3  ;;  %v5614_v45 = vor.u32 %v6173_v36, %v5611_v38  ;;  %v5577_v36 = vld [vmem:[#allocation2 + $0x6a0] sm:$0xf]  ;;  %v6166_v38 = vld [vmem:[#allocation2 + $0x6a4] sm:$0xf0] }
 0x3bb   : > { %v2618_v49 = vadd.f32 %v6956_v15, %v2522_v47  ;;  %v2585_v56 = vadd.f32 %v2584_v35, %v2551_v50  ;;  %v5539_v47 = vld [vmem:[#allocation2 + $0x658] sm:$0xf0] }
 0x3bc   : > { %3323 = vmatpush.bf16.msra.mxu3 %v5614_v45  ;;  %v5505_v45 = vld [vmem:[#allocation2 + $0x610] sm:$0xf] }
 0x3bd   : > { %v2615_v53 = vadd.f32 %v6965_v44, %v2585_v56  ;;  %v2638_v20 = vmax.f32 %v2618_v49, 0.0  ;;  %v5602_v49 = vor.u32 %v6172_v32, %v5601_v40  ;;  %v6154_v56 = vld [vmem:[#allocation2 + $0x644] sm:$0xf0]  ;;  %v5578_v40 = vor.u32 %v6166_v38, %v5577_v36  ;;  %v6148_v32 = vld [vmem:[#allocation2 + $0x614] sm:$0xf0] }
 0x3be   : > { %v2490_v54 = vpop.f32.mrf.mxu0 }
 0x3bf   : > { %v2491_v42 = vadd.f32 %v2490_v54, %v6948_v5  ;;  %v2650_v57 = vpack.c.bf16 %v2638_v20, %v2636_v52  ;;  %v2635_v59 = vmax.f32 %v2615_v53, 0.0  ;;  %v6159_v5 = vld [vmem:[#allocation2 + $0x674] sm:$0xf]  ;;  %v5542_v52 = vor.u32 %v6155_v14, %v5539_v47  ;;  %v5603_v53 = vld [vmem:[#allocation2 + $0x6d8] sm:$0xf0]  ;;  %3256 = vmatpush.bf16.msrb.mxu1 %v5602_v49 }
 0x3c0   : > { %v2553_v46 = vpop.f32.mrf.mxu2  ;;  %v5558_v9 = vor.u32 %v6159_v5, %v5555_v7  ;;  %v2526_v27 = vpop.f32.mrf.mxu1  ;;  %v5593_v20 = vld [vmem:[#allocation2 + $0x6c0] sm:$0xf]  ;;  %v6165_v14 = vld [vmem:[#allocation2 + $0x6a4] sm:$0xf]  ;;  %v5506_v47 = vor.u32 %v6148_v32, %v5505_v45  ;;  %v5569_v49 = vld [vmem:[#allocation2 + $0x690] sm:$0xf] }
 0x3c1   : > { %v2525_v61 = vadd.f32 %v2524_v62, %v2491_v42  ;;  %2877 = vmatmul.bf16.gmra.mxu0 %v2650_v57  ;;  %2945 = vmatmul.bf16.gmra.mxu2 %v2650_v57  ;;  %v2649_v12 = vpack.c.bf16 %v2635_v59, %v2633_v55  ;;  %v2554_v0 = vadd.f32 %v2553_v46, %v6938_v39  ;;  %v6170_v62 = vld [vmem:[#allocation2 + $0x6c4] sm:$0xf0]  ;;  %v6153_v57 = vld [vmem:[#allocation2 + $0x644] sm:$0xf]  ;;  %v5531_v59 = vld [vmem:[#allocation2 + $0x648] sm:$0xf0] }
 0x3c2   : > { %v2589_v30 = vpop.f32.mrf.mxu3  ;;  %v5546_v39 = vor.u32 %v6158_v17, %v5545_v58  ;;  %3288 = vmatpush.bf16.msra.mxu2 %v5558_v9  ;;  %v5594_v5 = vor.u32 %v6170_v62, %v5593_v20  ;;  %v5534_v7 = vor.u32 %v6153_v57, %v5531_v59  ;;  %v5585_v9 = vld [vmem:[#allocation2 + $0x6b0] sm:$0xf]  ;;  %v6168_v58 = vld [vmem:[#allocation2 + $0x6b4] sm:$0xf0]  ;;  %v5497_v20 = vld [vmem:[#allocation2 + $0x600] sm:$0xf] }
 0x3c3   : > { %v6992_v1 = vadd.f32 %v6956_v15, %v2525_v61  ;;  %2906 = vmatmul.bf16.gmra.mxu1 %v2649_v12  ;;  %2974 = vmatmul.bf16.gmra.mxu3 %v2649_v12  ;;  %v2588_v16 = vadd.f32 %v2587_v6, %v2554_v0  ;;  %v6171_v6 = vld [vmem:[#allocation2 + $0x6d4] sm:$0xf]  ;;  %v5521_v61 = vld [vmem:[#allocation2 + $0x630] sm:$0xf]  ;;  %v6152_v12 = vld [vmem:[#allocation2 + $0x634] sm:$0xf0] }
 0x3c4   : > { %3221 = vmatpush.bf16.msrb.mxu0 %v5546_v39  ;;  %v5606_v46 = vor.u32 %v6171_v6, %v5603_v53  ;;  %v5522_v17 = vor.u32 %v6152_v12, %v5521_v61  ;;  %3257 = vmatpush.bf16.msrb.mxu1 %v5594_v5  ;;  %v6147_v6 = vld [vmem:[#allocation2 + $0x614] sm:$0xf]  ;;  %v6146_v62 = vld [vmem:[#allocation2 + $0x604] sm:$0xf0]  ;;  %v5571_v59 = vld [vmem:[#allocation2 + $0x698] sm:$0xf0] }
 0x3c5   : > { %v2640_v54 = vmax.f32 %v6992_v1, 0.0  ;;  %v6163_v57 = vld [vmem:[#allocation2 + $0x694] sm:$0xf]  ;;  %v5561_v61 = vld [vmem:[#allocation2 + $0x680] sm:$0xf] }
 0x3c6   : > { %v2492_v21 = vpop.f32.mrf.mxu0  ;;  %3289 = vmatpush.bf16.msra.mxu2 %v5550_v48  ;;  %3324 = vmatpush.bf16.msra.mxu3 %v5606_v46  ;;  %v5574_v46 = vor.u32 %v6163_v57, %v5571_v59  ;;  %v6162_v12 = vld [vmem:[#allocation2 + $0x684] sm:$0xf0] }
 0x3c7   : > { %v2493_v51 = vadd.f32 %v2492_v21, %v6959_v19  ;;  %v2617_v19 = vadd.f32 %v6965_v44, %v2588_v16  ;;  %v5598_v16 = vor.u32 %v6169_v41, %v5595_v13  ;;  %v5586_v21 = vor.u32 %v6168_v58, %v5585_v9  ;;  %v5563_v41 = vld [vmem:[#allocation2 + $0x688] sm:$0xf0] }
 0x3c8   : > { %v2555_v28 = vpop.f32.mrf.mxu2  ;;  %3222 = vmatpush.bf16.msrb.mxu0 %v5538_v43 }
 0x3c9   : > { %v2527_v60 = vadd.f32 %v2526_v27, %v2493_v51  ;;  %v2556_v35 = vadd.f32 %v2555_v28, %v6942_v25  ;;  %v5529_v25 = vld [vmem:[#allocation2 + $0x640] sm:$0xf]  ;;  %v2637_v0 = vmax.f32 %v2617_v19, 0.0  ;;  %3258 = vmatpush.bf16.msrb.mxu1 %v5586_v21  ;;  %v6151_v28 = vld [vmem:[#allocation2 + $0x634] sm:$0xf] }
 0x3ca   : > { %3290 = vmatpush.bf16.msra.mxu2 %v5542_v52  ;;  %v2592_v4 = vpop.f32.mrf.mxu3  ;;  %3325 = vmatpush.bf16.msra.mxu3 %v5598_v16  ;;  %v5526_v22 = vor.u32 %v6151_v28, %v5523_v29  ;;  %v5515_v19 = vld [vmem:[#allocation2 + $0x628] sm:$0xf0]  ;;  %v5507_v52 = vld [vmem:[#allocation2 + $0x618] sm:$0xf0] }
 0x3cb   : > { %v2622_v50 = vadd.f32 %v6956_v15, %v2527_v60  ;;  %v2590_v24 = vadd.f32 %v2589_v30, %v2556_v35  ;;  %v5530_v15 = vor.u32 %v6154_v56, %v5529_v25  ;;  %v6167_v60 = vld [vmem:[#allocation2 + $0x6b4] sm:$0xf]  ;;  %v5514_v35 = vor.u32 %v6150_v34, %v5513_v31  ;;  %v6164_v25 = vld [vmem:[#allocation2 + $0x694] sm:$0xf0] }
 0x3cc   : > { %v5570_v56 = vor.u32 %v6164_v25, %v5569_v49  ;;  %v5510_v53 = vor.u32 %v6147_v6, %v5507_v52 }
 0x3cd   : > { %v2619_v55 = vadd.f32 %v6965_v44, %v2590_v24  ;;  %v2642_v42 = vmax.f32 %v2622_v50, 0.0  ;;  %3223 = vmatpush.bf16.msrb.mxu0 %v5530_v15  ;;  %3259 = vmatpush.bf16.msrb.mxu1 %v5578_v40  ;;  %v5579_v50 = vld [vmem:[#allocation2 + $0x6a8] sm:$0xf0] }
 0x3ce   : > { %3291 = vmatpush.bf16.msra.mxu2 %v5534_v7  ;;  %v5582_v24 = vor.u32 %v6165_v14, %v5579_v50  ;;  %v5365_v7 = vld [vmem:[%s7434_s4 + $0x6] ss:$8 sm:$0x3] }
 0x3cf   : > { %v2652_v2 = vpack.c.bf16 %v2642_v42, %v2640_v54  ;;  %v2639_v3 = vmax.f32 %v2619_v55, 0.0  ;;  %v6145_v54 = vld [vmem:[#allocation2 + $0x604] sm:$0xf]  ;;  %v5498_v55 = vor.u32 %v6146_v62, %v5497_v20  ;;  %v5499_v42 = vld [vmem:[#allocation2 + $0x608] sm:$0xf0]  ;;  %v7007_v58 = vperm.slane %v5365_v7, 0 }
 0x3d0   : > { %v2558_v1 = vpop.f32.mrf.mxu2  ;;  %v5502_v15 = vor.u32 %v6145_v54, %v5499_v42  ;;  %v7010_v21 = vperm.slane %v5365_v7, 1 }
 0x3d1   : > { %2882 = vmatmul.bf16.gmra.mxu0 %v2652_v2  ;;  %2950 = vmatmul.bf16.gmra.mxu2 %v2652_v2  ;;  %v2651_v8 = vpack.c.bf16 %v2639_v3, %v2637_v0  ;;  %v2559_v30 = vadd.f32 %v2558_v1, %v6946_v63  ;;  %v5562_v2 = vor.u32 %v6162_v12, %v5561_v61  ;;  %v6161_v3 = vld [vmem:[#allocation2 + $0x684] sm:$0xf] }
 0x3d2   : > { %3224 = vmatpush.bf16.msrb.mxu0 %v5522_v17  ;;  %v2594_v37 = vpop.f32.mrf.mxu3  ;;  %3292 = vmatpush.bf16.msra.mxu2 %v5526_v22  ;;  %v5566_v13 = vor.u32 %v6161_v3, %v5563_v41 }
 0x3d3   : > { %2911 = vmatmul.bf16.gmra.mxu1 %v2651_v8  ;;  %2979 = vmatmul.bf16.gmra.mxu3 %v2651_v8  ;;  %v2593_v39 = vadd.f32 %v2592_v4, %v2559_v30 }
 0x3d4   : > { %3260 = vmatpush.bf16.msrb.mxu1 %v5570_v56 }
 0x3d5   : > { %v2621_v51 = vadd.f32 %v6965_v44, %v2593_v39 }
 0x3d6   : > { %3225 = vmatpush.bf16.msrb.mxu0 %v5514_v35 }
 0x3d7   : > { %v2641_v33 = vmax.f32 %v2621_v51, 0.0 }
 0x3d8   : > { %v2560_v11 = vpop.f32.mrf.mxu2  ;;  %3261 = vmatpush.bf16.msrb.mxu1 %v5562_v2 }
 0x3d9   : > { %v2561_v18 = vadd.f32 %v2560_v11, %v6954_v10  ;;  %v5587_v10 = vld [vmem:[#allocation2 + $0x6b8] sm:$0xf0] }
 0x3da   : > { %v5590_v48 = vor.u32 %v6167_v60, %v5587_v10  ;;  %3226 = vmatpush.bf16.msrb.mxu0 %v5506_v47 }
 0x3db   : > { %v2595_v23 = vadd.f32 %v2594_v37, %v2561_v18 }
 0x3dc   : > { %3326 = vmatpush.bf16.msra.mxu3 %v5590_v48 }
 0x3dd   : > { %v2623_v26 = vadd.f32 %v6965_v44, %v2595_v23  ;;  %v6149_v44 = vld [vmem:[#allocation2 + $0x624] sm:$0xf] }
 0x3de   : > { %v5518_v43 = vor.u32 %v6149_v44, %v5515_v19  ;;  %3227 = vmatpush.bf16.msrb.mxu0 %v5498_v55 }
 0x3df   : > { %v2643_v63 = vmax.f32 %v2623_v26, 0.0 }
 0x3e0   : > { %3293 = vmatpush.bf16.msra.mxu2 %v5518_v43  ;;  %3327 = vmatpush.bf16.msra.mxu3 %v5582_v24 }
 0x3e1   : > { %v2653_v27 = vpack.c.bf16 %v2643_v63, %v2641_v33 }
 0x3e3   : > { %2916 = vmatmul.bf16.gmra.mxu1 %v2653_v27  ;;  %2984 = vmatmul.bf16.gmra.mxu3 %v2653_v27 }
 0x3e4   : > { %3294 = vmatpush.bf16.msra.mxu2 %v5510_v53  ;;  %3328 = vmatpush.bf16.msra.mxu3 %v5574_v46 }
 0x3e8   : > { %3295 = vmatpush.bf16.msra.mxu2 %v5502_v15  ;;  %3329 = vmatpush.bf16.msra.mxu3 %v5566_v13 }
 0x40e   : > { %v2863_v0 = vpop.f32.mrf.mxu0 }
 0x40f   : > { %v2864_v16 = vadd.f32 %v2863_v0, %v7007_v58 }
 0x414   : > { %v2931_v4 = vpop.f32.mrf.mxu2 }
 0x415   : > { %v2932_v23 = vadd.f32 %v2931_v4, %v7010_v21 }
 0x416   : > { %v2865_v1 = vpop.f32.mrf.mxu0 }
 0x417   : > { %v2866_v39 = vadd.f32 %v2865_v1, %v7007_v58 }
 0x41c   : > { %v2933_v5 = vpop.f32.mrf.mxu2 }
 0x41d   : > { %v2934_v63 = vadd.f32 %v2933_v5, %v7010_v21 }
 0x41e   : > { %v2868_v8 = vpop.f32.mrf.mxu0 }
 0x41f   : > { %v2869_v36 = vadd.f32 %v2868_v8, %v7007_v58 }
 0x420   : > { %v2897_v9 = vpop.f32.mrf.mxu1 }
 0x421   : > { %v2898_v11 = vadd.f32 %v2897_v9, %v2864_v16  ;;  %v5682_v16 = vld [vmem:[#allocation2 + $0x770] sm:$0xf] }
 0x423   : > { %v2990_v26 = vmax.f32 %v2898_v11, 0.0 }
 0x424   : > { %v2936_v17 = vpop.f32.mrf.mxu2 }
 0x425   : > { %v2937_v32 = vadd.f32 %v2936_v17, %v7010_v21 }
 0x426   : > { %v2965_v30 = vpop.f32.mrf.mxu3  ;;  %v2870_v18 = vpop.f32.mrf.mxu0 }
 0x427   : > { %v2966_v27 = vadd.f32 %v2965_v30, %v2932_v23  ;;  %v2871_v40 = vadd.f32 %v2870_v18, %v7007_v58  ;;  %v6192_v30 = vld [vmem:[#allocation2 + $0x774] sm:$0xf0]  ;;  %v5746_v23 = vld [vmem:[#allocation2 + $0x7f0] sm:$0xf] }
 0x428   : > { %v2899_v37 = vpop.f32.mrf.mxu1 }
 0x429   : > { %v2900_v51 = vadd.f32 %v2899_v37, %v2866_v39  ;;  %v2991_v60 = vmax.f32 %v2966_v27, 0.0  ;;  %v5683_v39 = vor.u32 %v6192_v30, %v5682_v16  ;;  %v5674_v37 = vld [vmem:[#allocation2 + $0x760] sm:$0xf]  ;;  %v6208_v27 = vld [vmem:[#allocation2 + $0x7f4] sm:$0xf0] }
 0x42b   : > { %v2992_v33 = vmax.f32 %v2900_v51, 0.0  ;;  %3586 = vmatpush.bf16.msra.mxu0 %v5683_v39  ;;  %v6190_v51 = vld [vmem:[#allocation2 + $0x764] sm:$0xf0] }
 0x42c   : > { %v2938_v29 = vpop.f32.mrf.mxu2 }
 0x42d   : > { %v3010_v28 = vpack.c.bf16 %v2992_v33, %v2990_v26  ;;  %v2939_v24 = vadd.f32 %v2938_v29, %v7010_v21  ;;  %v5684_v29 = vld [vmem:[#allocation2 + $0x778] sm:$0xf0] }
 0x42e   : > { %v2967_v22 = vpop.f32.mrf.mxu3  ;;  %v2873_v10 = vpop.f32.mrf.mxu0 }
 0x42f   : > { %v2968_v31 = vadd.f32 %v2967_v22, %v2934_v63  ;;  %3228 = vmatmul.bf16.vlgmr.msrb.gmra.mxu0 %v3010_v28  ;;  %3296 = vmatmul.bf16.vlgmr.msra.gmra.mxu2 %v3010_v28  ;;  %v2874_v55 = vadd.f32 %v2873_v10, %v7007_v58  ;;  %v5675_v63 = vor.u32 %v6190_v51, %v5674_v37  ;;  %v6191_v28 = vld [vmem:[#allocation2 + $0x774] sm:$0xf]  ;;  %v5748_v10 = vld [vmem:[#allocation2 + $0x7f8] sm:$0xf0] }
 0x430   : > { %v2902_v34 = vpop.f32.mrf.mxu1 }
 0x431   : > { %v2993_v35 = vmax.f32 %v2968_v31, 0.0  ;;  %v2903_v44 = vadd.f32 %v2902_v34, %v2869_v36  ;;  %v5747_v34 = vor.u32 %v6208_v27, %v5746_v23  ;;  %3587 = vmatpush.bf16.msra.mxu0 %v5675_v63  ;;  %v5642_v23 = vld [vmem:[#allocation2 + $0x720] sm:$0xf]  ;;  %v5714_v27 = vld [vmem:[#allocation2 + $0x7b0] sm:$0xf] }
 0x433   : > { %v3011_v48 = vpack.c.bf16 %v2993_v35, %v2991_v60  ;;  %v2994_v14 = vmax.f32 %v2903_v44, 0.0  ;;  %v5687_v60 = vor.u32 %v6191_v28, %v5684_v29  ;;  %v6207_v35 = vld [vmem:[#allocation2 + $0x7f4] sm:$0xf]  ;;  %v5738_v44 = vld [vmem:[#allocation2 + $0x7e0] sm:$0xf]  ;;  %3620 = vmatpush.bf16.msra.mxu1 %v5747_v34 }
 0x434   : > { %v2941_v19 = vpop.f32.mrf.mxu2  ;;  %v5652_v34 = vld [vmem:[#allocation2 + $0x738] sm:$0xf0] }
 0x435   : > { %3262 = vmatmul.bf16.vlgmr.msrb.gmra.mxu1 %v3011_v48  ;;  %3330 = vmatmul.bf16.vlgmr.msra.gmra.mxu3 %v3011_v48  ;;  %v2942_v12 = vadd.f32 %v2941_v19, %v7010_v21  ;;  %v5666_v48 = vld [vmem:[#allocation2 + $0x750] sm:$0xf]  ;;  %v6206_v19 = vld [vmem:[#allocation2 + $0x7e4] sm:$0xf0] }
 0x436   : > { %v2970_v38 = vpop.f32.mrf.mxu3  ;;  %v2875_v50 = vpop.f32.mrf.mxu0  ;;  %3654 = vmatpush.bf16.msrb.mxu2 %v5687_v60 }
 0x437   : > { %v2971_v49 = vadd.f32 %v2970_v38, %v2937_v32  ;;  %v2876_v59 = vadd.f32 %v2875_v50, %v7007_v58  ;;  %v5751_v38 = vor.u32 %v6207_v35, %v5748_v10  ;;  %v5739_v32 = vor.u32 %v6206_v19, %v5738_v44  ;;  %v6199_v10 = vld [vmem:[#allocation2 + $0x7b4] sm:$0xf] }
 0x438   : > { %v2904_v43 = vpop.f32.mrf.mxu1 }
 0x439   : > { %v2905_v45 = vadd.f32 %v2904_v43, %v2871_v40  ;;  %v2995_v53 = vmax.f32 %v2971_v49, 0.0  ;;  %v6188_v40 = vld [vmem:[#allocation2 + $0x754] sm:$0xf0]  ;;  %3688 = vmatpush.bf16.msrb.mxu3 %v5751_v38  ;;  %v6205_v49 = vld [vmem:[#allocation2 + $0x7e4] sm:$0xf]  ;;  %3621 = vmatpush.bf16.msra.mxu1 %v5739_v32 }
 0x43b   : > { %v2996_v47 = vmax.f32 %v2905_v45, 0.0  ;;  %v5667_v45 = vor.u32 %v6188_v40, %v5666_v48  ;;  %v5716_v48 = vld [vmem:[#allocation2 + $0x7b8] sm:$0xf0] }
 0x43c   : > { %v2943_v62 = vpop.f32.mrf.mxu2 }
 0x43d   : > { %v3012_v25 = vpack.c.bf16 %v2996_v47, %v2994_v14  ;;  %v2944_v41 = vadd.f32 %v2943_v62, %v7010_v21  ;;  %v6189_v14 = vld [vmem:[#allocation2 + $0x764] sm:$0xf]  ;;  %v5676_v47 = vld [vmem:[#allocation2 + $0x768] sm:$0xf0]  ;;  %v6186_v62 = vld [vmem:[#allocation2 + $0x744] sm:$0xf0]  ;;  %3588 = vmatpush.bf16.msra.mxu0 %v5667_v45  ;;  %v5719_v45 = vor.u32 %v6199_v10, %v5716_v48 }
 0x43e   : > { %v2972_v56 = vpop.f32.mrf.mxu3  ;;  %v2878_v42 = vpop.f32.mrf.mxu0  ;;  %v6214_v10 = vld [vmem:[%s7438_s8 + $0x28] sm:$0xff] }
 0x43f   : > { %v2973_v6 = vadd.f32 %v2972_v56, %v2939_v24  ;;  %3233 = vmatmul.bf16.gmra.mxu0 %v3012_v25  ;;  %3301 = vmatmul.bf16.gmra.mxu2 %v3012_v25  ;;  %v2879_v18 = vadd.f32 %v2878_v42, %v7007_v58  ;;  %v5679_v24 = vor.u32 %v6189_v14, %v5676_v47  ;;  %v5740_v25 = vld [vmem:[#allocation2 + $0x7e8] sm:$0xf0]  ;;  %v5658_v56 = vld [vmem:[#allocation2 + $0x740] sm:$0xf] }
 0x440   : > { %v2907_v52 = vpop.f32.mrf.mxu1  ;;  %v5659_v42 = vor.u32 %v6186_v62, %v5658_v56 }
 0x441   : > { %v2997_v20 = vmax.f32 %v2973_v6, 0.0  ;;  %v2908_v15 = vadd.f32 %v2907_v52, %v2874_v55  ;;  %3655 = vmatpush.bf16.msrb.mxu2 %v5679_v24 }
 0x442   : > { %3589 = vmatpush.bf16.msra.mxu0 %v5659_v42  ;;  %v5706_v42 = vld [vmem:[#allocation2 + $0x7a0] sm:$0xf] }
 0x443   : > { %v3013_v54 = vpack.c.bf16 %v2997_v20, %v2995_v53  ;;  %v2998_v0 = vmax.f32 %v2908_v15, 0.0  ;;  %v5743_v20 = vor.u32 %v6205_v49, %v5740_v25  ;;  %v5668_v15 = vld [vmem:[#allocation2 + $0x758] sm:$0xf0] }
 0x444   : > { %v2946_v3 = vpop.f32.mrf.mxu2 }
 0x445   : > { %3267 = vmatmul.bf16.gmra.mxu1 %v3013_v54  ;;  %3335 = vmatmul.bf16.gmra.mxu3 %v3013_v54  ;;  %v2947_v6 = vadd.f32 %v2946_v3, %v7010_v21  ;;  %v5730_v54 = vld [vmem:[#allocation2 + $0x7d0] sm:$0xf] }
 0x446   : > { %v2975_v57 = vpop.f32.mrf.mxu3  ;;  %v2880_v7 = vpop.f32.mrf.mxu0  ;;  %v5650_v3 = vld [vmem:[#allocation2 + $0x730] sm:$0xf]  ;;  %3689 = vmatpush.bf16.msrb.mxu3 %v5743_v20 }
 0x447   : > { %v2976_v13 = vadd.f32 %v2975_v57, %v2942_v12  ;;  %v2881_v22 = vadd.f32 %v2880_v7, %v7007_v58  ;;  %v6204_v57 = vld [vmem:[#allocation2 + $0x7d4] sm:$0xf0] }
 0x448   : > { %v2909_v46 = vpop.f32.mrf.mxu1  ;;  %v5731_v12 = vor.u32 %v6204_v57, %v5730_v54  ;;  %v5634_v54 = vld [vmem:[#allocation2 + $0x710] sm:$0xf] }
 0x449   : > { %v2910_v61 = vadd.f32 %v2909_v46, %v2876_v59  ;;  %v2999_v9 = vmax.f32 %v2976_v13, 0.0  ;;  %v6187_v59 = vld [vmem:[#allocation2 + $0x754] sm:$0xf] }
 0x44a   : > { %v5671_v13 = vor.u32 %v6187_v59, %v5668_v15  ;;  %3622 = vmatpush.bf16.msra.mxu1 %v5731_v12  ;;  %v6198_v59 = vld [vmem:[#allocation2 + $0x7a4] sm:$0xf0]  ;;  %v6181_v15 = vld [vmem:[#allocation2 + $0x724] sm:$0xf] }
 0x44b   : > { %v3000_v2 = vmax.f32 %v2910_v61, 0.0  ;;  %v6197_v12 = vld [vmem:[#allocation2 + $0x7a4] sm:$0xf] }
 0x44c   : > { %v2948_v26 = vpop.f32.mrf.mxu2  ;;  %3656 = vmatpush.bf16.msrb.mxu2 %v5671_v13 }
 0x44d   : > { %v3014_v4 = vpack.c.bf16 %v3000_v2, %v2998_v0  ;;  %v2949_v55 = vadd.f32 %v2948_v26, %v7010_v21  ;;  %v6203_v0 = vld [vmem:[#allocation2 + $0x7d4] sm:$0xf]  ;;  %v5732_v2 = vld [vmem:[#allocation2 + $0x7d8] sm:$0xf0]  ;;  %v6182_v26 = vld [vmem:[#allocation2 + $0x724] sm:$0xf0] }
 0x44e   : > { %v2977_v1 = vpop.f32.mrf.mxu3  ;;  %v7025_v50 = vpop.f32.mrf.mxu0  ;;  %v5643_v35 = vor.u32 %v6182_v26, %v5642_v23  ;;  %v6193_v23 = vld [vmem:[#allocation2 + $0x784] sm:$0xf] }
 0x44f   : > { %v2978_v5 = vadd.f32 %v2977_v1, %v2944_v41  ;;  %3238 = vmatmul.bf16.gmra.mxu0 %v3014_v4  ;;  %3306 = vmatmul.bf16.gmra.mxu2 %v3014_v4  ;;  %v5735_v4 = vor.u32 %v6203_v0, %v5732_v2  ;;  %v6184_v1 = vld [vmem:[#allocation2 + $0x734] sm:$0xf0]  ;;  %v5708_v0 = vld [vmem:[#allocation2 + $0x7a8] sm:$0xf0]  ;;  %v5626_v2 = vld [vmem:[#allocation2 + $0x700] sm:$0xf] }
 0x450   : > { %v2912_v8 = vpop.f32.mrf.mxu1  ;;  %v5651_v39 = vor.u32 %v6184_v1, %v5650_v3  ;;  %v5711_v3 = vor.u32 %v6197_v12, %v5708_v0  ;;  %v5636_v1 = vld [vmem:[#allocation2 + $0x718] sm:$0xf0] }
 0x451   : > { %v3001_v17 = vmax.f32 %v2978_v5, 0.0  ;;  %v2913_v31 = vadd.f32 %v2912_v8, %v2879_v18  ;;  %v5722_v5 = vld [vmem:[#allocation2 + $0x7c0] sm:$0xf]  ;;  %v6202_v8 = vld [vmem:[#allocation2 + $0x7c4] sm:$0xf0]  ;;  %3690 = vmatpush.bf16.msrb.mxu3 %v5735_v4  ;;  %v6212_v12 = vld [vmem:[%s7438_s8 + $0x18] sm:$0xff] }
 0x452   : > { %v5724_v18 = vld [vmem:[#allocation2 + $0x7c8] sm:$0xf0]  ;;  %3590 = vmatpush.bf16.msra.mxu0 %v5651_v39  ;;  %v6179_v4 = vld [vmem:[#allocation2 + $0x714] sm:$0xf] }
 0x453   : > { %v3015_v11 = vpack.c.bf16 %v3001_v17, %v2999_v9  ;;  %v3002_v52 = vmax.f32 %v2913_v31, 0.0  ;;  %v6185_v9 = vld [vmem:[#allocation2 + $0x744] sm:$0xf]  ;;  %v5660_v17 = vld [vmem:[#allocation2 + $0x748] sm:$0xf0] }
 0x454   : > { %v2951_v16 = vpop.f32.mrf.mxu2  ;;  %v5663_v63 = vor.u32 %v6185_v9, %v5660_v17  ;;  %v6183_v31 = vld [vmem:[#allocation2 + $0x734] sm:$0xf]  ;;  %v5698_v17 = vld [vmem:[#allocation2 + $0x790] sm:$0xf] }
 0x455   : > { %3272 = vmatmul.bf16.gmra.mxu1 %v3015_v11  ;;  %3340 = vmatmul.bf16.gmra.mxu3 %v3015_v11  ;;  %v6201_v11 = vld [vmem:[#allocation2 + $0x7c4] sm:$0xf]  ;;  %v5655_v44 = vor.u32 %v6183_v31, %v5652_v34 }
 0x456   : > { %v2980_v33 = vpop.f32.mrf.mxu3  ;;  %v5727_v29 = vor.u32 %v6201_v11, %v5724_v18  ;;  %v2885_v60 = vpop.f32.mrf.mxu0  ;;  %3657 = vmatpush.bf16.msrb.mxu2 %v5663_v63  ;;  %3591 = vmatpush.bf16.msra.mxu0 %v5643_v35  ;;  %v5700_v11 = vld [vmem:[#allocation2 + $0x798] sm:$0xf0] }
 0x457   : > { %v2981_v46 = vadd.f32 %v2980_v33, %v2947_v6  ;;  %v5723_v33 = vor.u32 %v6202_v8, %v5722_v5  ;;  %v2886_v19 = vadd.f32 %v2885_v60, %v7007_v58  ;;  %v5639_v5 = vor.u32 %v6179_v4, %v5636_v1  ;;  %v5628_v8 = vld [vmem:[#allocation2 + $0x708] sm:$0xf0] }
 0x458   : > { %v2914_v36 = vpop.f32.mrf.mxu1  ;;  %3691 = vmatpush.bf16.msrb.mxu3 %v5727_v29  ;;  %v6215_v29 = vld [vmem:[%s7438_s8 + $0x30] sm:$0xff] }
 0x459   : > { %v2915_v43 = vadd.f32 %v2914_v36, %v2881_v22  ;;  %v3003_v37 = vmax.f32 %v2981_v46, 0.0  ;;  %v6200_v22 = vld [vmem:[#allocation2 + $0x7b4] sm:$0xf0]  ;;  %v2884_v36 = vadd.f32 %v7025_v50, %v7007_v58  ;;  %3623 = vmatpush.bf16.msra.mxu1 %v5723_v33  ;;  %v2952_v50 = vadd.f32 %v2951_v16, %v7010_v21  ;;  %v5644_v46 = vld [vmem:[#allocation2 + $0x728] sm:$0xf0] }
 0x45a   : > { %v5715_v40 = vor.u32 %v6200_v22, %v5714_v27  ;;  %3658 = vmatpush.bf16.msrb.mxu2 %v5655_v44  ;;  %v6196_v16 = vld [vmem:[#allocation2 + $0x794] sm:$0xf0]  ;;  %v5692_v33 = vld [vmem:[#allocation2 + $0x788] sm:$0xf0] }
 0x45b   : > { %v3004_v53 = vmax.f32 %v2915_v43, 0.0  ;;  %v5699_v39 = vor.u32 %v6196_v16, %v5698_v17  ;;  %v5695_v63 = vor.u32 %v6193_v23, %v5692_v33  ;;  %v6216_v27 = vld [vmem:[%s7438_s8 + $0x38] sm:$0xff]  ;;  %v5494_v22 = vld [vmem:[%s7434_s4 + $0x7] ss:$8 sm:$0x3] }
 0x45c   : > { %v2953_v47 = vpop.f32.mrf.mxu2  ;;  %3692 = vmatpush.bf16.msrb.mxu3 %v5719_v45  ;;  %v7043_v60 = vperm.slane %v5494_v22, 0 }
 0x45d   : > { %v3016_v61 = vpack.c.bf16 %v3004_v53, %v3002_v52  ;;  %3624 = vmatpush.bf16.msra.mxu1 %v5715_v40  ;;  %v2954_v25 = vadd.f32 %v2953_v47, %v7010_v21  ;;  %v5647_v21 = vor.u32 %v6181_v15, %v5644_v46  ;;  %v7049_v40 = vperm.slane %v5494_v22, 1 }
 0x45e   : > { %v2982_v41 = vpop.f32.mrf.mxu3 }
 0x45f   : > { %v2983_v7 = vadd.f32 %v2982_v41, %v2949_v55  ;;  %3243 = vmatmul.bf16.gmra.mxu0 %v3016_v61  ;;  %3311 = vmatmul.bf16.gmra.mxu2 %v3016_v61  ;;  %v6180_v55 = vld [vmem:[#allocation2 + $0x714] sm:$0xf0]  ;;  %v5707_v61 = vor.u32 %v6198_v59, %v5706_v42  ;;  %v6178_v41 = vld [vmem:[#allocation2 + $0x704] sm:$0xf0] }
 0x460   : > { %v2917_v30 = vpop.f32.mrf.mxu1  ;;  %v5635_v57 = vor.u32 %v6180_v55, %v5634_v54  ;;  %3659 = vmatpush.bf16.msrb.mxu2 %v5647_v21  ;;  %v5627_v13 = vor.u32 %v6178_v41, %v5626_v2  ;;  %3693 = vmatpush.bf16.msrb.mxu3 %v5711_v3 }
 0x461   : > { %v3005_v51 = vmax.f32 %v2983_v7, 0.0  ;;  %v2918_v43 = vadd.f32 %v2917_v30, %v2884_v36  ;;  %3625 = vmatpush.bf16.msra.mxu1 %v5707_v61  ;;  %v6177_v7 = vld [vmem:[#allocation2 + $0x704] sm:$0xf]  ;;  %v6195_v30 = vld [vmem:[#allocation2 + $0x794] sm:$0xf] }
 0x462   : > { %3592 = vmatpush.bf16.msra.mxu0 %v5635_v57  ;;  %v5631_v9 = vor.u32 %v6177_v7, %v5628_v8  ;;  %v5703_v18 = vor.u32 %v6195_v30, %v5700_v11  ;;  %v6211_v11 = vld [vmem:[%s7438_s8 + $0x10] sm:$0xff] }
 0x463   : > { %v3017_v28 = vpack.c.bf16 %v3005_v51, %v3003_v37  ;;  %v3006_v24 = vmax.f32 %v2918_v43, 0.0  ;;  %v5690_v37 = vld [vmem:[#allocation2 + $0x780] sm:$0xf]  ;;  %v6194_v51 = vld [vmem:[#allocation2 + $0x784] sm:$0xf0] }
 0x464   : > { %3660 = vmatpush.bf16.msrb.mxu2 %v5639_v5  ;;  %3694 = vmatpush.bf16.msrb.mxu3 %v5703_v18  ;;  %v5691_v26 = vor.u32 %v6194_v51, %v5690_v37  ;;  %v6224_v37 = vld [vmem:[%s7438_s8 + $0x78] sm:$0xff] }
 0x465   : > { %3277 = vmatmul.bf16.gmra.mxu1 %v3017_v28  ;;  %3345 = vmatmul.bf16.gmra.mxu3 %v3017_v28 }
 0x466   : > { %v2985_v38 = vpop.f32.mrf.mxu3  ;;  %3593 = vmatpush.bf16.msra.mxu0 %v5627_v13  ;;  %3626 = vmatpush.bf16.msra.mxu1 %v5699_v39 }
 0x467   : > { %v2986_v56 = vadd.f32 %v2985_v38, %v2952_v50 }
 0x468   : > { %v2919_v32 = vpop.f32.mrf.mxu1  ;;  %3661 = vmatpush.bf16.msrb.mxu2 %v5631_v9  ;;  %3695 = vmatpush.bf16.msrb.mxu3 %v5695_v63 }
 0x469   : > { %v2920_v14 = vadd.f32 %v2919_v32, %v2886_v19  ;;  %v3007_v53 = vmax.f32 %v2986_v56, 0.0 }
 0x46a   : > { %3627 = vmatpush.bf16.msra.mxu1 %v5691_v26  ;;  %3860 = vmatpush.bf16.msrb.mxu0 %v6216_v27 }
 0x46b   : > { %v3008_v49 = vmax.f32 %v2920_v14, 0.0 }
 0x46d   : > { %v3018_v6 = vpack.c.bf16 %v3008_v49, %v3006_v24  ;;  %v6213_v24 = vld [vmem:[%s7438_s8 + $0x20] sm:$0xff] }
 0x46e   : > { %v2987_v52 = vpop.f32.mrf.mxu3  ;;  %3861 = vmatpush.bf16.msrb.mxu0 %v6215_v29  ;;  %3894 = vmatpush.bf16.msrb.mxu1 %v6224_v37  ;;  %v6239_v37 = vld [vmem:[%s7435_s5 + $0x70] sm:$0xff] }
 0x46f   : > { %v2988_v58 = vadd.f32 %v2987_v52, %v2954_v25  ;;  %3248 = vmatmul.bf16.gmra.mxu0 %v3018_v6  ;;  %3316 = vmatmul.bf16.gmra.mxu2 %v3018_v6 }
 0x471   : > { %v3009_v20 = vmax.f32 %v2988_v58, 0.0 }
 0x472   : > { %3862 = vmatpush.bf16.msrb.mxu0 %v6214_v10 }
 0x473   : > { %v3019_v62 = vpack.c.bf16 %v3009_v20, %v3007_v53 }
 0x475   : > { %3282 = vmatmul.bf16.gmra.mxu1 %v3019_v62  ;;  %3350 = vmatmul.bf16.gmra.mxu3 %v3019_v62 }
 0x476   : > { %3863 = vmatpush.bf16.msrb.mxu0 %v6213_v24 }
 0x47a   : > { %3864 = vmatpush.bf16.msrb.mxu0 %v6212_v12  ;;  %v6218_v12 = vld [vmem:[%s7438_s8 + $0x48] sm:$0xff] }
 0x47e   : > { %3865 = vmatpush.bf16.msrb.mxu0 %v6211_v11 }
 0x4ac   : > { %v3229_v28 = vpop.f32.mrf.mxu0 }
 0x4ad   : > { %v3230_v48 = vadd.f32 %v3229_v28, %v7043_v60  ;;  %v6223_v28 = vld [vmem:[%s7438_s8 + $0x70] sm:$0xff] }
 0x4ae   : > { %3895 = vmatpush.bf16.msrb.mxu1 %v6223_v28 }
 0x4b2   : > { %v3263_v31 = vpop.f32.mrf.mxu1  ;;  %v3297_v34 = vpop.f32.mrf.mxu2 }
 0x4b3   : > { %v3264_v38 = vadd.f32 %v3263_v31, %v3230_v48  ;;  %v3298_v47 = vadd.f32 %v3297_v34, %v7049_v40 }
 0x4b4   : > { %v3231_v35 = vpop.f32.mrf.mxu0 }
 0x4b5   : > { %v3232_v44 = vadd.f32 %v3231_v35, %v7043_v60  ;;  %v3356_v14 = vmax.f32 %v3264_v38, 0.0  ;;  %v6210_v35 = vld [vmem:[%s7438_s8 + $0x8] sm:$0xff] }
 0x4b6   : > { %3866 = vmatpush.bf16.msrb.mxu0 %v6210_v35  ;;  %v6222_v38 = vld [vmem:[%s7438_s8 + $0x68] sm:$0xff] }
 0x4b7   : > { %3896 = vmatpush.bf16.msrb.mxu1 %v6222_v38 }
 0x4b8   : > { %v3331_v36 = vpop.f32.mrf.mxu3 }
 0x4b9   : > { %v3332_v49 = vadd.f32 %v3331_v36, %v3298_v47  ;;  %v6221_v47 = vld [vmem:[%s7438_s8 + $0x60] sm:$0xff] }
 0x4ba   : > { %v3265_v19 = vpop.f32.mrf.mxu1  ;;  %v3299_v43 = vpop.f32.mrf.mxu2 }
 0x4bb   : > { %v3266_v45 = vadd.f32 %v3265_v19, %v3232_v44  ;;  %v3300_v56 = vadd.f32 %v3299_v43, %v7049_v40  ;;  %v3357_v20 = vmax.f32 %v3332_v49, 0.0  ;;  %3897 = vmatpush.bf16.msrb.mxu1 %v6221_v47  ;;  %v6236_v47 = vld [vmem:[%s7435_s5 + $0x58] sm:$0xff] }
 0x4bc   : > { %v3234_v32 = vpop.f32.mrf.mxu0 }
 0x4bd   : > { %v3358_v50 = vmax.f32 %v3266_v45, 0.0  ;;  %v3235_v42 = vadd.f32 %v3234_v32, %v7043_v60 }
 0x4bf   : > { %v7056_v25 = vpack.c.bf16 %v3358_v50, %v3356_v14 }
 0x4c0   : > { %v3333_v6 = vpop.f32.mrf.mxu3 }
 0x4c1   : > { %v3334_v52 = vadd.f32 %v3333_v6, %v3300_v56  ;;  %3594 = vmatmul.bf16.vlgmr.msra.gmra.mxu0 %v7056_v25  ;;  %3662 = vmatmul.bf16.vlgmr.msrb.gmra.mxu2 %v7056_v25  ;;  %v6209_v56 = vld [vmem:[%s7438_s8] sm:$0xff]  ;;  %v6220_v6 = vld [vmem:[%s7438_s8 + $0x58] sm:$0xff] }
 0x4c2   : > { %v3268_v58 = vpop.f32.mrf.mxu1  ;;  %v3302_v53 = vpop.f32.mrf.mxu2  ;;  %3867 = vmatpush.bf16.msrb.mxu0 %v6209_v56  ;;  %3898 = vmatpush.bf16.msrb.mxu1 %v6220_v6  ;;  %v495_v56 = vld [vmem:[%s7203_s29 + $0x8] sm:$0xff] }
 0x4c3   : > { %v3359_v62 = vmax.f32 %v3334_v52, 0.0  ;;  %v3269_v59 = vadd.f32 %v3268_v58, %v3235_v42  ;;  %v3303_v3 = vadd.f32 %v3302_v53, %v7049_v40  ;;  %v6242_v52 = vld [vmem:[%s7436_s6 + $0x8] sm:$0xff]  ;;  %v6232_v53 = vld [vmem:[%s7435_s5 + $0x38] sm:$0xff] }
 0x4c4   : > { %v3236_v54 = vpop.f32.mrf.mxu0  ;;  %3998 = vmatpush.bf16.msra.mxu2 %v6242_v52  ;;  %4122 = vmatpush.bf16.msra.mxu3 %v6232_v53  ;;  %v506_v52 = vsel %vm504_vm2, %v495_v56, 0.0  ;;  %v6233_v53 = vld [vmem:[%s7435_s5 + $0x40] sm:$0xff] }
 0x4c5   : > { %v7061_v55 = vpack.c.bf16 %v3359_v62, %v3357_v20  ;;  %v3237_v15 = vadd.f32 %v3236_v54, %v7043_v60  ;;  %v3360_v2 = vmax.f32 %v3269_v59, 0.0 }
 0x4c7   : > { %3628 = vmatmul.bf16.vlgmr.msra.gmra.mxu1 %v7061_v55  ;;  %3696 = vmatmul.bf16.vlgmr.msrb.gmra.mxu3 %v7061_v55 }
 0x4c8   : > { %v3336_v57 = vpop.f32.mrf.mxu3 }
 0x4c9   : > { %v3337_v13 = vadd.f32 %v3336_v57, %v3303_v3  ;;  %v6219_v57 = vld [vmem:[%s7438_s8 + $0x50] sm:$0xff] }
 0x4ca   : > { %v3270_v46 = vpop.f32.mrf.mxu1  ;;  %v3304_v61 = vpop.f32.mrf.mxu2  ;;  %3899 = vmatpush.bf16.msrb.mxu1 %v6219_v57 }
 0x4cb   : > { %v3271_v21 = vadd.f32 %v3270_v46, %v3237_v15  ;;  %v3305_v4 = vadd.f32 %v3304_v61, %v7049_v40  ;;  %v3361_v17 = vmax.f32 %v3337_v13, 0.0 }
 0x4cc   : > { %v3239_v0 = vpop.f32.mrf.mxu0 }
 0x4cd   : > { %v3362_v41 = vmax.f32 %v3271_v21, 0.0  ;;  %v3240_v18 = vadd.f32 %v3239_v0, %v7043_v60 }
 0x4ce   : > { %3900 = vmatpush.bf16.msrb.mxu1 %v6218_v12 }
 0x4cf   : > { %v7072_v1 = vpack.c.bf16 %v3362_v41, %v3360_v2 }
 0x4d0   : > { %v3338_v5 = vpop.f32.mrf.mxu3 }
 0x4d1   : > { %v3339_v7 = vadd.f32 %v3338_v5, %v3305_v4  ;;  %3599 = vmatmul.bf16.gmra.mxu0 %v7072_v1  ;;  %3667 = vmatmul.bf16.gmra.mxu2 %v7072_v1  ;;  %v6240_v4 = vld [vmem:[%s7435_s5 + $0x78] sm:$0xff]  ;;  %v6231_v5 = vld [vmem:[%s7435_s5 + $0x30] sm:$0xff] }
 0x4d2   : > { %v3273_v8 = vpop.f32.mrf.mxu1  ;;  %v3307_v9 = vpop.f32.mrf.mxu2  ;;  %4156 = vmatpush.bf16.msra.mxu0 %v6240_v4  ;;  %4123 = vmatpush.bf16.msra.mxu3 %v6231_v5  ;;  %v498_v5 = vld [vmem:[%s7203_s29 + $0x20] sm:$0xff] }
 0x4d3   : > { %v3363_v16 = vmax.f32 %v3339_v7, 0.0  ;;  %v3274_v23 = vadd.f32 %v3273_v8, %v3240_v18  ;;  %v3308_v31 = vadd.f32 %v3307_v9, %v7049_v40  ;;  %v6217_v9 = vld [vmem:[%s7438_s8 + $0x40] sm:$0xff] }
 0x4d4   : > { %v3241_v30 = vpop.f32.mrf.mxu0  ;;  %3901 = vmatpush.bf16.msrb.mxu1 %v6217_v9  ;;  %v509_v9 = vsel %vm504_vm2, %v498_v5, 0.0 }
 0x4d5   : > { %v7076_v39 = vpack.c.bf16 %v3363_v16, %v3361_v17  ;;  %v3242_v26 = vadd.f32 %v3241_v30, %v7043_v60  ;;  %v3364_v22 = vmax.f32 %v3274_v23, 0.0 }
 0x4d6   : > { %4157 = vmatpush.bf16.msra.mxu0 %v6239_v37 }
 0x4d7   : > { %3633 = vmatmul.bf16.gmra.mxu1 %v7076_v39  ;;  %3701 = vmatmul.bf16.gmra.mxu3 %v7076_v39 }
 0x4d8   : > { %v3341_v51 = vpop.f32.mrf.mxu3 }
 0x4d9   : > { %v3342_v10 = vadd.f32 %v3341_v51, %v3308_v31  ;;  %v6230_v51 = vld [vmem:[%s7435_s5 + $0x28] sm:$0xff] }
 0x4da   : > { %v3275_v33 = vpop.f32.mrf.mxu1  ;;  %v3309_v63 = vpop.f32.mrf.mxu2  ;;  %4124 = vmatpush.bf16.msra.mxu3 %v6230_v51 }
 0x4db   : > { %v3276_v27 = vadd.f32 %v3275_v33, %v3242_v26  ;;  %v3310_v48 = vadd.f32 %v3309_v63, %v7049_v40  ;;  %v3365_v32 = vmax.f32 %v3342_v10, 0.0 }
 0x4dc   : > { %v3244_v29 = vpop.f32.mrf.mxu0 }
 0x4dd   : > { %v3366_v34 = vmax.f32 %v3276_v27, 0.0  ;;  %v3245_v49 = vadd.f32 %v3244_v29, %v7043_v60 }
 0x4df   : > { %v7096_v36 = vpack.c.bf16 %v3366_v34, %v3364_v22 }
 0x4e0   : > { %v3343_v44 = vpop.f32.mrf.mxu3 }
 0x4e1   : > { %v3344_v19 = vadd.f32 %v3343_v44, %v3310_v48  ;;  %3604 = vmatmul.bf16.gmra.mxu0 %v7096_v36  ;;  %3672 = vmatmul.bf16.gmra.mxu2 %v7096_v36 }
 0x4e2   : > { %v3278_v43 = vpop.f32.mrf.mxu1  ;;  %v3312_v45 = vpop.f32.mrf.mxu2 }
 0x4e3   : > { %v3367_v14 = vmax.f32 %v3344_v19, 0.0  ;;  %v3279_v20 = vadd.f32 %v3278_v43, %v3245_v49  ;;  %v3313_v61 = vadd.f32 %v3312_v45, %v7049_v40  ;;  %v6237_v45 = vld [vmem:[%s7435_s5 + $0x60] sm:$0xff] }
 0x4e4   : > { %v3246_v50 = vpop.f32.mrf.mxu0  ;;  %v494_v49 = vld [vmem:[%s7203_s29] sm:$0xff] }
 0x4e5   : > { %v7106_v24 = vpack.c.bf16 %v3367_v14, %v3365_v32  ;;  %v3247_v62 = vadd.f32 %v3246_v50, %v7043_v60  ;;  %v3368_v46 = vmax.f32 %v3279_v20, 0.0  ;;  %v6241_v32 = vld [vmem:[%s7436_s6] sm:$0xff]  ;;  %v6228_v14 = vld [vmem:[%s7435_s5 + $0x18] sm:$0xff]  ;;  %v6235_v50 = vld [vmem:[%s7435_s5 + $0x50] sm:$0xff]  ;;  %v505_v6 = vsel %vm504_vm2, %v494_v49, 0.0 }
 0x4e6   : > { %3999 = vmatpush.bf16.msra.mxu2 %v6241_v32 }
 0x4e7   : > { %3638 = vmatmul.bf16.gmra.mxu1 %v7106_v24  ;;  %3706 = vmatmul.bf16.gmra.mxu3 %v7106_v24 }
 0x4e8   : > { %v3346_v58 = vpop.f32.mrf.mxu3 }
 0x4e9   : > { %v3347_v0 = vadd.f32 %v3346_v58, %v3313_v61  ;;  %v515_v58 = vpack.c.bf16 %v506_v52, %v505_v6 }
 0x4ea   : > { %v3280_v54 = vpop.f32.mrf.mxu1  ;;  %v3314_v42 = vpop.f32.mrf.mxu2 }
 0x4eb   : > { %v3281_v59 = vadd.f32 %v3280_v54, %v3247_v62  ;;  %v3315_v2 = vadd.f32 %v3314_v42, %v7049_v40  ;;  %v3369_v17 = vmax.f32 %v3347_v0, 0.0  ;;  %v496_v62 = vld [vmem:[%s7203_s29 + $0x10] sm:$0xff]  ;;  %v497_v54 = vld [vmem:[%s7203_s29 + $0x18] sm:$0xff] }
 0x4ec   : > { %v3249_v15 = vpop.f32.mrf.mxu0  ;;  %v507_v42 = vsel %vm504_vm2, %v496_v62, 0.0  ;;  %v508_v57 = vsel %vm504_vm2, %v497_v54, 0.0  ;;  %v502_v62 = vld [vmem:[%s7203_s29 + $0x40] sm:$0xff]  ;;  %v503_v54 = vld [vmem:[%s7203_s29 + $0x48] sm:$0xff] }
 0x4ed   : > { %v3370_v21 = vmax.f32 %v3281_v59, 0.0  ;;  %v3250_v18 = vadd.f32 %v3249_v15, %v7043_v60  ;;  %v516_v59 = vpack.c.bf16 %v508_v57, %v507_v42 }
 0x4ef   : > { %v7132_v3 = vpack.c.bf16 %v3370_v21, %v3368_v46 }
 0x4f0   : > { %v3348_v41 = vpop.f32.mrf.mxu3 }
 0x4f1   : > { %v3349_v13 = vadd.f32 %v3348_v41, %v3315_v2  ;;  %3609 = vmatmul.bf16.gmra.mxu0 %v7132_v3  ;;  %3677 = vmatmul.bf16.gmra.mxu2 %v7132_v3 }
 0x4f2   : > { %v3283_v7 = vpop.f32.mrf.mxu1  ;;  %v3317_v8 = vpop.f32.mrf.mxu2 }
 0x4f3   : > { %v3371_v16 = vmax.f32 %v3349_v13, 0.0  ;;  %v3284_v26 = vadd.f32 %v3283_v7, %v3250_v18  ;;  %v3318_v22 = vadd.f32 %v3317_v8, %v7049_v40  ;;  %v499_v7 = vld [vmem:[%s7203_s29 + $0x28] sm:$0xff] }
 0x4f4   : > { %v3251_v11 = vpop.f32.mrf.mxu0 }
 0x4f5   : > { %v7145_v30 = vpack.c.bf16 %v3371_v16, %v3369_v17  ;;  %v3252_v33 = vadd.f32 %v3251_v11, %v7043_v60  ;;  %v3372_v29 = vmax.f32 %v3284_v26, 0.0  ;;  %v6238_v60 = vld [vmem:[%s7435_s5 + $0x68] sm:$0xff]  ;;  %v510_v17 = vsel %vm504_vm2, %v499_v7, 0.0 }
 0x4f6   : > { %4158 = vmatpush.bf16.msra.mxu0 %v6238_v60  ;;  %v517_v16 = vpack.c.bf16 %v510_v17, %v509_v9 }
 0x4f7   : > { %3643 = vmatmul.bf16.gmra.mxu1 %v7145_v30  ;;  %3711 = vmatmul.bf16.gmra.mxu3 %v7145_v30 }
 0x4f8   : > { %v3351_v23 = vpop.f32.mrf.mxu3 }
 0x4f9   : > { %v3352_v34 = vadd.f32 %v3351_v23, %v3318_v22 }
 0x4fa   : > { %v3285_v63 = vpop.f32.mrf.mxu1  ;;  %v3319_v28 = vpop.f32.mrf.mxu2  ;;  %4159 = vmatpush.bf16.msra.mxu0 %v6237_v45 }
 0x4fb   : > { %v3286_v27 = vadd.f32 %v3285_v63, %v3252_v33  ;;  %v3320_v35 = vadd.f32 %v3319_v28, %v7049_v40  ;;  %v3373_v44 = vmax.f32 %v3352_v34, 0.0  ;;  %v6229_v40 = vld [vmem:[%s7435_s5 + $0x20] sm:$0xff] }
 0x4fc   : > { %4125 = vmatpush.bf16.msra.mxu3 %v6229_v40 }
 0x4fd   : > { %v3374_v31 = vmax.f32 %v3286_v27, 0.0 }
 0x4fe   : > { %4160 = vmatpush.bf16.msra.mxu0 %v6236_v47 }
 0x4ff   : > { %v7159_v10 = vpack.c.bf16 %v3374_v31, %v3372_v29 }
 0x500   : > { %v3353_v48 = vpop.f32.mrf.mxu3  ;;  %4126 = vmatpush.bf16.msra.mxu3 %v6228_v14 }
 0x501   : > { %v3354_v38 = vadd.f32 %v3353_v48, %v3320_v35  ;;  %3614 = vmatmul.bf16.gmra.mxu0 %v7159_v10  ;;  %3682 = vmatmul.bf16.gmra.mxu2 %v7159_v10  ;;  %v500_v48 = vld [vmem:[%s7203_s29 + $0x30] sm:$0xff] }
 0x502   : > { %4161 = vmatpush.bf16.msra.mxu0 %v6235_v50 }
 0x503   : > { %v3375_v19 = vmax.f32 %v3354_v38, 0.0  ;;  %v501_v38 = vld [vmem:[%s7203_s29 + $0x38] sm:$0xff] }
 0x505   : > { %v7166_v43 = vpack.c.bf16 %v3375_v19, %v3373_v44  ;;  %v511_v19 = vsel %vm504_vm2, %v500_v48, 0.0 }
 0x507   : > { %3648 = vmatmul.bf16.gmra.mxu1 %v7166_v43  ;;  %3716 = vmatmul.bf16.gmra.mxu3 %v7166_v43 }
 0x511   : > { %3868 = vmatmul.bf16.vlgmr.msrb.gmra.mxu0 %v7056_v25  ;;  %v6227_v25 = vld [vmem:[%s7435_s5 + $0x10] sm:$0xff]  ;;  %5824 = vmatmul.msk.bf16.vlgmr.msra.gmra.mxu2 %vm3976_vm3, %v515_v58 }
 0x512   : > { %4127 = vmatpush.bf16.msra.mxu3 %v6227_v25 }
 0x517   : > { %3902 = vmatmul.bf16.vlgmr.msrb.gmra.mxu1 %v7061_v55  ;;  %v6226_v55 = vld [vmem:[%s7435_s5 + $0x8] sm:$0xff] }
 0x518   : > { %4128 = vmatpush.bf16.msra.mxu3 %v6226_v55 }
 0x521   : > { %3873 = vmatmul.bf16.gmra.mxu0 %v7072_v1  ;;  %v6225_v1 = vld [vmem:[%s7435_s5] sm:$0xff]  ;;  %5825 = vmatmul.msk.bf16.gmra.mxu2 %vm3976_vm3, %v516_v59  ;;  %v513_v59 = vsel %vm504_vm2, %v502_v62, 0.0 }
 0x522   : > { %4129 = vmatpush.bf16.msra.mxu3 %v6225_v1 }
 0x527   : > { %3907 = vmatmul.bf16.gmra.mxu1 %v7076_v39  ;;  %v6234_v39 = vld [vmem:[%s7435_s5 + $0x48] sm:$0xff] }
 0x528   : > { %4162 = vmatpush.bf16.msra.mxu0 %v6234_v39 }
 0x52c   : > { %4163 = vmatpush.bf16.msra.mxu0 %v6233_v53 }
 0x531   : > { %3878 = vmatmul.bf16.gmra.mxu0 %v7096_v36  ;;  %v5623_v36 = vld [vmem:[%s7434_s4 + $0x10] ss:$8 sm:$0x3]  ;;  %5826 = vmatmul.msk.bf16.gmra.mxu2 %vm3976_vm3, %v517_v16 }
 0x532   : > { %v7230_v61 = vperm.slane %v5623_v36, 0  ;;  %v7241_v51 = vperm.slane %v5623_v36, 1  ;;  %v514_v36 = vsel %vm504_vm2, %v503_v54, 0.0  ;;  %v6250_v16 = vld [vmem:[%s7439_s9 + $0x38] sm:$0xff] }
 0x533   : > { %4283 = vmatpush.bf16.msra.mxu1 %v6250_v16 }
 0x537   : > { %3912 = vmatmul.bf16.gmra.mxu1 %v7106_v24 }
 0x53e   : > { %v3595_v20 = vpop.f32.mrf.mxu0 }
 0x53f   : > { %v3596_v12 = vadd.f32 %v3595_v20, %v7230_v61 }
 0x541   : > { %3883 = vmatmul.bf16.gmra.mxu0 %v7132_v3 }
 0x544   : > { %v3629_v24 = vpop.f32.mrf.mxu1  ;;  %v3663_v15 = vpop.f32.mrf.mxu2 }
 0x545   : > { %v3630_v41 = vadd.f32 %v3629_v24, %v3596_v12  ;;  %v3664_v33 = vadd.f32 %v3663_v15, %v7241_v51  ;;  %v519_v24 = vpack.c.bf16 %v514_v36, %v513_v59 }
 0x546   : > { %v3597_v46 = vpop.f32.mrf.mxu0 }
 0x547   : > { %3917 = vmatmul.bf16.gmra.mxu1 %v7145_v30  ;;  %v3598_v0 = vadd.f32 %v3597_v46, %v7230_v61 }
 0x54a   : > { %v3697_v21 = vpop.f32.mrf.mxu3 }
 0x54b   : > { %v3698_v31 = vadd.f32 %v3697_v21, %v3664_v33  ;;  %v6249_v33 = vld [vmem:[%s7439_s9 + $0x30] sm:$0xff] }
 0x54c   : > { %v3631_v2 = vpop.f32.mrf.mxu1  ;;  %v3665_v3 = vpop.f32.mrf.mxu2  ;;  %4284 = vmatpush.bf16.msra.mxu1 %v6249_v33 }
 0x54d   : > { %v3632_v13 = vadd.f32 %v3631_v2, %v3598_v0  ;;  %v3666_v23 = vadd.f32 %v3665_v3, %v7241_v51 }
 0x54e   : > { %v3600_v4 = vpop.f32.mrf.mxu0 }
 0x54f   : > { %v3722_v8 = vpack.c.bf16 %v3632_v13, %v3630_v41  ;;  %v3601_v63 = vadd.f32 %v3600_v4, %v7230_v61 }
 0x551   : > { %3888 = vmatmul.bf16.gmra.mxu0 %v7159_v10  ;;  %4130 = vmatmul.bf16.vlgmr.msra.gmra.mxu3 %v3722_v8 }
 0x552   : > { %v3699_v30 = vpop.f32.mrf.mxu3 }
 0x553   : > { %v3700_v27 = vadd.f32 %v3699_v30, %v3666_v23 }
 0x554   : > { %v3634_v11 = vpop.f32.mrf.mxu1  ;;  %v3668_v18 = vpop.f32.mrf.mxu2 }
 0x555   : > { %v3635_v34 = vadd.f32 %v3634_v11, %v3601_v63  ;;  %v3723_v60 = vpack.c.bf16 %v3700_v27, %v3698_v31  ;;  %v3669_v55 = vadd.f32 %v3668_v18, %v7241_v51 }
 0x556   : > { %v3602_v37 = vpop.f32.mrf.mxu0 }
 0x557   : > { %3922 = vmatmul.bf16.gmra.mxu1 %v7166_v43  ;;  %v3603_v28 = vadd.f32 %v3602_v37, %v7230_v61  ;;  %v512_v43 = vsel %vm504_vm2, %v501_v38, 0.0 }
 0x558   : > { %v518_v40 = vpack.c.bf16 %v512_v43, %v511_v19 }
 0x55a   : > { %v3702_v26 = vpop.f32.mrf.mxu3  ;;  %5827 = vmatmul.msk.bf16.gmra.mxu2 %vm3976_vm3, %v518_v40 }
 0x55b   : > { %v3703_v6 = vadd.f32 %v3702_v26, %v3669_v55 }
 0x55c   : > { %v3636_v29 = vpop.f32.mrf.mxu1  ;;  %v3670_v22 = vpop.f32.mrf.mxu2 }
 0x55d   : > { %v3637_v35 = vadd.f32 %v3636_v29, %v3603_v28  ;;  %v3671_v25 = vadd.f32 %v3670_v22, %v7241_v51 }
 0x55e   : > { %v3605_v10 = vpop.f32.mrf.mxu0 }
 0x55f   : > { %v3724_v44 = vpack.c.bf16 %v3637_v35, %v3635_v34  ;;  %v3606_v1 = vadd.f32 %v3605_v10, %v7230_v61 }
 0x561   : > { %4135 = vmatmul.bf16.gmra.mxu3 %v3724_v44  ;;  %4164 = vmatmul.bf16.vlgmr.msra.gmra.mxu0 %v3723_v60  ;;  %v6248_v44 = vld [vmem:[%s7439_s9 + $0x28] sm:$0xff] }
 0x562   : > { %v3704_v45 = vpop.f32.mrf.mxu3  ;;  %4285 = vmatpush.bf16.msra.mxu1 %v6248_v44 }
 0x563   : > { %v3705_v49 = vadd.f32 %v3704_v45, %v3671_v25 }
 0x564   : > { %v3639_v32 = vpop.f32.mrf.mxu1  ;;  %v3673_v14 = vpop.f32.mrf.mxu2 }
 0x565   : > { %v3640_v52 = vadd.f32 %v3639_v32, %v3606_v1  ;;  %v3725_v42 = vpack.c.bf16 %v3705_v49, %v3703_v6  ;;  %v3674_v3 = vadd.f32 %v3673_v14, %v7241_v51 }
 0x566   : > { %v3607_v47 = vpop.f32.mrf.mxu0 }
 0x567   : > { %v3608_v56 = vadd.f32 %v3607_v47, %v7230_v61 }
 0x56a   : > { %v3707_v50 = vpop.f32.mrf.mxu3  ;;  %5828 = vmatmul.msk.bf16.gmra.mxu2 %vm3976_vm3, %v519_v24  ;;  %v6244_v24 = vld [vmem:[%s7439_s9 + $0x8] sm:$0xff] }
 0x56b   : > { %v3708_v7 = vadd.f32 %v3707_v50, %v3674_v3 }
 0x56c   : > { %v3641_v39 = vpop.f32.mrf.mxu1  ;;  %v3675_v53 = vpop.f32.mrf.mxu2 }
 0x56d   : > { %v3642_v58 = vadd.f32 %v3641_v39, %v3608_v56  ;;  %v3676_v0 = vadd.f32 %v3675_v53, %v7241_v51  ;;  %v6247_v56 = vld [vmem:[%s7439_s9 + $0x20] sm:$0xff] }
 0x56e   : > { %v3610_v20 = vpop.f32.mrf.mxu0  ;;  %4286 = vmatpush.bf16.msra.mxu1 %v6247_v56 }
 0x56f   : > { %v3726_v57 = vpack.c.bf16 %v3642_v58, %v3640_v52  ;;  %v3611_v41 = vadd.f32 %v3610_v20, %v7230_v61 }
 0x571   : > { %4140 = vmatmul.bf16.gmra.mxu3 %v3726_v57  ;;  %4169 = vmatmul.bf16.gmra.mxu0 %v3725_v42  ;;  %v6245_v42 = vld [vmem:[%s7439_s9 + $0x10] sm:$0xff] }
 0x572   : > { %v3709_v15 = vpop.f32.mrf.mxu3 }
 0x573   : > { %v3710_v13 = vadd.f32 %v3709_v15, %v3676_v0 }
 0x574   : > { %v3644_v46 = vpop.f32.mrf.mxu1  ;;  %v3678_v12 = vpop.f32.mrf.mxu2 }
 0x575   : > { %v3645_v8 = vadd.f32 %v3644_v46, %v3611_v41  ;;  %v3727_v30 = vpack.c.bf16 %v3710_v13, %v3708_v7  ;;  %v3679_v27 = vadd.f32 %v3678_v12, %v7241_v51 }
 0x576   : > { %v3612_v21 = vpop.f32.mrf.mxu0 }
 0x577   : > { %v3613_v4 = vadd.f32 %v3612_v21, %v7230_v61 }
 0x57a   : > { %v3712_v2 = vpop.f32.mrf.mxu3 }
 0x57b   : > { %v3713_v35 = vadd.f32 %v3712_v2, %v3679_v27  ;;  %v6243_v2 = vld [vmem:[%s7439_s9] sm:$0xff] }
 0x57c   : > { %v3646_v5 = vpop.f32.mrf.mxu1  ;;  %v3680_v18 = vpop.f32.mrf.mxu2 }
 0x57d   : > { %v3647_v9 = vadd.f32 %v3646_v5, %v3613_v4  ;;  %v3681_v63 = vadd.f32 %v3680_v18, %v7241_v51 }
 0x57e   : > { %v3615_v17 = vpop.f32.mrf.mxu0 }
 0x57f   : > { %v3728_v11 = vpack.c.bf16 %v3647_v9, %v3645_v8  ;;  %v3616_v28 = vadd.f32 %v3615_v17, %v7230_v61 }
 0x581   : > { %4145 = vmatmul.bf16.gmra.mxu3 %v3728_v11  ;;  %4174 = vmatmul.bf16.gmra.mxu0 %v3727_v30 }
 0x582   : > { %v3714_v37 = vpop.f32.mrf.mxu3 }
 0x583   : > { %v3715_v29 = vadd.f32 %v3714_v37, %v3681_v63 }
 0x584   : > { %v3649_v23 = vpop.f32.mrf.mxu1  ;;  %v3683_v31 = vpop.f32.mrf.mxu2 }
 0x585   : > { %v3650_v10 = vadd.f32 %v3649_v23, %v3616_v28  ;;  %v3729_v19 = vpack.c.bf16 %v3715_v29, %v3713_v35  ;;  %v3684_v25 = vadd.f32 %v3683_v31, %v7241_v51 }
 0x586   : > { %v3617_v26 = vpop.f32.mrf.mxu0 }
 0x587   : > { %v3618_v22 = vadd.f32 %v3617_v26, %v7230_v61  ;;  %v7319_v26 = vld [vmem:[%s7437_s7] ss:$0 sm:$0xff] }
 0x58a   : > { %v3717_v38 = vpop.f32.mrf.mxu3 }
 0x58b   : > { %v3718_v1 = vadd.f32 %v3717_v38, %v3684_v25 }
 0x58c   : > { %v3651_v34 = vpop.f32.mrf.mxu1  ;;  %v3685_v61 = vpop.f32.mrf.mxu2 }
 0x58d   : > { %v3652_v48 = vadd.f32 %v3651_v34, %v3618_v22  ;;  %v3686_v47 = vadd.f32 %v3685_v61, %v7241_v51  ;;  %v6246_v51 = vld [vmem:[%s7439_s9 + $0x18] sm:$0xff] }
 0x58e   : > { %v3869_v60 = vpop.f32.mrf.mxu0  ;;  %4287 = vmatpush.bf16.msra.mxu1 %v6246_v51 }
 0x58f   : > { %v3730_v43 = vpack.c.bf16 %v3652_v48, %v3650_v10 }
 0x591   : > { %4150 = vmatmul.bf16.gmra.mxu3 %v3730_v43  ;;  %4179 = vmatmul.bf16.gmra.mxu0 %v3729_v19 }
 0x592   : > { %v3719_v14 = vpop.f32.mrf.mxu3  ;;  %4288 = vmatpush.bf16.msra.mxu1 %v6245_v42 }
 0x593   : > { %v3720_v50 = vadd.f32 %v3719_v14, %v3686_v47 }
 0x594   : > { %v3903_v40 = vpop.f32.mrf.mxu1  ;;  %v4001_v41 = vpop.f32.mrf.mxu2 }
 0x595   : > { %v7279_v45 = vadd.f32 %v3903_v40, %v3869_v60  ;;  %v3731_v6 = vpack.c.bf16 %v3720_v50, %v3718_v1 }
 0x596   : > { %v3871_v32 = vpop.f32.mrf.mxu0  ;;  %4289 = vmatpush.bf16.msra.mxu1 %v6244_v24 }
 0x59a   : > { %4290 = vmatpush.bf16.msra.mxu1 %v6243_v2 }
 0x59c   : > { %v3905_v55 = vpop.f32.mrf.mxu1  ;;  %v4003_v7 = vpop.f32.mrf.mxu2 }
 0x59d   : > { %v7283_v49 = vadd.f32 %v3905_v55, %v3871_v32 }
 0x59e   : > { %v3874_v39 = vpop.f32.mrf.mxu0 }
 0x5a1   : > { %4184 = vmatmul.bf16.gmra.mxu0 %v3731_v6 }
 0x5a4   : > { %v3908_v52 = vpop.f32.mrf.mxu1  ;;  %v4006_v30 = vpop.f32.mrf.mxu2 }
 0x5a5   : > { %v7288_v58 = vadd.f32 %v3908_v52, %v3874_v39 }
 0x5a6   : > { %v3876_v53 = vpop.f32.mrf.mxu0 }
 0x5ac   : > { %v3910_v20 = vpop.f32.mrf.mxu1  ;;  %v4008_v27 = vpop.f32.mrf.mxu2 }
 0x5ad   : > { %v7293_v62 = vadd.f32 %v3910_v20, %v3876_v53 }
 0x5ae   : > { %v3879_v54 = vpop.f32.mrf.mxu0 }
 0x5b4   : > { %v3913_v57 = vpop.f32.mrf.mxu1  ;;  %v4011_v60 = vpop.f32.mrf.mxu2 }
 0x5b5   : > { %v7298_v59 = vadd.f32 %v3913_v57, %v3879_v54 }
 0x5b6   : > { %v3881_v36 = vpop.f32.mrf.mxu0 }
 0x5bc   : > { %v3915_v15 = vpop.f32.mrf.mxu1  ;;  %v4013_v25 = vpop.f32.mrf.mxu2 }
 0x5bd   : > { %v7303_v46 = vadd.f32 %v3915_v15, %v3881_v36 }
 0x5be   : > { %v3884_v21 = vpop.f32.mrf.mxu0 }
 0x5c4   : > { %v3918_v12 = vpop.f32.mrf.mxu1 }
 0x5c5   : > { %v7305_v0 = vadd.f32 %v3918_v12, %v3884_v21 }
 0x5c6   : > { %v3886_v3 = vpop.f32.mrf.mxu0 }
 0x5cc   : > { %v3920_v13 = vpop.f32.mrf.mxu1 }
 0x5cd   : > { %v7310_v4 = vadd.f32 %v3920_v13, %v3886_v3 }
 0x5ce   : > { %v3889_v5 = vpop.f32.mrf.mxu0 }
 0x5d4   : > { %v3923_v8 = vpop.f32.mrf.mxu1  ;;  %v4131_v9 = vpop.f32.mrf.mxu3 }
 0x5d5   : > { %v7312_v17 = vadd.f32 %v3923_v8, %v3889_v5  ;;  %v4132_v37 = vadd.f32 %v4131_v9, %v4001_v41 }
 0x5d6   : > { %v7314_v16 = vpop.f32.mrf.mxu0 }
 0x5dc   : > { %v4133_v11 = vpop.f32.mrf.mxu3 }
 0x5dd   : > { %v4134_v63 = vadd.f32 %v4133_v11, %v4003_v7  ;;  %v4016_v53 = vpop.f32.mrf.mxu2 }
 0x5de   : > { %v4165_v18 = vpop.f32.mrf.mxu0 }
 0x5df   : > { %v4166_v23 = vadd.f32 %v4165_v18, %v4132_v37 }
 0x5e1   : > { %v4194_v29 = vadd.f32 %v7319_v26, %v4166_v23 }
 0x5e3   : > { %v4204_v34 = vmax.f32 %v4194_v29, 0.0 }
 0x5e4   : > { %v4136_v33 = vpop.f32.mrf.mxu3 }
 0x5e5   : > { %v4137_v44 = vadd.f32 %v4136_v33, %v4006_v30  ;;  %v4018_v21 = vpop.f32.mrf.mxu2 }
 0x5e6   : > { %v4167_v28 = vpop.f32.mrf.mxu0 }
 0x5e7   : > { %v4168_v22 = vadd.f32 %v4167_v28, %v4134_v63 }
 0x5e9   : > { %v4195_v31 = vadd.f32 %v7319_v26, %v4168_v22 }
 0x5eb   : > { %v4205_v35 = vmax.f32 %v4195_v31, 0.0 }
 0x5ec   : > { %v4138_v10 = vpop.f32.mrf.mxu3 }
 0x5ed   : > { %v4214_v48 = vpack.c.bf16 %v4205_v35, %v4204_v34  ;;  %v4139_v40 = vadd.f32 %v4138_v10, %v4008_v27  ;;  %v4021_v30 = vpop.f32.mrf.mxu2 }
 0x5ee   : > { %v4170_v38 = vpop.f32.mrf.mxu0 }
 0x5ef   : > { %4291 = vmatmul.bf16.vlgmr.msra.gmra.mxu1 %v4214_v48  ;;  %v4171_v19 = vadd.f32 %v4170_v38, %v4137_v44 }
 0x5f1   : > { %v4196_v32 = vadd.f32 %v7319_v26, %v4171_v19  ;;  %v3925_v19 = vpop.f32.mrf.mxu1 }
 0x5f3   : > { %v4206_v50 = vmax.f32 %v4196_v32, 0.0 }
 0x5f4   : > { %v4141_v43 = vpop.f32.mrf.mxu3 }
 0x5f5   : > { %v4142_v6 = vadd.f32 %v4141_v43, %v4011_v60  ;;  %v4023_v28 = vpop.f32.mrf.mxu2  ;;  %v6364_v43 = vld [vmem:[%s7440_s10] ss:$0 sm:$0xff] }
 0x5f6   : > { %v4172_v61 = vpop.f32.mrf.mxu0 }
 0x5f7   : > { %v4173_v14 = vadd.f32 %v4172_v61, %v4139_v40 }
 0x5f9   : > { %v4197_v47 = vadd.f32 %v7319_v26, %v4173_v14 }
 0x5fb   : > { %v4207_v55 = vmax.f32 %v4197_v47, 0.0 }
 0x5fc   : > { %v4143_v1 = vpop.f32.mrf.mxu3 }
 0x5fd   : > { %v4215_v56 = vpack.c.bf16 %v4207_v55, %v4206_v50  ;;  %v4144_v20 = vadd.f32 %v4143_v1, %v4013_v25 }
 0x5fe   : > { %v4175_v39 = vpop.f32.mrf.mxu0 }
 0x5ff   : > { %4296 = vmatmul.bf16.gmra.mxu1 %v4215_v56  ;;  %v4176_v52 = vadd.f32 %v4175_v39, %v4142_v6 }
 0x601   : > { %v4198_v42 = vadd.f32 %v7319_v26, %v4176_v52 }
 0x603   : > { %v4208_v24 = vmax.f32 %v4198_v42, 0.0 }
 0x604   : > { %v4146_v51 = vpop.f32.mrf.mxu3 }
 0x605   : > { %v4147_v41 = vadd.f32 %v4146_v51, %v4016_v53 }
 0x606   : > { %v4177_v54 = vpop.f32.mrf.mxu0 }
 0x607   : > { %v4178_v57 = vadd.f32 %v4177_v54, %v4144_v20 }
 0x609   : > { %v4199_v36 = vadd.f32 %v7319_v26, %v4178_v57 }
 0x60b   : > { %v4209_v15 = vmax.f32 %v4199_v36, 0.0 }
 0x60c   : > { %v4148_v2 = vpop.f32.mrf.mxu3 }
 0x60d   : > { %v4216_v12 = vpack.c.bf16 %v4209_v15, %v4208_v24  ;;  %v4149_v5 = vadd.f32 %v4148_v2, %v4018_v21  ;;  %v3926_v24 = vadd.f32 %v3925_v19, %v7314_v16 }
 0x60e   : > { %v4180_v3 = vpop.f32.mrf.mxu0 }
 0x60f   : > { %4301 = vmatmul.bf16.gmra.mxu1 %v4216_v12  ;;  %v4181_v13 = vadd.f32 %v4180_v3, %v4147_v41 }
 0x611   : > { %v4200_v8 = vadd.f32 %v7319_v26, %v4181_v13 }
 0x613   : > { %v4210_v37 = vmax.f32 %v4200_v8, 0.0 }
 0x614   : > { %v4151_v11 = vpop.f32.mrf.mxu3 }
 0x615   : > { %v4152_v27 = vadd.f32 %v4151_v11, %v4021_v30 }
 0x616   : > { %v4182_v7 = vpop.f32.mrf.mxu0 }
 0x617   : > { %v4183_v9 = vadd.f32 %v4182_v7, %v4149_v5 }
 0x619   : > { %v4201_v18 = vadd.f32 %v7319_v26, %v4183_v9 }
 0x61b   : > { %v4211_v23 = vmax.f32 %v4201_v18, 0.0 }
 0x61c   : > { %v4153_v29 = vpop.f32.mrf.mxu3 }
 0x61d   : > { %v4217_v33 = vpack.c.bf16 %v4211_v23, %v4210_v37  ;;  %v4154_v31 = vadd.f32 %v4153_v29, %v4023_v28 }
 0x61e   : > { %v4185_v63 = vpop.f32.mrf.mxu0 }
 0x61f   : > { %4306 = vmatmul.bf16.gmra.mxu1 %v4217_v33  ;;  %v4186_v22 = vadd.f32 %v4185_v63, %v4152_v27 }
 0x621   : > { %v4202_v35 = vadd.f32 %v7319_v26, %v4186_v22 }
 0x623   : > { %v4212_v38 = vmax.f32 %v4202_v35, 0.0 }
 0x626   : > { %v4187_v34 = vpop.f32.mrf.mxu0 }
 0x627   : > { %v4188_v10 = vadd.f32 %v4187_v34, %v4154_v31 }
 0x629   : > { %v4203_v48 = vadd.f32 %v7319_v26, %v4188_v10 }
 0x62b   : > { %v4213_v60 = vmax.f32 %v4203_v48, 0.0 }
 0x62d   : > { %v4218_v44 = vpack.c.bf16 %v4213_v60, %v4212_v38 }
 0x62f   : > { %4311 = vmatmul.bf16.gmra.mxu1 %v4218_v44 }
 0x66c   : > { %v4292_v40 = vpop.f32.mrf.mxu1 }
 0x66d   : > { %v4293_v61 = vadd.f32 %v4292_v40, %v7279_v45 }
 0x66f   : > { %v4321_v32 = vadd.f32 %v6364_v43, %v4293_v61 }
 0x671   : > { %4332 = vst.msk [vmem:[%s7336_s26] sm:$0xff] %vm4331_vm4, %v4321_v32 }
 0x674   : > { %v4294_v26 = vpop.f32.mrf.mxu1 }
 0x675   : > { %v4295_v14 = vadd.f32 %v4294_v26, %v7283_v49 }
 0x677   : > { %v4322_v47 = vadd.f32 %v6364_v43, %v4295_v14 }
 0x679   : > { %4333 = vst.msk [vmem:[%s7336_s26 + $0x8] sm:$0xff] %vm4331_vm4, %v4322_v47 }
 0x67c   : > { %v4297_v25 = vpop.f32.mrf.mxu1 }
 0x67d   : > { %v4298_v45 = vadd.f32 %v4297_v25, %v7288_v58 }
 0x67f   : > { %v4323_v50 = vadd.f32 %v6364_v43, %v4298_v45 }
 0x681   : > { %4334 = vst.msk [vmem:[%s7336_s26 + $0x10] sm:$0xff] %vm4331_vm4, %v4323_v50 }
 0x684   : > { %v4299_v55 = vpop.f32.mrf.mxu1 }
 0x685   : > { %v4300_v1 = vadd.f32 %v4299_v55, %v7293_v62 }
 0x687   : > { %v4324_v56 = vadd.f32 %v6364_v43, %v4300_v1 }
 0x689   : > { %4335 = vst.msk [vmem:[%s7336_s26 + $0x18] sm:$0xff] %vm4331_vm4, %v4324_v56 }
 0x68c   : > { %v4302_v39 = vpop.f32.mrf.mxu1 }
 0x68d   : > { %v4303_v49 = vadd.f32 %v4302_v39, %v7298_v59 }
 0x68f   : > { %v4325_v6 = vadd.f32 %v6364_v43, %v4303_v49 }
 0x691   : > { %4336 = vst.msk [vmem:[%s7336_s26 + $0x20] sm:$0xff] %vm4331_vm4, %v4325_v6 }
 0x694   : > { %v4304_v52 = vpop.f32.mrf.mxu1 }
 0x695   : > { %v4305_v58 = vadd.f32 %v4304_v52, %v7303_v46 }
 0x697   : > { %v4326_v53 = vadd.f32 %v6364_v43, %v4305_v58 }
 0x699   : > { %4337 = vst.msk [vmem:[%s7336_s26 + $0x28] sm:$0xff] %vm4331_vm4, %v4326_v53 }
 0x69c   : > { %v4307_v51 = vpop.f32.mrf.mxu1 }
 0x69d   : > { %v4308_v62 = vadd.f32 %v4307_v51, %v7305_v0 }
 0x69f   : > { %v4327_v20 = vadd.f32 %v6364_v43, %v4308_v62 }
 0x6a1   : > { %4338 = vst.msk [vmem:[%s7336_s26 + $0x30] sm:$0xff] %vm4331_vm4, %v4327_v20 }
 0x6a4   : > { %v4309_v54 = vpop.f32.mrf.mxu1 }
 0x6a5   : > { %v4310_v59 = vadd.f32 %v4309_v54, %v7310_v4 }
 0x6a7   : > { %v4328_v42 = vadd.f32 %v6364_v43, %v4310_v59 }
 0x6a9   : > { %4339 = vst.msk [vmem:[%s7336_s26 + $0x38] sm:$0xff] %vm4331_vm4, %v4328_v42 }
 0x6ac   : > { %v4312_v57 = vpop.f32.mrf.mxu1 }
 0x6ad   : > { %v4313_v36 = vadd.f32 %v4312_v57, %v7312_v17 }
 0x6af   : > { %v4329_v46 = vadd.f32 %v6364_v43, %v4313_v36 }
 0x6b1   : > { %4340 = vst.msk [vmem:[%s7336_s26 + $0x40] sm:$0xff] %vm4331_vm4, %v4329_v46 }
 0x6b4   : > { %v4314_v15 = vpop.f32.mrf.mxu1 }
 0x6b5   : > { %v4315_v21 = vadd.f32 %v4314_v15, %v3926_v24  ;;  %4348 = sbr.rel (!%p6581_p4) target bundleno = 1780 (0x6f4), region = 72 }
 0x6b7   : > { %v4330_v0 = vadd.f32 %v6364_v43, %v4315_v21 }
 0x6b9   : > { %4341 = vst.msk [vmem:[%s7336_s26 + $0x48] sm:$0xff] %vm4331_vm4, %v4330_v0 }
 0x6ba   : > { %s7453_s17 = smov (!%p4351_p11, %s4350_s17), 10 }
 0x6bb   : > { %s5925_s29 = sshll.u32 %s7453_s17, 3 }
 0x6bc   : > { %p5928_p12 = scmp.eq.s32.totalorder %s5925_s29, 0 }
 0x6bd   : > { %6365 = sdivrem.u32 (!%p5928_p12), %s7453_s17, 10 }
 0x6be   : > { %4359 = sbr.rel (%p5928_p12) target bundleno = 1780 (0x6f4), region = 76 }
 0x6c6   : > { %s7380_s25 = spop.drf %6365 }
 0x6c7   : > { %s6367_s30 = spop.drf %6365  ;;  %p5929_p13 = scmp.le.s32.totalorder %s7380_s25, 0 }
 0x6c8   : > { %s7445_s20 = smov (!%p5929_p13), %s7374_s28  ;;  %s7446_s14 = smov (!%p5929_p13), %s7336_s26 }
 0x6c9   : > { %4561 = sbr.rel (%p5929_p13) target bundleno = 1754 (0x6da), region = 172  ;;  %s7389_s12 = smov (!%p5929_p13), 0  }
 0x6ca   : > { %s7391_s13 = smov (!%p5929_p13), 0  }
 0x6ce LB: >> { %v4442_v4 = vld [vmem:[%s6467_s14] sm:$0xff]  ;;  %v4444_v17 = vld [vmem:[%s6467_s14 + $0x8] sm:$0xff]  ;;  %v4446_v16 = vld [vmem:[%s6467_s14 + $0x10] sm:$0xff]  ;;  %s4462_s19 = sadd.s32 1, %s6471_s12  ;;  %s4436_s13 = sadd.s32 1, %s6475_s13   ;;  %s6475_s13 = sphi %s7391_s13, %s4436_s13   ;;  %s6471_s12 = sphi %s7389_s12, %s7448_s12   ;;  %s6467_s14 = sphi %s7446_s14, %s4467_s14   ;;  %s6463_s20 = sphi %s7445_s20, %s7447_s20  }
 0x6cf   : >> { %4443 = vst [vmem:[%s6463_s20] sm:$0xff] %v4442_v4  ;;  %v4448_v12 = vld [vmem:[%s6467_s14 + $0x18] sm:$0xff]  ;;  %p4463_p0 = scmp.ge.s32.totalorder %s4462_s19, %s7380_s25  ;;  %v4450_v2 = vld [vmem:[%s6467_s14 + $0x20] sm:$0xff]  ;;  %v4452_v3 = vld [vmem:[%s6467_s14 + $0x28] sm:$0xff]  ;;  %p4435_p1 = scmp.ge.s32.totalorder %s4436_s13, %s7380_s25 }
 0x6d0   : >> { %4445 = vst [vmem:[%s6463_s20 + $0x8] sm:$0xff] %v4444_v17  ;;  %v4454_v41 = vld [vmem:[%s6467_s14 + $0x30] sm:$0xff]  ;;  %v4456_v13 = vld [vmem:[%s6467_s14 + $0x38] sm:$0xff]  ;;  %v4458_v5 = vld [vmem:[%s6467_s14 + $0x40] sm:$0xff] }
 0x6d1   : >> { %4447 = vst [vmem:[%s6463_s20 + $0x10] sm:$0xff] %v4446_v16  ;;  %s7455_s19 = smov (%p4463_p0, %s4462_s19), 0  ;;  %v4460_v7 = vld [vmem:[%s6467_s14 + $0x48] sm:$0xff] }
 0x6d2   : >> { %4449 = vst [vmem:[%s6463_s20 + $0x18] sm:$0xff] %v4448_v12  ;;  %s4465_s15 = smul.u32 80, %s7455_s19  ;;  %s7448_s12 = smov %s7455_s19 }
 0x6d3   : >> { %4451 = vst [vmem:[%s6463_s20 + $0x20] sm:$0xff] %v4450_v2 }
 0x6d4   : >> { %4453 = vst [vmem:[%s6463_s20 + $0x28] sm:$0xff] %v4452_v3  ;;  %s4467_s14 = scalar_lea.vmem %s7336_s26, %s4465_s15 [#allocation4]   ;;  %s4468_s22 = scalar_lea.vmem %s7374_s28, %s4465_s15  }
 0x6d5   : >> { %4455 = vst [vmem:[%s6463_s20 + $0x30] sm:$0xff] %v4454_v41  ;;  %4438 = sbr.rel (!%p4435_p1) target bundleno = 1742 (0x6ce), region = 178 }
 0x6d6   : >> { %4457 = vst [vmem:[%s6463_s20 + $0x38] sm:$0xff] %v4456_v13 }
 0x6d7   : >> { %4459 = vst [vmem:[%s6463_s20 + $0x40] sm:$0xff] %v4458_v5 }
 0x6d8   : >> { %4461 = vst [vmem:[%s6463_s20 + $0x48] sm:$0xff] %v4460_v7  ;;  %s7447_s20 = smov %s4468_s22 }
 0x6da PF: > { %6368 = sdivrem.u32 %s7453_s17, 10 }
 0x6db   : > { %s5930_s27 = smul.u32 80, %s7380_s25 }
 0x6dd   : > { %s7415_s16 = scalar_lea.vmem %s7336_s26, %s5930_s27 [#allocation4]   ;;  %s4475_s23 = scalar_lea.vmem %s7374_s28, %s5930_s27  }
 0x6e3   : > { %s6369_s29 = spop.drf %6368 }
 0x6e4   : > { %s6370_s30 = spop.drf %6368 }
 0x6e5   : > { %p5932_p2 = scmp.le.s32.totalorder %s6370_s30, 0 }
 0x6e6   : > { %s6477_s15 = smov (!%p5932_p2), %s4475_s23   ;;  %s6481_s19 = smov (!%p5932_p2), %s7415_s16  }
 0x6e7   : > { %4575 = sbr.rel (%p5932_p2) target bundleno = 1780 (0x6f4), region = 183  ;;  %s6485_s22 = smov (!%p5932_p2), 0  }
 0x6e8   : > { %s6489_s13 = smov (!%p5932_p2), 0  }
 0x6ec LB: >> { %v4485_v8 = vld [vmem:[%s6483_s19] sm:$0xff]  ;;  %s4487_s26 = sadd.s32 1, %s6487_s22  ;;  %s4479_s13 = sadd.s32 1, %s6491_s13   ;;  %s6491_s13 = sphi %s6489_s13, %s4479_s13   ;;  %s6487_s22 = sphi %s6485_s22, %s6486_s22   ;;  %s6483_s19 = sphi %s6481_s19, %s4492_s19   ;;  %s6479_s15 = sphi %s6477_s15, %s4493_s15  }
 0x6ed   : >> { %4486 = vst [vmem:[%s6479_s15] sm:$0xff] %v4485_v8  ;;  %p4488_p3 = scmp.ge.s32.totalorder %s4487_s26, %s6370_s30  ;;  %p4478_p4 = scmp.ge.s32.totalorder %s4479_s13, %s6370_s30 }
 0x6ef   : >> { %s7457_s26 = smov (%p4488_p3, %s4487_s26), 0  ;;  %4481 = sbr.rel (!%p4478_p4) target bundleno = 1772 (0x6ec), region = 189 }
 0x6f0   : >> { %s5933_s17 = sshll.u32 %s7457_s26, 3  ;;  %s6486_s22 = smov %s7457_s26  }
 0x6f1   : >> { %s4492_s19 = scalar_lea.vmem %s7415_s16, %s5933_s17 [#allocation4]   ;;  %s4493_s15 = scalar_lea.vmem %s4475_s23, %s5933_s17  }
 0x6f4 PF: > { %p19_p5 = scmp.ge.s32.totalorder %s6571_s21, 4   ;;  %s7449_s17 = smov %s6455_s18 }
 0x6f5   : > { %s7450_s18 = smov %s6579_s24  ;;  %s7451_s19 = smov %s6571_s21 }
 0x6f6   :  { %21 = sbr.rel (!%p19_p5) target bundleno = 2 (0x2), region = 200 }
 0x6fb   :  { %4509 = vsyncpa [#allocation3], 1 }
 0x6fc   :  { %4511 = vsyncpa [#allocation3 + $0x1], 1 }

</bundles_post_ra>
